<compile_context>
chip_gen: v5e
topology: v5e:2x2
jax: 0.10.0
libtpu: 0.0.40
codegen_flags: <defaults>
</compile_context>

<pallas_src>
import functools
import math

import jax
import jax.numpy as jnp
from jax.experimental import pallas as pl
from jax.experimental.pallas import tpu as pltpu

EPS = 1e-6


# ----------------------------------------------------------------------------
# in-kernel helpers
# ----------------------------------------------------------------------------
def _layernorm(x, alpha, bias):
    # Matches the reference Norm module:
    #   alpha * (x - mean) / (std + eps) + bias,  std unbiased (div by D-1).
    d = x.shape[-1]
    mean = jnp.mean(x, axis=-1, keepdims=True)
    diff = x - mean
    var = jnp.sum(diff * diff, axis=-1, keepdims=True) * (1.0 / (d - 1))
    std = jnp.sqrt(var)
    return alpha * (diff / (std + EPS)) + bias        # exact reciprocal (norms)


# ----------------------------------------------------------------------------
# fused encoder-stack kernel: one grid step = one (batch-tile, layer) pair
# ----------------------------------------------------------------------------
def encoder_stack_kernel(x_ref, mb_ref, wqkv_ref, wo_ref, w1_ref, w2_ref,
                         vecd_ref, bqkv_ref, c1_ref, fnorm_ref, out_ref,
                         *, heads):
    layer = pl.program_id(1)
    n_layers = pl.num_programs(1)

    # Load the embedded input into the layer-resident output block at layer 0.
    @pl.when(layer == 0)
    def _():
        out_ref[...] = x_ref[...]

    x = out_ref[...]                         # (Bt, S, D) f32, resident over l
    Bt, S, D = x.shape
    dk = D // heads
    M = Bt * S

    # per-layer vectors, ref-indexed (rows: a1, g1, bo, a2, g2, c2)
    a1 = vecd_ref[0:1]
    g1 = vecd_ref[1:2]
    bo = vecd_ref[2:3]
    a2 = vecd_ref[3:4]
    g2 = vecd_ref[4:5]
    c2 = vecd_ref[5:6]

    # --- self-attention sub-block:  x = x + attn(norm_1(x)) ---
    x2 = _layernorm(x, a1, g1).astype(jnp.bfloat16).reshape(M, D)
    # fused QKV projection; 1/sqrt(dk) already folded into wq / bq at init
    qkv = jnp.dot(x2, wqkv_ref[...], preferred_element_type=jnp.float32)
    qkv = qkv + bqkv_ref[...]                                      # (M, 3D)
    q = qkv[:, :D].reshape(Bt, S, heads, dk).astype(jnp.bfloat16)
    k = qkv[:, D:2 * D].reshape(Bt, S, heads, dk).astype(jnp.bfloat16)
    v = qkv[:, 2 * D:].reshape(Bt, S, heads, dk).astype(jnp.bfloat16)

    # TODO(synk): for long S, tile the key axis with an online-softmax loop
    # instead of materializing (heads, S, S) scores (needed on v7x 64MiB VMEM).
    outs = []
    for b in range(Bt):                      # static unroll over the batch tile
        s = jnp.einsum('qhd,khd->hqk', q[b], k[b],
                       preferred_element_type=jnp.float32)
        s = s + mb_ref[b]                    # (1, S) additive key-mask bias
        s = s - jnp.max(s, axis=-1, keepdims=True)
        e = jnp.exp(s)
        p = e * pl.reciprocal(jnp.sum(e, axis=-1, keepdims=True), approx=True)
        ob = jnp.einsum('hqk,khd->qhd', p.astype(jnp.bfloat16), v[b],
                        preferred_element_type=jnp.float32)        # (S, h, dk)
        outs.append(ob.reshape(S, D))
    o = jnp.stack(outs, axis=0).reshape(M, D).astype(jnp.bfloat16)

    attn = jnp.dot(o, wo_ref[...], preferred_element_type=jnp.float32) + bo
    x = x + attn.reshape(Bt, S, D)           # dropout = identity (eval)

    # --- feed-forward sub-block:  x = x + ff(norm_2(x)) ---
    x2 = _layernorm(x, a2, g2).astype(jnp.bfloat16).reshape(M, D)
    h1 = jnp.dot(x2, w1_ref[...], preferred_element_type=jnp.float32) + c1_ref[...]
    h1 = jnp.maximum(h1, 0.0).astype(jnp.bfloat16)
    ff = jnp.dot(h1, w2_ref[...], preferred_element_type=jnp.float32) + c2
    x = x + ff.reshape(Bt, S, D)

    out_ref[...] = x                         # carry to next layer

    # final Norm folded into the last-layer epilogue
    @pl.when(layer == n_layers - 1)
    def _():
        out_ref[...] = _layernorm(x, fnorm_ref[0:1], fnorm_ref[1:2])


# ----------------------------------------------------------------------------
# wrapper around pallas_call
# ----------------------------------------------------------------------------
def _pick_b_tile(B, cap=8):
    # Largest divisor of B not exceeding `cap`, preferring >= 2 grid steps on
    # the batch ("parallel") axis so both v7x TensorCores get work.
    best = 1
    for t in range(1, min(B, cap) + 1):
        if B % t == 0 and (B // t >= 2 or B == 1):
            best = t
    return best


def _vmem_limit_bytes(b_tile, S, D, d_ff, heads):
    try:
        cap = getattr(pltpu.get_tpu_info(), "vmem_capacity_bytes",
                      64 * 1024 * 1024)
    except Exception:
        cap = 64 * 1024 * 1024
    bf16, f32 = 2, 4
    w_layer = (3 * D * D + D * D + 2 * D * d_ff) * bf16 \
              + (6 * D + 3 * D + d_ff) * f32
    act = b_tile * S * D * f32
    scores = b_tile * heads * S * S * f32
    # double-buffered weights + I/O tiles + score/exp temporaries + headroom
    need = 2 * w_layer + 8 * act + 4 * scores + (4 << 20)
    return int(min(cap * 3 // 4, max(32 << 20, need)))


def encoder_stack(x, mask_bias, params, heads, b_tile=None):
    B, S, D = x.shape
    L, _, D3 = params["w_qkv"].shape
    d_ff = params["w1"].shape[2]
    if b_tile is None:
        b_tile = _pick_b_tile(B)
    assert B % b_tile == 0

    x_spec = pl.BlockSpec((b_tile, S, D), lambda b, l: (b, 0, 0))
    return pl.pallas_call(
        functools.partial(encoder_stack_kernel, heads=heads),
        out_shape=jax.ShapeDtypeStruct((B, S, D), jnp.float32),
        grid=(B // b_tile, L),
        in_specs=[
            x_spec,                                                  # x
            pl.BlockSpec((b_tile, 1, S), lambda b, l: (b, 0, 0)),    # mask bias
            pl.BlockSpec((None, D, D3), lambda b, l: (l, 0, 0)),     # wq|wk|wv
            pl.BlockSpec((None, D, D), lambda b, l: (l, 0, 0)),      # wo
            pl.BlockSpec((None, D, d_ff), lambda b, l: (l, 0, 0)),   # FF w1
            pl.BlockSpec((None, d_ff, D), lambda b, l: (l, 0, 0)),   # FF w2
            pl.BlockSpec((None, 6, D), lambda b, l: (l, 0, 0)),      # packed vecs
            pl.BlockSpec((None, 1, D3), lambda b, l: (l, 0, 0)),     # bqkv
            pl.BlockSpec((None, 1, d_ff), lambda b, l: (l, 0, 0)),   # FF bias c1
            pl.BlockSpec((2, D), lambda b, l: (0, 0)),               # final norm
        ],
        out_specs=x_spec,     # block index constant over l -> layer-resident
        compiler_params=pltpu.CompilerParams(
            dimension_semantics=("parallel", "arbitrary"),
            vmem_limit_bytes=_vmem_limit_bytes(b_tile, S, D, d_ff, heads),
        ),
    )(x, mask_bias, params["w_qkv"], params["w_o"], params["w1"], params["w2"],
      params["vec_d"], params["b_qkv"], params["c1"], params["fnorm"])


# ----------------------------------------------------------------------------
# full Encoder forward (embed + PE in plain JAX glue, fused stack in Pallas)
# ----------------------------------------------------------------------------
def positional_encoding(seq_len, d_model):
    # Replicates the reference PositionalEncoder table exactly.
    pos = jnp.arange(seq_len, dtype=jnp.float32)[:, None]
    i_even = jnp.arange(0, d_model, 2, dtype=jnp.float32)
    pe_sin = jnp.sin(pos / jnp.power(10000.0, (2.0 * i_even) / d_model))
    pe_cos = jnp.cos(pos / jnp.power(10000.0, (2.0 * (i_even + 1.0)) / d_model))
    return jnp.stack([pe_sin, pe_cos], axis=-1).reshape(seq_len, d_model)


def encoder_forward(src, mask, params, d_model, heads):
    # Embedder + PositionalEncoder (dropout == identity in eval mode).
    # TODO(synk): embedding gather stays in plain JAX (tiny lookup; no benefit
    # from an in-kernel DMA gather at these sizes).
    x = jnp.take(params["embed"], src, axis=0)                      # (B, S, D)
    S = src.shape[1]
    x = x * math.sqrt(d_model) + positional_encoding(S, d_model)[None, :, :]
    x = x.astype(jnp.float32)
    # hoist the mask to an additive bias once (1 -> 0, 0 -> -1e9)
    mask_bias = (mask.astype(jnp.float32) - 1.0) * 1e9              # (B, 1, S)
    return encoder_stack(x, mask_bias, params, heads)


# ----------------------------------------------------------------------------
# deterministic parameter construction (pre-stacked / pre-fused per-layer)
# ----------------------------------------------------------------------------
def init_params(key, vocab_size, d_model, d_ff, n_layers, heads):
    def nrm(k, shape, s=0.05):
        return (s * jax.random.normal(k, shape)).astype(jnp.float32)

    dk = d_model // heads
    scale = 1.0 / math.sqrt(dk)

    keys = jax.random.split(key, 1 + n_layers)
    embed = nrm(keys[0], (vocab_size, d_model), 1.0)

    ones_d = jnp.ones((1, d_model), jnp.float32)
    zeros_d = jnp.zeros((1, d_model), jnp.float32)

    w_qkv, w_o, w1s, w2s, vec_d, b_qkv, c1s = [], [], [], [], [], [], []
    for li in range(n_layers):
        lk = jax.random.split(keys[1 + li], 12)
        wq = nrm(lk[0], (d_model, d_model)); bq = nrm(lk[1], (1, d_model))
        wk = nrm(lk[2], (d_model, d_model)); bk = nrm(lk[3], (1, d_model))
        wv = nrm(lk[4], (d_model, d_model)); bv = nrm(lk[5], (1, d_model))
        wo = nrm(lk[6], (d_model, d_model)); bo = nrm(lk[7], (1, d_model))
        w1 = nrm(lk[8], (d_model, d_ff));    c1 = nrm(lk[9], (1, d_ff))
        w2 = nrm(lk[10], (d_ff, d_model));   c2 = nrm(lk[11], (1, d_model))

        # fold 1/sqrt(dk) into the query projection (weights AND bias)
        wqkv = jnp.concatenate([wq * scale, wk, wv], axis=1)        # (D, 3D)
        bqkv = jnp.concatenate([bq * scale, bk, bv], axis=1)        # (1, 3D)
        # packed (6, D): a1, g1, bo, a2, g2, c2
        vec = jnp.concatenate([ones_d, zeros_d, bo, ones_d, zeros_d, c2],
                              axis=0)

        w_qkv.append(wqkv)
        w_o.append(wo)
        w1s.append(w1)
        w2s.append(w2)
        vec_d.append(vec)
        b_qkv.append(bqkv[None])
        c1s.append(c1[None])

    return {
        "embed": embed,
        "w_qkv": jnp.stack(w_qkv).astype(jnp.bfloat16),    # (L, D, 3D)
        "w_o": jnp.stack(w_o).astype(jnp.bfloat16),        # (L, D, D)
        "w1": jnp.stack(w1s).astype(jnp.bfloat16),         # (L, D, d_ff)
        "w2": jnp.stack(w2s).astype(jnp.bfloat16),         # (L, d_ff, D)
        "vec_d": jnp.stack(vec_d),                         # (L, 6, D) f32
        "b_qkv": jnp.concatenate(b_qkv, axis=0),           # (L, 1, 3D) f32
        "c1": jnp.concatenate(c1s, axis=0),                # (L, 1, d_ff) f32
        "fnorm": jnp.concatenate([ones_d, zeros_d], axis=0),  # (2, D) f32
    }


# ----------------------------------------------------------------------------
if __name__ == "__main__":
    B, S = 4, 8
    D_MODEL, HEADS, N_LAYERS = 32, 4, 2
    VOCAB, D_FF = 50, 64            # d_ff kept small (reference default is 2048)

    key = jax.random.PRNGKey(0)
    kp, ks = jax.random.split(key)
    params = init_params(kp, VOCAB, D_MODEL, D_FF, N_LAYERS, HEADS)

    src = jax.random.randint(ks, (B, S), 1, VOCAB, dtype=jnp.int32)
    src = src.at[:, -2:].set(0)                       # fake padding tokens
    mask = (src != 0).astype(jnp.float32).reshape(B, 1, S)

    out = encoder_forward(src, mask, params, D_MODEL, HEADS)
    out = jax.block_until_ready(out)
    assert out.shape == (B, S, D_MODEL) and out.dtype == jnp.float32
    assert bool(jnp.all(jnp.isfinite(out)))
    print("KERNEL_OK")
</pallas_src>

<mosaic_0001>
module attributes {stable_mosaic.version = 11 : i64} {
  func.func @encoder_stack_kernel(%arg0: i32, %arg1: i32, %arg2: memref<2x8x32xf32, #tpu.memory_space<vmem>>, %arg3: memref<2x1x8xf32, #tpu.memory_space<vmem>>, %arg4: memref<1x32x96xbf16, #tpu.memory_space<vmem>>, %arg5: memref<1x32x32xbf16, #tpu.memory_space<vmem>>, %arg6: memref<1x32x64xbf16, #tpu.memory_space<vmem>>, %arg7: memref<1x64x32xbf16, #tpu.memory_space<vmem>>, %arg8: memref<1x6x32xf32, #tpu.memory_space<vmem>>, %arg9: memref<1x1x96xf32, #tpu.memory_space<vmem>>, %arg10: memref<1x1x64xf32, #tpu.memory_space<vmem>>, %arg11: memref<2x32xf32, #tpu.memory_space<vmem>>, %arg12: memref<2x8x32xf32, #tpu.memory_space<vmem>>) attributes {dimension_semantics = [#tpu.dimension_semantics<parallel>, #tpu.dimension_semantics<arbitrary>], iteration_bounds = array<i64: 2, 2>, scalar_prefetch = 0 : i64, scratch_operands = 0 : i64, tpu.core_type = #tpu.core_type<tc>, window_params = [{transform_indices = @transform_0, window_bounds = array<i64: 2, 8, 32>}, {transform_indices = @transform_1, window_bounds = array<i64: 2, 1, 8>}, {transform_indices = @transform_2, window_bounds = array<i64: 1, 32, 96>}, {transform_indices = @transform_3, window_bounds = array<i64: 1, 32, 32>}, {transform_indices = @transform_4, window_bounds = array<i64: 1, 32, 64>}, {transform_indices = @transform_5, window_bounds = array<i64: 1, 64, 32>}, {transform_indices = @transform_6, window_bounds = array<i64: 1, 6, 32>}, {transform_indices = @transform_7, window_bounds = array<i64: 1, 1, 96>}, {transform_indices = @transform_8, window_bounds = array<i64: 1, 1, 64>}, {pipeline_mode = #tpu.pipeline_mode<synchronous>, transform_indices = @transform_9, window_bounds = array<i64: 2, 32>}, {transform_indices = @transform_10, window_bounds = array<i64: 2, 8, 32>}]} {
    %c0_i32 = arith.constant 0 : i32
    %0 = arith.cmpi eq, %arg1, %c0_i32 : i32
    %1 = arith.extui %0 : i1 to i32
    %c0_i32_0 = arith.constant 0 : i32
    %2 = arith.cmpi ne, %1, %c0_i32_0 : i32
    scf.if %2 {
      %c0_66 = arith.constant 0 : index
      %c0_67 = arith.constant 0 : index
      %c0_68 = arith.constant 0 : index
      %165 = vector.load %arg2[%c0_66, %c0_67, %c0_68] : memref<2x8x32xf32, #tpu.memory_space<vmem>>, vector<2x8x32xf32>
      %c0_69 = arith.constant 0 : index
      %c0_70 = arith.constant 0 : index
      %c0_71 = arith.constant 0 : index
      %166 = vector.load %arg12[%c0_69, %c0_70, %c0_71] : memref<2x8x32xf32, #tpu.memory_space<vmem>>, vector<2x8x32xf32>
      tpu.vector_store %arg12[%c0_69, %c0_70, %c0_71], %165 {strides = array<i32>} : memref<2x8x32xf32, #tpu.memory_space<vmem>>, vector<2x8x32xf32>,
    } else {
    }
    %c0 = arith.constant 0 : index
    %c0_1 = arith.constant 0 : index
    %c0_2 = arith.constant 0 : index
    %3 = vector.load %arg12[%c0, %c0_1, %c0_2] : memref<2x8x32xf32, #tpu.memory_space<vmem>>, vector<2x8x32xf32>
    %c0_3 = arith.constant 0 : index
    %c0_4 = arith.constant 0 : index
    %c0_5 = arith.constant 0 : index
    %4 = vector.load %arg8[%c0_3, %c0_4, %c0_5] : memref<1x6x32xf32, #tpu.memory_space<vmem>>, vector<1x1x32xf32>
    %5 = vector.shape_cast %4 : vector<1x1x32xf32> to vector<1x32xf32>
    %c0_6 = arith.constant 0 : index
    %c1 = arith.constant 1 : index
    %c0_7 = arith.constant 0 : index
    %6 = vector.load %arg8[%c0_6, %c1, %c0_7] : memref<1x6x32xf32, #tpu.memory_space<vmem>>, vector<1x1x32xf32>
    %7 = vector.shape_cast %6 : vector<1x1x32xf32> to vector<1x32xf32>
    %c0_8 = arith.constant 0 : index
    %c2 = arith.constant 2 : index
    %c0_9 = arith.constant 0 : index
    %8 = vector.load %arg8[%c0_8, %c2, %c0_9] : memref<1x6x32xf32, #tpu.memory_space<vmem>>, vector<1x1x32xf32>
    %9 = vector.shape_cast %8 : vector<1x1x32xf32> to vector<1x32xf32>
    %c0_10 = arith.constant 0 : index
    %c3 = arith.constant 3 : index
    %c0_11 = arith.constant 0 : index
    %10 = vector.load %arg8[%c0_10, %c3, %c0_11] : memref<1x6x32xf32, #tpu.memory_space<vmem>>, vector<1x1x32xf32>
    %11 = vector.shape_cast %10 : vector<1x1x32xf32> to vector<1x32xf32>
    %c0_12 = arith.constant 0 : index
    %c4 = arith.constant 4 : index
    %c0_13 = arith.constant 0 : index
    %12 = vector.load %arg8[%c0_12, %c4, %c0_13] : memref<1x6x32xf32, #tpu.memory_space<vmem>>, vector<1x1x32xf32>
    %13 = vector.shape_cast %12 : vector<1x1x32xf32> to vector<1x32xf32>
    %c0_14 = arith.constant 0 : index
    %c5 = arith.constant 5 : index
    %c0_15 = arith.constant 0 : index
    %14 = vector.load %arg8[%c0_14, %c5, %c0_15] : memref<1x6x32xf32, #tpu.memory_space<vmem>>, vector<1x1x32xf32>
    %15 = vector.shape_cast %14 : vector<1x1x32xf32> to vector<1x32xf32>
    %cst = arith.constant dense<0.000000e+00> : vector<2x8xf32>
    %16 = vector.multi_reduction <add>, %3, %cst [2] : vector<2x8x32xf32> to vector<2x8xf32>
    %17 = vector.shape_cast %16 : vector<2x8xf32> to vector<2x8x1xf32>
    %cst_16 = arith.constant 3.200000e+01 : f32
    %18 = vector.broadcast %cst_16 : f32 to vector<2x8x1xf32>
    %19 = arith.divf %17, %18 : vector<2x8x1xf32>
    %20 = vector.broadcast %19 : vector<2x8x1xf32> to vector<2x8x32xf32>
    %21 = arith.subf %3, %20 : vector<2x8x32xf32>
    %22 = arith.mulf %21, %21 : vector<2x8x32xf32>
    %cst_17 = arith.constant dense<0.000000e+00> : vector<2x8xf32>
    %23 = vector.multi_reduction <add>, %22, %cst_17 [2] : vector<2x8x32xf32> to vector<2x8xf32>
    %24 = vector.shape_cast %23 : vector<2x8xf32> to vector<2x8x1xf32>
    %cst_18 = arith.constant 0.0322580636 : f32
    %25 = vector.broadcast %cst_18 : f32 to vector<2x8x1xf32>
    %26 = arith.mulf %24, %25 : vector<2x8x1xf32>
    %27 = math.sqrt %26 : vector<2x8x1xf32>
    %cst_19 = arith.constant 9.99999997E-7 : f32
    %28 = vector.broadcast %cst_19 : f32 to vector<2x8x1xf32>
    %29 = arith.addf %27, %28 : vector<2x8x1xf32>
    %30 = vector.broadcast %29 : vector<2x8x1xf32> to vector<2x8x32xf32>
    %31 = arith.divf %21, %30 : vector<2x8x32xf32>
    %32 = vector.shape_cast %5 : vector<1x32xf32> to vector<1x1x32xf32>
    %33 = vector.broadcast %32 : vector<1x1x32xf32> to vector<2x8x32xf32>
    %34 = arith.mulf %33, %31 : vector<2x8x32xf32>
    %35 = vector.shape_cast %7 : vector<1x32xf32> to vector<1x1x32xf32>
    %36 = vector.broadcast %35 : vector<1x1x32xf32> to vector<2x8x32xf32>
    %37 = arith.addf %34, %36 : vector<2x8x32xf32>
    %38 = arith.truncf %37 : vector<2x8x32xf32> to vector<2x8x32xbf16>
    %39 = vector.shape_cast %38 : vector<2x8x32xbf16> to vector<16x32xbf16>
    %c0_20 = arith.constant 0 : index
    %c0_21 = arith.constant 0 : index
    %c0_22 = arith.constant 0 : index
    %40 = vector.load %arg4[%c0_20, %c0_21, %c0_22] : memref<1x32x96xbf16, #tpu.memory_space<vmem>>, vector<1x32x96xbf16>
    %41 = vector.shape_cast %40 : vector<1x32x96xbf16> to vector<32x96xbf16>
    %cst_23 = arith.constant dense<0.000000e+00> : vector<16x96xf32>
    %42 = tpu.matmul %39, %41, %cst_23 {dimension_numbers = #tpu.dot_dimension_numbers<[1], [0], [0], [1], [0, 0, 1, 1], [], []>} : vector<16x32xbf16>, vector<32x96xbf16>, vector<16x96xf32> -> vector<16x96xf32>
    %c0_24 = arith.constant 0 : index
    %c0_25 = arith.constant 0 : index
    %c0_26 = arith.constant 0 : index
    %43 = vector.load %arg9[%c0_24, %c0_25, %c0_26] : memref<1x1x96xf32, #tpu.memory_space<vmem>>, vector<1x1x96xf32>
    %44 = vector.shape_cast %43 : vector<1x1x96xf32> to vector<1x96xf32>
    %45 = vector.broadcast %44 : vector<1x96xf32> to vector<16x96xf32>
    %46 = arith.addf %42, %45 : vector<16x96xf32>
    %47 = vector.extract_strided_slice %46 {offsets = [0, 0], sizes = [16, 32], strides = [1, 1]} : vector<16x96xf32> to vector<16x32xf32>
    %48 = vector.shape_cast %47 : vector<16x32xf32> to vector<2x8x4x8xf32>
    %49 = arith.truncf %48 : vector<2x8x4x8xf32> to vector<2x8x4x8xbf16>
    %50 = vector.extract_strided_slice %46 {offsets = [0, 32], sizes = [16, 32], strides = [1, 1]} : vector<16x96xf32> to vector<16x32xf32>
    %51 = vector.shape_cast %50 : vector<16x32xf32> to vector<2x8x4x8xf32>
    %52 = arith.truncf %51 : vector<2x8x4x8xf32> to vector<2x8x4x8xbf16>
    %53 = vector.extract_strided_slice %46 {offsets = [0, 64], sizes = [16, 32], strides = [1, 1]} : vector<16x96xf32> to vector<16x32xf32>
    %54 = vector.shape_cast %53 : vector<16x32xf32> to vector<2x8x4x8xf32>
    %55 = arith.truncf %54 : vector<2x8x4x8xf32> to vector<2x8x4x8xbf16>
    %56 = vector.extract_strided_slice %49 {offsets = [0, 0, 0, 0], sizes = [1, 8, 4, 8], strides = [1, 1, 1, 1]} : vector<2x8x4x8xbf16> to vector<1x8x4x8xbf16>
    %57 = vector.shape_cast %56 : vector<1x8x4x8xbf16> to vector<8x4x8xbf16>
    %58 = vector.extract_strided_slice %52 {offsets = [0, 0, 0, 0], sizes = [1, 8, 4, 8], strides = [1, 1, 1, 1]} : vector<2x8x4x8xbf16> to vector<1x8x4x8xbf16>
    %59 = vector.shape_cast %58 : vector<1x8x4x8xbf16> to vector<8x4x8xbf16>
    "tpu.trace_start"() <{level = 10 : i32, message = "qhd,khd->hqk"}> : () -> ()
    %cst_27 = arith.constant dense<0.000000e+00> : vector<4x8x8xf32>
    %60 = tpu.matmul %57, %59, %cst_27 {dimension_numbers = #tpu.dot_dimension_numbers<[2], [2], [0], [0], [0, 1, 0, 0, 1, 0], [1], [1]>} : vector<8x4x8xbf16>, vector<8x4x8xbf16>, vector<4x8x8xf32> -> vector<4x8x8xf32>
    "tpu.trace_stop"() : () -> ()
    %c0_28 = arith.constant 0 : index
    %c0_29 = arith.constant 0 : index
    %c0_30 = arith.constant 0 : index
    %61 = vector.load %arg3[%c0_28, %c0_29, %c0_30] : memref<2x1x8xf32, #tpu.memory_space<vmem>>, vector<1x1x8xf32>
    %62 = vector.shape_cast %61 : vector<1x1x8xf32> to vector<1x8xf32>
    %63 = vector.shape_cast %62 : vector<1x8xf32> to vector<1x1x8xf32>
    %64 = vector.broadcast %63 : vector<1x1x8xf32> to vector<4x8x8xf32>
    %65 = arith.addf %60, %64 : vector<4x8x8xf32>
    %cst_31 = arith.constant dense<0xFF800000> : vector<4x8xf32>
    %66 = vector.multi_reduction <maximumf>, %65, %cst_31 [2] : vector<4x8x8xf32> to vector<4x8xf32>
    %67 = vector.shape_cast %66 : vector<4x8xf32> to vector<4x8x1xf32>
    %68 = vector.broadcast %67 : vector<4x8x1xf32> to vector<4x8x8xf32>
    %69 = arith.subf %65, %68 : vector<4x8x8xf32>
    %70 = math.exp %69 : vector<4x8x8xf32>
    %cst_32 = arith.constant dense<0.000000e+00> : vector<4x8xf32>
    %71 = vector.multi_reduction <add>, %70, %cst_32 [2] : vector<4x8x8xf32> to vector<4x8xf32>
    %72 = vector.shape_cast %71 : vector<4x8xf32> to vector<4x8x1xf32>
    %73 = tpu.reciprocal %72 {approx = true} : vector<4x8x1xf32> -> vector<4x8x1xf32>
    %74 = vector.broadcast %73 : vector<4x8x1xf32> to vector<4x8x8xf32>
    %75 = arith.mulf %70, %74 : vector<4x8x8xf32>
    %76 = arith.truncf %75 : vector<4x8x8xf32> to vector<4x8x8xbf16>
    %77 = vector.extract_strided_slice %55 {offsets = [0, 0, 0, 0], sizes = [1, 8, 4, 8], strides = [1, 1, 1, 1]} : vector<2x8x4x8xbf16> to vector<1x8x4x8xbf16>
    %78 = vector.shape_cast %77 : vector<1x8x4x8xbf16> to vector<8x4x8xbf16>
    "tpu.trace_start"() <{level = 10 : i32, message = "hqk,khd->qhd"}> : () -> ()
    %cst_33 = arith.constant dense<0.000000e+00> : vector<4x8x8xf32>
    %79 = tpu.matmul %78, %76, %cst_33 {dimension_numbers = #tpu.dot_dimension_numbers<[0], [2], [2], [1], [0, 1, 0, 2, 1, 1], [1], [0]>} : vector<8x4x8xbf16>, vector<4x8x8xbf16>, vector<4x8x8xf32> -> vector<4x8x8xf32>
    %80 = tpu.transpose %79, [2, 0, 1] : vector<4x8x8xf32> -> vector<8x4x8xf32>
    "tpu.trace_stop"() : () -> ()
    %81 = vector.shape_cast %80 : vector<8x4x8xf32> to vector<8x32xf32>
    %82 = vector.extract_strided_slice %49 {offsets = [1, 0, 0, 0], sizes = [1, 8, 4, 8], strides = [1, 1, 1, 1]} : vector<2x8x4x8xbf16> to vector<1x8x4x8xbf16>
    %83 = vector.shape_cast %82 : vector<1x8x4x8xbf16> to vector<8x4x8xbf16>
    %84 = vector.extract_strided_slice %52 {offsets = [1, 0, 0, 0], sizes = [1, 8, 4, 8], strides = [1, 1, 1, 1]} : vector<2x8x4x8xbf16> to vector<1x8x4x8xbf16>
    %85 = vector.shape_cast %84 : vector<1x8x4x8xbf16> to vector<8x4x8xbf16>
    "tpu.trace_start"() <{level = 10 : i32, message = "qhd,khd->hqk"}> : () -> ()
    %cst_34 = arith.constant dense<0.000000e+00> : vector<4x8x8xf32>
    %86 = tpu.matmul %83, %85, %cst_34 {dimension_numbers = #tpu.dot_dimension_numbers<[2], [2], [0], [0], [0, 1, 0, 0, 1, 0], [1], [1]>} : vector<8x4x8xbf16>, vector<8x4x8xbf16>, vector<4x8x8xf32> -> vector<4x8x8xf32>
    "tpu.trace_stop"() : () -> ()
    %c1_35 = arith.constant 1 : index
    %c0_36 = arith.constant 0 : index
    %c0_37 = arith.constant 0 : index
    %87 = vector.load %arg3[%c1_35, %c0_36, %c0_37] : memref<2x1x8xf32, #tpu.memory_space<vmem>>, vector<1x1x8xf32>
    %88 = vector.shape_cast %87 : vector<1x1x8xf32> to vector<1x8xf32>
    %89 = vector.shape_cast %88 : vector<1x8xf32> to vector<1x1x8xf32>
    %90 = vector.broadcast %89 : vector<1x1x8xf32> to vector<4x8x8xf32>
    %91 = arith.addf %86, %90 : vector<4x8x8xf32>
    %cst_38 = arith.constant dense<0xFF800000> : vector<4x8xf32>
    %92 = vector.multi_reduction <maximumf>, %91, %cst_38 [2] : vector<4x8x8xf32> to vector<4x8xf32>
    %93 = vector.shape_cast %92 : vector<4x8xf32> to vector<4x8x1xf32>
    %94 = vector.broadcast %93 : vector<4x8x1xf32> to vector<4x8x8xf32>
    %95 = arith.subf %91, %94 : vector<4x8x8xf32>
    %96 = math.exp %95 : vector<4x8x8xf32>
    %cst_39 = arith.constant dense<0.000000e+00> : vector<4x8xf32>
    %97 = vector.multi_reduction <add>, %96, %cst_39 [2] : vector<4x8x8xf32> to vector<4x8xf32>
    %98 = vector.shape_cast %97 : vector<4x8xf32> to vector<4x8x1xf32>
    %99 = tpu.reciprocal %98 {approx = true} : vector<4x8x1xf32> -> vector<4x8x1xf32>
    %100 = vector.broadcast %99 : vector<4x8x1xf32> to vector<4x8x8xf32>
    %101 = arith.mulf %96, %100 : vector<4x8x8xf32>
    %102 = arith.truncf %101 : vector<4x8x8xf32> to vector<4x8x8xbf16>
    %103 = vector.extract_strided_slice %55 {offsets = [1, 0, 0, 0], sizes = [1, 8, 4, 8], strides = [1, 1, 1, 1]} : vector<2x8x4x8xbf16> to vector<1x8x4x8xbf16>
    %104 = vector.shape_cast %103 : vector<1x8x4x8xbf16> to vector<8x4x8xbf16>
    "tpu.trace_start"() <{level = 10 : i32, message = "hqk,khd->qhd"}> : () -> ()
    %cst_40 = arith.constant dense<0.000000e+00> : vector<4x8x8xf32>
    %105 = tpu.matmul %104, %102, %cst_40 {dimension_numbers = #tpu.dot_dimension_numbers<[0], [2], [2], [1], [0, 1, 0, 2, 1, 1], [1], [0]>} : vector<8x4x8xbf16>, vector<4x8x8xbf16>, vector<4x8x8xf32> -> vector<4x8x8xf32>
    %106 = tpu.transpose %105, [2, 0, 1] : vector<4x8x8xf32> -> vector<8x4x8xf32>
    "tpu.trace_stop"() : () -> ()
    %107 = vector.shape_cast %106 : vector<8x4x8xf32> to vector<8x32xf32>
    %108 = vector.shape_cast %81 : vector<8x32xf32> to vector<1x8x32xf32>
    %109 = vector.shape_cast %107 : vector<8x32xf32> to vector<1x8x32xf32>
    %110 = tpu.concatenate %108, %109 in 0 : vector<1x8x32xf32>, vector<1x8x32xf32> -> vector<2x8x32xf32>
    %111 = vector.shape_cast %110 : vector<2x8x32xf32> to vector<16x32xf32>
    %112 = arith.truncf %111 : vector<16x32xf32> to vector<16x32xbf16>
    %c0_41 = arith.constant 0 : index
    %c0_42 = arith.constant 0 : index
    %c0_43 = arith.constant 0 : index
    %113 = vector.load %arg5[%c0_41, %c0_42, %c0_43] : memref<1x32x32xbf16, #tpu.memory_space<vmem>>, vector<1x32x32xbf16>
    %114 = vector.shape_cast %113 : vector<1x32x32xbf16> to vector<32x32xbf16>
    %cst_44 = arith.constant dense<0.000000e+00> : vector<16x32xf32>
    %115 = tpu.matmul %112, %114, %cst_44 {dimension_numbers = #tpu.dot_dimension_numbers<[1], [0], [0], [1], [0, 0, 1, 1], [], []>} : vector<16x32xbf16>, vector<32x32xbf16>, vector<16x32xf32> -> vector<16x32xf32>
    %116 = vector.broadcast %9 : vector<1x32xf32> to vector<16x32xf32>
    %117 = arith.addf %115, %116 : vector<16x32xf32>
    %118 = vector.shape_cast %117 : vector<16x32xf32> to vector<2x8x32xf32>
    %119 = arith.addf %3, %118 : vector<2x8x32xf32>
    %cst_45 = arith.constant dense<0.000000e+00> : vector<2x8xf32>
    %120 = vector.multi_reduction <add>, %119, %cst_45 [2] : vector<2x8x32xf32> to vector<2x8xf32>
    %121 = vector.shape_cast %120 : vector<2x8xf32> to vector<2x8x1xf32>
    %cst_46 = arith.constant 3.200000e+01 : f32
    %122 = vector.broadcast %cst_46 : f32 to vector<2x8x1xf32>
    %123 = arith.divf %121, %122 : vector<2x8x1xf32>
    %124 = vector.broadcast %123 : vector<2x8x1xf32> to vector<2x8x32xf32>
    %125 = arith.subf %119, %124 : vector<2x8x32xf32>
    %126 = arith.mulf %125, %125 : vector<2x8x32xf32>
    %cst_47 = arith.constant dense<0.000000e+00> : vector<2x8xf32>
    %127 = vector.multi_reduction <add>, %126, %cst_47 [2] : vector<2x8x32xf32> to vector<2x8xf32>
    %128 = vector.shape_cast %127 : vector<2x8xf32> to vector<2x8x1xf32>
    %cst_48 = arith.constant 0.0322580636 : f32
    %129 = vector.broadcast %cst_48 : f32 to vector<2x8x1xf32>
    %130 = arith.mulf %128, %129 : vector<2x8x1xf32>
    %131 = math.sqrt %130 : vector<2x8x1xf32>
    %cst_49 = arith.constant 9.99999997E-7 : f32
    %132 = vector.broadcast %cst_49 : f32 to vector<2x8x1xf32>
    %133 = arith.addf %131, %132 : vector<2x8x1xf32>
    %134 = vector.broadcast %133 : vector<2x8x1xf32> to vector<2x8x32xf32>
    %135 = arith.divf %125, %134 : vector<2x8x32xf32>
    %136 = vector.shape_cast %11 : vector<1x32xf32> to vector<1x1x32xf32>
    %137 = vector.broadcast %136 : vector<1x1x32xf32> to vector<2x8x32xf32>
    %138 = arith.mulf %137, %135 : vector<2x8x32xf32>
    %139 = vector.shape_cast %13 : vector<1x32xf32> to vector<1x1x32xf32>
    %140 = vector.broadcast %139 : vector<1x1x32xf32> to vector<2x8x32xf32>
    %141 = arith.addf %138, %140 : vector<2x8x32xf32>
    %142 = arith.truncf %141 : vector<2x8x32xf32> to vector<2x8x32xbf16>
    %143 = vector.shape_cast %142 : vector<2x8x32xbf16> to vector<16x32xbf16>
    %c0_50 = arith.constant 0 : index
    %c0_51 = arith.constant 0 : index
    %c0_52 = arith.constant 0 : index
    %144 = vector.load %arg6[%c0_50, %c0_51, %c0_52] : memref<1x32x64xbf16, #tpu.memory_space<vmem>>, vector<1x32x64xbf16>
    %145 = vector.shape_cast %144 : vector<1x32x64xbf16> to vector<32x64xbf16>
    %cst_53 = arith.constant dense<0.000000e+00> : vector<16x64xf32>
    %146 = tpu.matmul %143, %145, %cst_53 {dimension_numbers = #tpu.dot_dimension_numbers<[1], [0], [0], [1], [0, 0, 1, 1], [], []>} : vector<16x32xbf16>, vector<32x64xbf16>, vector<16x64xf32> -> vector<16x64xf32>
    %c0_54 = arith.constant 0 : index
    %c0_55 = arith.constant 0 : index
    %c0_56 = arith.constant 0 : index
    %147 = vector.load %arg10[%c0_54, %c0_55, %c0_56] : memref<1x1x64xf32, #tpu.memory_space<vmem>>, vector<1x1x64xf32>
    %148 = vector.shape_cast %147 : vector<1x1x64xf32> to vector<1x64xf32>
    %149 = vector.broadcast %148 : vector<1x64xf32> to vector<16x64xf32>
    %150 = arith.addf %146, %149 : vector<16x64xf32>
    %cst_57 = arith.constant 0.000000e+00 : f32
    %151 = vector.broadcast %cst_57 : f32 to vector<16x64xf32>
    %152 = arith.maximumf %150, %151 : vector<16x64xf32>
    %153 = arith.truncf %152 : vector<16x64xf32> to vector<16x64xbf16>
    %c0_58 = arith.constant 0 : index
    %c0_59 = arith.constant 0 : index
    %c0_60 = arith.constant 0 : index
    %154 = vector.load %arg7[%c0_58, %c0_59, %c0_60] : memref<1x64x32xbf16, #tpu.memory_space<vmem>>, vector<1x64x32xbf16>
    %155 = vector.shape_cast %154 : vector<1x64x32xbf16> to vector<64x32xbf16>
    %cst_61 = arith.constant dense<0.000000e+00> : vector<16x32xf32>
    %156 = tpu.matmul %153, %155, %cst_61 {dimension_numbers = #tpu.dot_dimension_numbers<[1], [0], [0], [1], [0, 0, 1, 1], [], []>} : vector<16x64xbf16>, vector<64x32xbf16>, vector<16x32xf32> -> vector<16x32xf32>
    %157 = vector.broadcast %15 : vector<1x32xf32> to vector<16x32xf32>
    %158 = arith.addf %156, %157 : vector<16x32xf32>
    %159 = vector.shape_cast %158 : vector<16x32xf32> to vector<2x8x32xf32>
    %160 = arith.addf %119, %159 : vector<2x8x32xf32>
    %c0_62 = arith.constant 0 : index
    %c0_63 = arith.constant 0 : index
    %c0_64 = arith.constant 0 : index
    %161 = vector.load %arg12[%c0_62, %c0_63, %c0_64] : memref<2x8x32xf32, #tpu.memory_space<vmem>>, vector<2x8x32xf32>
    tpu.vector_store %arg12[%c0_62, %c0_63, %c0_64], %160 {strides = array<i32>} : memref<2x8x32xf32, #tpu.memory_space<vmem>>, vector<2x8x32xf32>,
    %c1_i32 = arith.constant 1 : i32
    %162 = arith.cmpi eq, %arg1, %c1_i32 : i32
    %163 = arith.extui %162 : i1 to i32
    %c0_i32_65 = arith.constant 0 : i32
    %164 = arith.cmpi ne, %163, %c0_i32_65 : i32
    scf.if %164 {
      %c0_66 = arith.constant 0 : index
      %c0_67 = arith.constant 0 : index
      %165 = vector.load %arg11[%c0_66, %c0_67] : memref<2x32xf32, #tpu.memory_space<vmem>>, vector<1x32xf32>
      %c1_68 = arith.constant 1 : index
      %c0_69 = arith.constant 0 : index
      %166 = vector.load %arg11[%c1_68, %c0_69] : memref<2x32xf32, #tpu.memory_space<vmem>>, vector<1x32xf32>
      %cst_70 = arith.constant dense<0.000000e+00> : vector<2x8xf32>
      %167 = vector.multi_reduction <add>, %160, %cst_70 [2] : vector<2x8x32xf32> to vector<2x8xf32>
      %168 = vector.shape_cast %167 : vector<2x8xf32> to vector<2x8x1xf32>
      %cst_71 = arith.constant 3.200000e+01 : f32
      %169 = vector.broadcast %cst_71 : f32 to vector<2x8x1xf32>
      %170 = arith.divf %168, %169 : vector<2x8x1xf32>
      %171 = vector.broadcast %170 : vector<2x8x1xf32> to vector<2x8x32xf32>
      %172 = arith.subf %160, %171 : vector<2x8x32xf32>
      %173 = arith.mulf %172, %172 : vector<2x8x32xf32>
      %cst_72 = arith.constant dense<0.000000e+00> : vector<2x8xf32>
      %174 = vector.multi_reduction <add>, %173, %cst_72 [2] : vector<2x8x32xf32> to vector<2x8xf32>
      %175 = vector.shape_cast %174 : vector<2x8xf32> to vector<2x8x1xf32>
      %cst_73 = arith.constant 0.0322580636 : f32
      %176 = vector.broadcast %cst_73 : f32 to vector<2x8x1xf32>
      %177 = arith.mulf %175, %176 : vector<2x8x1xf32>
      %178 = math.sqrt %177 : vector<2x8x1xf32>
      %cst_74 = arith.constant 9.99999997E-7 : f32
      %179 = vector.broadcast %cst_74 : f32 to vector<2x8x1xf32>
      %180 = arith.addf %178, %179 : vector<2x8x1xf32>
      %181 = vector.broadcast %180 : vector<2x8x1xf32> to vector<2x8x32xf32>
      %182 = arith.divf %172, %181 : vector<2x8x32xf32>
      %183 = vector.shape_cast %165 : vector<1x32xf32> to vector<1x1x32xf32>
      %184 = vector.broadcast %183 : vector<1x1x32xf32> to vector<2x8x32xf32>
      %185 = arith.mulf %184, %182 : vector<2x8x32xf32>
      %186 = vector.shape_cast %166 : vector<1x32xf32> to vector<1x1x32xf32>
      %187 = vector.broadcast %186 : vector<1x1x32xf32> to vector<2x8x32xf32>
      %188 = arith.addf %185, %187 : vector<2x8x32xf32>
      %c0_75 = arith.constant 0 : index
      %c0_76 = arith.constant 0 : index
      %c0_77 = arith.constant 0 : index
      %189 = vector.load %arg12[%c0_75, %c0_76, %c0_77] : memref<2x8x32xf32, #tpu.memory_space<vmem>>, vector<2x8x32xf32>
      tpu.vector_store %arg12[%c0_75, %c0_76, %c0_77], %188 {strides = array<i32>} : memref<2x8x32xf32, #tpu.memory_space<vmem>>, vector<2x8x32xf32>,
    } else {
    }
    return
  }
  func.func @transform_0(%arg0: i32, %arg1: i32) -> (i32, i32, i32) {
    %c0_i32 = arith.constant 0 : i32
    %c0_i32_0 = arith.constant 0 : i32
    %c0_i32_1 = arith.constant 0 : i32
    return %arg0, %c0_i32, %c0_i32_0 : i32, i32, i32
  }
  func.func @transform_1(%arg0: i32, %arg1: i32) -> (i32, i32, i32) {
    %c0_i32 = arith.constant 0 : i32
    %c0_i32_0 = arith.constant 0 : i32
    %c0_i32_1 = arith.constant 0 : i32
    return %arg0, %c0_i32, %c0_i32_0 : i32, i32, i32
  }
  func.func @transform_2(%arg0: i32, %arg1: i32) -> (i32, i32, i32) {
    %c0_i32 = arith.constant 0 : i32
    %c0_i32_0 = arith.constant 0 : i32
    %c0_i32_1 = arith.constant 0 : i32
    return %arg1, %c0_i32, %c0_i32_0 : i32, i32, i32
  }
  func.func @transform_3(%arg0: i32, %arg1: i32) -> (i32, i32, i32) {
    %c0_i32 = arith.constant 0 : i32
    %c0_i32_0 = arith.constant 0 : i32
    %c0_i32_1 = arith.constant 0 : i32
    return %arg1, %c0_i32, %c0_i32_0 : i32, i32, i32
  }
  func.func @transform_4(%arg0: i32, %arg1: i32) -> (i32, i32, i32) {
    %c0_i32 = arith.constant 0 : i32
    %c0_i32_0 = arith.constant 0 : i32
    %c0_i32_1 = arith.constant 0 : i32
    return %arg1, %c0_i32, %c0_i32_0 : i32, i32, i32
  }
  func.func @transform_5(%arg0: i32, %arg1: i32) -> (i32, i32, i32) {
    %c0_i32 = arith.constant 0 : i32
    %c0_i32_0 = arith.constant 0 : i32
    %c0_i32_1 = arith.constant 0 : i32
    return %arg1, %c0_i32, %c0_i32_0 : i32, i32, i32
  }
  func.func @transform_6(%arg0: i32, %arg1: i32) -> (i32, i32, i32) {
    %c0_i32 = arith.constant 0 : i32
    %c0_i32_0 = arith.constant 0 : i32
    %c0_i32_1 = arith.constant 0 : i32
    return %arg1, %c0_i32, %c0_i32_0 : i32, i32, i32
  }
  func.func @transform_7(%arg0: i32, %arg1: i32) -> (i32, i32, i32) {
    %c0_i32 = arith.constant 0 : i32
    %c0_i32_0 = arith.constant 0 : i32
    %c0_i32_1 = arith.constant 0 : i32
    return %arg1, %c0_i32, %c0_i32_0 : i32, i32, i32
  }
  func.func @transform_8(%arg0: i32, %arg1: i32) -> (i32, i32, i32) {
    %c0_i32 = arith.constant 0 : i32
    %c0_i32_0 = arith.constant 0 : i32
    %c0_i32_1 = arith.constant 0 : i32
    return %arg1, %c0_i32, %c0_i32_0 : i32, i32, i32
  }
  func.func @transform_9(%arg0: i32, %arg1: i32) -> (i32, i32) {
    %c0_i32 = arith.constant 0 : i32
    %c0_i32_0 = arith.constant 0 : i32
    %c0_i32_1 = arith.constant 0 : i32
    return %c0_i32, %c0_i32_0 : i32, i32
  }
  func.func @transform_10(%arg0: i32, %arg1: i32) -> (i32, i32, i32) {
    %c0_i32 = arith.constant 0 : i32
    %c0_i32_0 = arith.constant 0 : i32
    %c0_i32_1 = arith.constant 0 : i32
    return %arg0, %c0_i32, %c0_i32_0 : i32, i32, i32
  }
}

</mosaic_0001>

<bundles_post_ra>
// kernel: tpu_custom_call.1
= control target key start
LH: loop header
LB: loop body
LE: loop exit
PB: predicated region body
PF: predicated region fallthrough
CT: control target
= control target key end

     0   :  { %s6248_s0 = inlined_call_operand.vmem [shape: f32[4,8,32], index: 0, kind: input, shape index: {}]   ;;  %s6249_s1 = inlined_call_operand.hbm [shape: f32[4,1,8], index: 1, kind: input, shape index: {}]   ;;  %s6250_s2 = inlined_call_operand.vmem [shape: bf16[2,32,96], index: 2, kind: input, shape index: {}]   ;;  %s6251_s3 = inlined_call_operand.vmem [shape: bf16[2,32,32], index: 3, kind: input, shape index: {}]   ;;  %s6252_s4 = inlined_call_operand.hbm [shape: bf16[2,32,64], index: 4, kind: input, shape index: {}]   ;;  %s6253_s5 = inlined_call_operand.vmem [shape: bf16[2,64,32], index: 5, kind: input, shape index: {}]   ;;  %s6254_s6 = inlined_call_operand.vmem [shape: f32[2,6,32], index: 6, kind: input, shape index: {}]   ;;  %s6255_s7 = inlined_call_operand.hbm [shape: f32[2,1,96], index: 7, kind: input, shape index: {}]   ;;  %s6256_s8 = inlined_call_operand.vmem [shape: f32[2,1,64], index: 8, kind: input, shape index: {}]   ;;  %s6257_s9 = inlined_call_operand.hbm [shape: f32[2,32], index: 9, kind: input, shape index: {}]   ;;  %s6258_s10 = inlined_call_operand.hbm [shape: f32[4,8,32], index: 10, kind: output, shape index: {}]  }
   0x1   :  { %6274 = sst [smem:[#allocation29_spill]] %s6248_s0 }
   0x2   :  { %6275 = sst [smem:[#allocation30_spill]] %s6249_s1 }
   0x3   :  { %6276 = sst [smem:[#allocation31_spill]] %s6250_s2 }
   0x4   :  { %6277 = sst [smem:[#allocation32_spill]] %s6251_s3 }
   0x5   :  { %6278 = sst [smem:[#allocation33_spill]] %s6252_s4 }
   0x6   :  { %6279 = sst [smem:[#allocation34_spill]] %s6253_s5 }
   0x7   :  { %6280 = sst [smem:[#allocation35_spill]] %s6254_s6 }
   0x8   :  { %6281 = sst [smem:[#allocation36_spill]] %s6255_s7 }
   0x9   :  { %6282 = sst [smem:[#allocation37_spill]] %s6256_s8 }
   0xa   :  { %6283 = sst [smem:[#allocation38_spill]] %s6257_s9 }
   0xb   :  { %6284 = sst [smem:[#allocation39_spill]] %s6258_s10 }
   0xc   :  { %15 = vsyncpa [#allocation3], 0 }
   0xd   :  { %17 = vsyncpa [#allocation3 + $0x1], 0 }
   0xe   :  { %18 = vsyncpa [#allocation6], 0 }
   0xf   :  { %20 = vsyncpa [#allocation6 + $0x1], 0 }
  0x10   :  { %21 = vsyncpa [#allocation9], 0 }
  0x11   :  { %22 = vsyncpa [#allocation4], 0 }
  0x12   :  { %24 = vsyncpa [#allocation4 + $0x1], 0  ;;  %s5175_s13 = smov 0   ;;  %s5177_s14 = smov 0  }
  0x13   :  { %s5179_s15 = smov 0   ;;  %s5181_s16 = smov 0  }
  0x14   :  { %s5183_s17 = smov 0   ;;  %s5185_s18 = smov 0  }
  0x15   :  { %s5187_s19 = smov 0   ;;  %s5189_s20 = smov 0  }
  0x16   :  { %s5191_s21 = smov 0   ;;  %s5193_s22 = smov 0  }
  0x17   :  { %s5195_s23 = smov 0  }
  0x18 LB: > { %6285 = sst [smem:[#allocation15_spill]] %s5069_s15  ;;  %s39_s24 = sadd.s32 1, %s5093_s21  ;;  %s5101_s23 = sphi %s5195_s23, %s30_s23   ;;  %s5097_s22 = sphi %s5193_s22, %s6339_s22   ;;  %s5093_s21 = sphi %s5191_s21, %s6338_s21   ;;  %s5089_s20 = sphi %s5189_s20, %s6337_s20   ;;  %s5085_s19 = sphi %s5187_s19, %s6336_s19   ;;  %s5081_s18 = sphi %s5185_s18, %s6335_s18   ;;  %s5077_s17 = sphi %s5183_s17, %s6334_s17   ;;  %s5073_s16 = sphi %s5181_s16, %s6333_s16   ;;  %s5069_s15 = sphi %s5179_s15, %s6332_s15   ;;  %s5065_s14 = sphi %s5177_s14, %s6341_s14   ;;  %s5061_s13 = sphi %s5175_s13, %s6340_s13  }
  0x19   : > { %6286 = sst [smem:[#allocation16_spill]] %s5073_s16  ;;  %p83_p0 = scmp.eq.s32.totalorder %s5101_s23, 0 }
  0x1a   : > { %6287 = sst [smem:[#allocation17_spill]] %s5077_s17  ;;  %p5232_p1 = scmp.ge.s32.totalorder %s39_s24, 2 }
  0x1b   : > { %6288 = sst [smem:[#allocation18_spill]] %s5081_s18  ;;  %s153_s26 = sadd.s32 1, %s5069_s15 }
  0x1c   : > { %6289 = sst [smem:[#allocation19_spill]] %s5085_s19  ;;  %p160_p2 = scmp.ne.s32.totalorder %s5069_s15, %s5065_s14 }
  0x1d   : > { %6290 = sst [smem:[#allocation20_spill]] %s5089_s20  ;;  %s6343_s24 = smov (%p5232_p1, %s39_s24), 0 }
  0x1e   : > { %6291 = sst [smem:[#allocation21_spill]] %s5093_s21  ;;  %p5245_p3 = por %p160_p2, %p83_p0 }
  0x1f   : > { %6292 = sst [smem:[#allocation22_spill]] %s5097_s22  ;;  %p6261_p4 = scmp.lt.s32.totalorder %s5101_s23, 4 }
  0x20   : > { %6294 = sst [smem:[#allocation23_spill]] %s6343_s24  ;;  %s150_s28 = ssub.s32 %s5093_s21, %s6343_s24 }
  0x21   : > { %s399_s29 = sand.u32 1, %s5101_s23   ;;  %p151_p5 = scmp.eq.s32.totalorder %s150_s28, 0 }
  0x22   : > { %s6262_s30 = sand.u32 1, %s5069_s15   ;;  %s4429_s11 = sshll.u32 %s5093_s21, 4 }
  0x23   : > { %s5256_s12 = scalar_select %p151_p5, %s5069_s15, %s153_s26  }
  0x24   : > { %s4344_s10 = sshll.u32 %s6262_s30, 4  ;;  %s6297_s4 = sld [smem:[#allocation33_spill]] }
  0x25   : > { %6296 = sst [smem:[#allocation24_spill]] %s5256_s12  ;;  %s403_s24 = scalar_lea.vmem [#allocation5], %s4344_s10 }
  0x26   : > { %s411_s28 = sshll.u32 %s403_s24, 4  ;;  %p5267_p6 = pnand %p6261_p4, %p5245_p3  ;;  %s412_s28 = int_to_ptr.vmem [resolvable:$true] %s411_s28 }
  0x27   : > { %s5271_s26 = scalar_lea.sflag [#allocation6], %s399_s29  ;;  %s5103_s6 = smov 64  }
  0x28   : > { %s5104_s8 = smov 4   ;;  %s4338_s10 = sadd.s32 4294967294, %s5101_s23  }
  0x29   : > { %p88_p7 = scmp.ne.s32.totalorder %s5077_s17, %s5073_s16  ;;  %p166_p9 = scmp.ne.s32.totalorder %s5065_s14, %s5061_s13 }
  0x2a   : > { %s408_s5 = scalar_lea.hbm %s6297_s4, %s4429_s11  ;;  %p321_p11 = scmp.eq.s32.totalorder %s4338_s10, 3 }
  0x2b   : > { %s409_s3 = sshll.u32 %s408_s5, 4  ;;  %s5277_s5 = sadd.s32 4294967295, %s5101_s23   ;;  %s410_s3 = int_to_ptr.hbm [resolvable:$true] %s409_s3 }
  0x2c   : > { %4466 = dma.hbm_to_vmem [thread:$0]  (!%p5267_p6), %s410_s3, 256, %s412_s28, %s5271_s26, %s5103_s6, %s5103_s6, %s5104_s8  }
  0x2d   : > { %p89_p8 = scmp.eq.s32.totalorder %s5277_s5, 0  ;;  %p315_p10 = scmp.eq.s32.totalorder %s5277_s5, 3 }
  0x2e   : > { %p5298_p2 = por %p321_p11, %p88_p7  ;;  %p4339_p3 = scmp.ge.s32.totalorder %s5101_s23, 1 }
  0x2f   : > { %p5288_p12 = por %p89_p8, %p88_p7  ;;  %p5294_p13 = por %p166_p9, %p89_p8 }
  0x30   : > { %s6301_s13 = scalar_select %p5298_p2, 1, 0 }
  0x31   : > { %p328_p5 = scmp.lt.s32.totalorder %s5101_s23, 5  ;;  %s6303_s9 = sld [smem:[#allocation38_spill]] }
  0x32   : > { %6302 = sst [smem:[#allocation25_spill]] %s6301_s13  ;;  %s5105_s6 = smov [#allocation8]  }
  0x33   : > { %p5307_p4 = pnand %p4339_p3, %p328_p5  ;;  %s342_s8 = sshll.u32 %s5105_s6, 4  ;;  %s343_s8 = int_to_ptr.vmem [resolvable:$true] %s342_s8 }
  0x34   : > { %s42_s10 = sadd.s32 1, %s5097_s22  ;;  %s75_s30 = sadd.s32 1, %s5081_s18 }
  0x35   : > { %p4456_p7 = pneg %p5307_p4  ;;  %p82_p11 = scmp.ne.s32.totalorder %s5081_s18, %s5077_s17 }
  0x36   : > { %s6345_s10 = smov (!%p5232_p1, %s42_s10), %s5097_s22  ;;  %s362_s6 = sand.u32 1, %s5081_s18  }
  0x37   : > { %s340_s11 = sshll.u32 %s6303_s9, 4  ;;  %p4457_p9 = pnand %p4456_p7, %p89_p8  ;;  %s341_s11 = int_to_ptr.hbm [resolvable:$true] %s340_s11 }
  0x38   : > { %p5324_p3 = por %p83_p0, %p82_p11  ;;  %p5330_p5 = por %p315_p10, %p82_p11 }
  0x39   : > { %4459 = dma.hbm_to_vmem [thread:$0]  (!%p4457_p9), %s341_s11, 32, %s343_s8, [#allocation9]  }
  0x3a   : > { %s6306_s29 = scalar_select %p5330_p5, 1, 0 }
  0x3b   : > { %p44_p7 = scmp.ge.s32.totalorder %s6345_s10, 2  ;;  %s4342_s4 = sshll.u32 %s362_s6, 1 }
  0x3c   : > { %6307 = sst [smem:[#allocation26_spill]] %s6306_s29  ;;  %s4343_s25 = sshll.u32 %s5097_s22, 1 }
  0x3d   : > { %s6347_s10 = smov (%p44_p7, %s6345_s10), 0  ;;  %s6309_s1 = sld [smem:[#allocation30_spill]] }
  0x3e   : > { %6308 = sst [smem:[#allocation27_spill]] %s6347_s10  ;;  %s72_s11 = ssub.s32 %s5097_s22, %s6347_s10 }
  0x3f   : > { %p73_p0 = scmp.eq.s32.totalorder %s72_s11, 0  ;;  %s366_s16 = scalar_lea.vmem [#allocation2], %s4342_s4 }
  0x40   : > { %s373_s29 = sshll.u32 %s366_s16, 4  ;;  %p6311_p1 = scmp.lt.s32.totalorder %s5101_s23, 4  ;;  %s374_s29 = int_to_ptr.vmem [resolvable:$true] %s373_s29 }
  0x41   : > { %s5344_s0 = scalar_select %p73_p0, %s5081_s18, %s75_s30  }
  0x42   : > { %p4461_p10 = pnand %p6311_p1, %p5324_p3  ;;  %s363_s19 = scalar_lea.sflag [#allocation3], %s362_s6 }
  0x43   : > { %s370_s12 = scalar_lea.hbm %s6309_s1, %s4343_s25  ;;  %6310 = sst [smem:[#allocation28_spill]] %s5344_s0 }
  0x44   : > { %s371_s13 = sshll.u32 %s370_s12, 4  ;;  %s5106_s20 = smov 16   ;;  %s372_s13 = int_to_ptr.hbm [resolvable:$true] %s371_s13 }
  0x45   : > { %s5107_s10 = smov 1   ;;  %s6312_s7 = sld [smem:[#allocation36_spill]] }
  0x46   : > { %4463 = dma.hbm_to_vmem [thread:$0]  (!%p4461_p10), %s372_s13, 32, %s374_s29, %s363_s19, %s5106_s20, %s5106_s20, %s5107_s10  }
  0x47   : > { %s6313_s12 = sand.u32 1, %s5069_s15   ;;  %s5362_s4 = sand.u32 (!%p5307_p4), 1, %s5077_s17  }
  0x48   : > { %s439_s11 = scalar_lea.vmem [#allocation7], %s6313_s12  ;;  %s4348_s16 = sshll.u32 (!%p5307_p4), %s5362_s4, 1 }
  0x49   : > { %s446_s8 = sshll.u32 %s439_s11, 4  ;;  %461 = sbr.rel (%p5307_p4) target bundleno = 3975 (0xf87), region = 60  ;;  %s447_s8 = int_to_ptr.vmem [resolvable:$true] %s446_s8 }
  0x4a   : > { %s464_s19 = scalar_lea.sflag (!%p5307_p4), [#allocation3], %s5362_s4  ;;  %s5366_s20 = scalar_lea.vmem (!%p5307_p4), [#allocation2], %s4348_s16 }
  0x4b   : > { %s442_s25 = scalar_lea.hbm %s6312_s7, %s5093_s21 }
  0x4c   : > { %s444_s1 = sshll.u32 %s442_s25, 4  ;;  %s445_s1 = int_to_ptr.hbm [resolvable:$true] %s444_s1 }
  0x4d   : > { %4469 = dma.hbm_to_vmem [thread:$0]  (!%p5267_p6), %s445_s1, 16, %s447_s8, %s5271_s26  }
  0x4e   : > { %5044 = dma.done.wait (%p5288_p12), %s464_s19, 32  }
  0x4f   : > { %5046 = vsyncadd (%p5288_p12), %s464_s19, 4294967264  ;;  %s473_s1 = sand.u32 1, %s5277_s5   ;;  %s475_s2 = sand.u32 1, %s5065_s14  }
  0x50   : > { %s5374_s22 = sshll.u32 %s475_s2, 4  ;;  %s474_s30 = scalar_lea.sflag [#allocation6], %s473_s1 }
  0x51   : > { %5048 = dma.done.wait (%p5294_p13), %s474_s30, 272  }
  0x52   : > { %5050 = vsyncadd (%p5294_p13), %s474_s30, 4294967024  ;;  %s5381_s13 = scalar_lea.vmem [#allocation7], %s475_s2 }
  0x53   : > { %5052 = dma.done.wait (%p89_p8), [#allocation9], 32  }
  0x54   : > { %5054 = vsyncadd (%p89_p8), [#allocation9], 4294967264  ;;  %s6314_s3 = sld [smem:[#allocation20_spill]]  ;;  %s4351_s10 = sshll.u32 %s5362_s4, 4 }
  0x55   : > { %s6315_s28 = sld [smem:[#allocation19_spill]]  ;;  %s5423_s15 = scalar_lea.vmem [#allocation10], %s4351_s10 }
  0x56   : > { %s6316_s5 = sld [smem:[#allocation29_spill]] }
  0x57   : > { %s6317_s16 = sld [smem:[#allocation31_spill]] }
  0x58   : > { %s6318_s30 = sld [smem:[#allocation32_spill]] }
  0x59   : > { %s6320_s9 = sld [smem:[#allocation35_spill]] }
  0x5a   : > { %s4352_s27 = sshll.u32 %s6314_s3, 1 }
  0x5b   : > { %p566_p4 = scmp.lt.s32.totalorder %s4352_s27, 3  ;;  %p572_p6 = scmp.lt.s32.totalorder %s6315_s28, 1 }
  0x5c   : > { %p4361_p8 = scmp.ne.s32.totalorder %s6315_s28, 0 }
  0x5d   : > { %s6349_s27 = smov (!%p566_p4, %s4352_s27), 3 }
  0x5e   : > { %s5391_s29 = scalar_select %p572_p6, %s6315_s28, 1 }
  0x5f   : > { %s4353_s24 = sshll.u32 %s6349_s27, 3  ;;  %s6319_s27 = sld [smem:[#allocation34_spill]] }
  0x60   : > { %s569_s25 = scalar_lea.vmem %s6316_s5, %s4353_s24  ;;  %s4430_s12 = sshll.u32 %s5391_s29, 4 }
  0x61   : > { %s5400_s19 = scalar_lea.vmem %s6317_s16, %s4430_s12  ;;  %s5405_s3 = scalar_lea.vmem %s6318_s30, %s4430_s12 }
  0x62   : > { %s4432_s26 = sshll.u32 %s5391_s29, 5  ;;  %s4360_s7 = sshll.u32 %s5391_s29, 3 }
  0x63   : > { %s5417_s5 = scalar_lea.vmem %s6320_s9, %s4360_s7  ;;  %s6321_s16 = sld [smem:[#allocation37_spill]] }
  0x65   : > { %s5412_s18 = scalar_lea.vmem %s6319_s27, %s4432_s26  ;;  %599 = sbr.rel (%p4361_p8) target bundleno = 109 (0x6d), region = 80 }
  0x69   : > { %s593_s17 = scalar_lea.vmem %s6321_s16, %s5391_s29 }
  0x6a   : > { %v600_v0 = vld [vmem:[%s569_s25] sm:$0xff]  ;;  %vm602_vm0 = vcmask 261120   ;;  %v601_v1 = vld [vmem:[%s569_s25 + $0x8] sm:$0xff] }
  0x6b   : > { %603 = vst.msk [vmem:[%s5423_s15] sm:$0xff] %vm602_vm0, %v600_v0 }
  0x6c   : > { %604 = vst.msk [vmem:[%s5423_s15 + $0x8] sm:$0xff] %vm602_vm0, %v601_v1 }
  0x6d PF: > { %vm613_vm1 = vcmask 261120   ;;  %v5108_v6 = vmov 32.0   ;;  %v4434_v23 = vld [vmem:[%s5400_s19 + $0x8] sm:$0xff]  ;;  %v4433_v26 = vld [vmem:[%s5400_s19] sm:$0xff]  ;;  %s5109_s0 = smov 112   ;;  %s5110_s7 = smov 120  }
  0x6e   : > { %4789 = vrcp.f32 %v5108_v6  ;;  %739 = vmatpush.bf16.msra.mxu0 %v4434_v23  ;;  %v4779_v1 = vld [vmem:[%s5417_s5] ss:$0 sm:$0xff]  ;;  %s5111_s21 = smov 104   ;;  %s5112_s26 = smov 96   ;;  %vm768_vm15 = vcmask 1047556   ;;  %vm1657_vm0 = vcmask 1043456  }
  0x6f   : > { %v4781_v23 = vld [vmem:[%s5381_s13] ss:$0 sm:$0xff]  ;;  %s5115_s13 = smov 64   ;;  %s5117_s28 = smov 16  }
  0x70   : > { %s5118_s10 = smov 8   ;;  %s6322_s25 = scalar_lea.vmem [#allocation5], %s5374_s22 }
  0x71   : > { %s6323_s12 = smov %s6322_s25 }
  0x72   : > { %v605_v2 = vld [vmem:[%s5423_s15] sm:$0xff]  ;;  %740 = vmatpush.bf16.msra.mxu0 %v4433_v26 }
  0x73   : > { %v614_v3 = vsel %vm613_vm1, %v605_v2, 0.0  ;;  %v606_v4 = vld [vmem:[%s5423_s15 + $0x8] sm:$0xff] }
  0x74   : > { %615 = vadd.xlane.f32.xlu0 %v614_v3  ;;  %v617_v5 = vsel %vm613_vm1, %v606_v4, 0.0  ;;  %v4790_v7 = vpop.eup %4789 }
  0x75   : > { %v621_v8 = vmul.f32 32.0, %v4790_v7  ;;  %vm625_vm2 = vweird.f32 %v4790_v7 }
  0x77   : > { %v622_v9 = vsub.f32 1.0, %v621_v8 }
  0x79   : > { %v623_v10 = vmul.f32 %v4790_v7, %v622_v9 }
  0x7b   : > { %v624_v11 = vadd.f32 %v4790_v7, %v623_v10 }
  0x7c   : > { %618 = vadd.xlane.f32.xlu0 %v617_v5 }
  0x7d   : > { %v5432_v12 = vsel %vm625_vm2, %v4790_v7, %v624_v11  ;;  %v4780_v7 = vld [vmem:[%s5417_s5 + $0x1] ss:$0 sm:$0xff]  ;;  %vm1653_vm2 = vcmask 64512  }
  0xe7   : > { %v616_v13 = vpop.xlane.xlu0 %615 }
  0xe8   : > { %v627_v14 = vmul.f32 %v5432_v12, %v616_v13 }
  0xea   : > { %v5435_v15 = vsub.f32 %v605_v2, %v627_v14 }
  0xec   : > { %v631_v16 = vmul.f32 %v5435_v15, %v5435_v15 }
  0xee   : > { %v633_v17 = vsel %vm613_vm1, %v631_v16, 0.0 }
  0xef   : > { %634 = vadd.xlane.f32.xlu1 %v633_v17  ;;  %v619_v18 = vpop.xlane.xlu0 %618 }
  0xf0   : > { %v628_v19 = vmul.f32 %v5432_v12, %v619_v18 }
  0xf2   : > { %v5441_v20 = vsub.f32 %v606_v4, %v628_v19 }
  0xf4   : > { %v632_v21 = vmul.f32 %v5441_v20, %v5441_v20 }
  0xf6   : > { %v636_v22 = vsel %vm613_vm1, %v632_v21, 0.0 }
  0xf7   : > { %637 = vadd.xlane.f32.xlu1 %v636_v22 }
 0x162   : > { %v635_v24 = vpop.xlane.xlu1 %634 }
 0x163   : > { %v639_v25 = vmul.f32 0.032258064, %v635_v24 }
 0x165   : > { %4791 = vrsqrt.f32 %v639_v25  ;;  %vm648_vm3 = vcmp.eq.f32.partialorder %v639_v25, inf  ;;  %v651_v39 = vand.u32 2147483648, %v639_v25  ;;  %vm650_vm4 = vcmp.eq.f32.partialorder %v639_v25, 0.0 }
 0x16a   : > { %v638_v27 = vpop.xlane.xlu1 %637 }
 0x16b   : > { %v4792_v28 = vpop.eup %4791  ;;  %v640_v29 = vmul.f32 0.032258064, %v638_v27 }
 0x16c   : > { %v642_v30 = vmul.f32 %v4792_v28, %v639_v25 }
 0x16d   : > { %4793 = vrsqrt.f32 %v640_v29  ;;  %vm660_vm5 = vcmp.eq.f32.partialorder %v640_v29, inf  ;;  %v663_v47 = vand.u32 2147483648, %v640_v29  ;;  %vm662_vm6 = vcmp.eq.f32.partialorder %v640_v29, 0.0 }
 0x16e   : > { %v643_v31 = vmul.f32 %v4792_v28, %v642_v30 }
 0x170   : > { %v644_v32 = vmul.f32 0.5, %v643_v31 }
 0x172   : > { %v645_v33 = vsub.f32 1.5, %v644_v32 }
 0x173   : > { %v4794_v34 = vpop.eup %4793 }
 0x174   : > { %v646_v35 = vmul.f32 %v4792_v28, %v645_v33  ;;  %v654_v36 = vmul.f32 %v4794_v34, %v640_v29 }
 0x176   : > { %v647_v37 = vmul.f32 %v646_v35, %v639_v25  ;;  %v655_v38 = vmul.f32 %v4794_v34, %v654_v36 }
 0x178   : > { %v649_v40 = vsel %vm648_vm3, %v639_v25, %v647_v37  ;;  %v656_v41 = vmul.f32 0.5, %v655_v38  ;;  %vm3735_vm3 = vcmask 130048  }
 0x179   : > { %v652_v42 = vsel %vm650_vm4, %v651_v39, %v649_v40  ;;  %vm3737_vm4 = vcmask 195584  }
 0x17a   : > { %v657_v43 = vsub.f32 1.5, %v656_v41  ;;  %v665_v44 = vadd.f32 1e-06, %v652_v42 }
 0x17c   : > { %v658_v45 = vmul.f32 %v4794_v34, %v657_v43  ;;  %4795 = vrcp.f32 %v665_v44  ;;  %v678_v54 = vand.u32 2147483648, %v665_v44  ;;  %v676_v56 = vand.u32 2147483647, %v665_v44 }
 0x17d   : > { %vm672_vm8 = vweird.f32 %v665_v44  ;;  %v5113_v43 = vmov 1983009808  }
 0x17e   : > { %v659_v46 = vmul.f32 %v658_v45, %v640_v29  ;;  %v679_v59 = vor.u32 1.1754944e-38, %v678_v54  ;;  %vm677_vm10 = vcmp.eq.f32.partialorder %v676_v56, 8.507059e+37 }
 0x180   : > { %v661_v48 = vsel %vm660_vm5, %v640_v29, %v659_v46 }
 0x181   : > { %v664_v49 = vsel %vm662_vm6, %v663_v47, %v661_v48 }
 0x182   : > { %v4796_v50 = vpop.eup %4795  ;;  %v666_v51 = vadd.f32 1e-06, %v664_v49  ;;  %v5114_v49 = vmov 1934713408  }
 0x183   : > { %v668_v52 = vmul.f32 %v4796_v50, %v665_v44  ;;  %vm673_vm7 = vweird.f32 %v4796_v50  ;;  %v773_v44 = vunpack.c.l.s4 %v5113_v43 }
 0x184   : > { %4797 = vrcp.f32 %v666_v51  ;;  %vm674_vm9 = vmor %vm672_vm8, %vm673_vm7  ;;  %v693_v2 = vand.u32 2147483648, %v666_v51  ;;  %v691_v4 = vand.u32 2147483647, %v666_v51  ;;  %vm687_vm12 = vweird.f32 %v666_v51 }
 0x185   : > { %v669_v53 = vsub.f32 1.0, %v668_v52  ;;  %v5466_v45 = vunpack.c.0.s8 %v773_v44 }
 0x186   : > { %v694_v8 = vor.u32 1.1754944e-38, %v693_v2  ;;  %vm692_vm14 = vcmp.eq.f32.partialorder %v691_v4, 8.507059e+37 }
 0x187   : > { %v670_v55 = vmul.f32 %v4796_v50, %v669_v53 }
 0x189   : > { %v671_v57 = vadd.f32 %v4796_v50, %v670_v55 }
 0x18a   : > { %v4798_v58 = vpop.eup %4797 }
 0x18b   : > { %v675_v60 = vsel %vm674_vm9, %v4796_v50, %v671_v57  ;;  %v683_v61 = vmul.f32 %v4798_v58, %v666_v51  ;;  %vm688_vm11 = vweird.f32 %v4798_v58  ;;  %v797_v50 = vunpack.c.l.s4 %v5114_v49 }
 0x18c   : > { %v680_v62 = vsel %vm677_vm10, %v679_v59, %v675_v60  ;;  %vm689_vm13 = vmor %vm687_vm12, %vm688_vm11 }
 0x18d   : > { %v681_v63 = vmul.f32 %v680_v62, %v5435_v15  ;;  %v684_v0 = vsub.f32 1.0, %v683_v61  ;;  %v5472_v60 = vunpack.c.0.s8 %v797_v50 }
 0x18f   : > { %v685_v3 = vmul.f32 %v4798_v58, %v684_v0  ;;  %v698_v6 = vmul.f32 %v4779_v1, %v681_v63 }
 0x191   : > { %v686_v5 = vadd.f32 %v4798_v58, %v685_v3  ;;  %v701_v13 = vadd.f32 %v4780_v7, %v698_v6 }
 0x193   : > { %v690_v9 = vsel %vm689_vm13, %v4798_v58, %v686_v5  ;;  %v703_v16 = vpack.c.bf16 %v701_v13, %v701_v13 }
 0x194   : > { %v695_v10 = vsel %vm692_vm14, %v694_v8, %v690_v9 }
 0x195   : > { %v696_v11 = vmul.f32 %v695_v10, %v5441_v20  ;;  %v715_v18 = vunpack.c.l.b16 %v703_v16 }
 0x197   : > { %v699_v14 = vmul.f32 %v4779_v1, %v696_v11 }
 0x199   : > { %v702_v15 = vadd.f32 %v4780_v7, %v699_v14 }
 0x19b   : > { %v704_v17 = vpack.c.bf16 %v702_v15, %v702_v15 }
 0x19d   : > { %v716_v19 = vunpack.c.l.b16 %v704_v17 }
 0x19f   : > { %v717_v21 = vpack.c.b16 %v716_v19, %v715_v18 }
 0x1a1   : > { %4370 = vmatmul.msk.bf16.vlgmr.msra.gmra.mxu0 %vm613_vm1, %v717_v21 }
 0x21e   : > { %v742_v22 = vpop.f32.mrf.mxu0 }
 0x21f   : > { %v743_v25 = vadd.f32 %v4781_v23, %v742_v22 }
 0x221   : > { %v770_v52 = vrot.slane %v743_v25, 4 }
 0x226   : > { %v744_v24 = vpop.f32.mrf.mxu0 }
 0x227   : > { %v745_v26 = vadd.f32 %v4781_v23, %v744_v24 }
 0x229   : > { %v4595_v27 = vpack.i.bf16 %v745_v26, %v743_v25  ;;  %v826_v54 = vrot.slane %v745_v26, 4 }
 0x22b   : > { %4596 = vrot.lane.b32.xlu0 %v4595_v27, %s5109_s0  ;;  %4586 = vrot.lane.b32.xlu2 %v4595_v27, %s5110_s7 }
 0x233   : > { %4591 = vrot.lane.b32.xlu2 %v4595_v27, %s5111_s21 }
 0x285   : > { %v4587_v20 = vpop.permute.xlu2 %4586 }
 0x286   : > { %v4588_v28 = vunpack.i.l.bf16 %v4587_v20  ;;  %v4589_v30 = vunpack.i.h.bf16 %v4587_v20 }
 0x288   : > { %v5454_v29 = vpack.i.bf16 %v743_v25, %v4588_v28  ;;  %v838_v32 = vrot.slane %v4589_v30, 4  ;;  %v782_v33 = vrot.slane %v4588_v28, 4  ;;  %v5458_v36 = vpack.i.bf16 %v745_v26, %v4589_v30 }
 0x28a   : > { %4601 = vrot.lane.b32.xlu1 %v5454_v29, %s5112_s26 }
 0x28d   : > { %v4592_v31 = vpop.permute.xlu2 %4591 }
 0x28e   : > { %v4594_v34 = vunpack.i.h.bf16 %v4592_v31  ;;  %v4593_v35 = vunpack.i.l.bf16 %v4592_v31 }
 0x290   : > { %v836_v37 = vrot.slane %v4594_v34, 4  ;;  %v780_v38 = vrot.slane %v4593_v35, 4  ;;  %v783_v39 = vsel %vm768_vm15, %v4593_v35, %v782_v33  ;;  %v839_v40 = vsel %vm768_vm15, %v4594_v34, %v838_v32 }
 0x291   : > { %v791_v47 = vperm.slane %v783_v39, %v5466_v45  ;;  %v847_v48 = vperm.slane %v839_v40, %v5466_v45 }
 0x292   : > { %v781_v41 = vsel %vm768_vm15, %v780_v38, %v4588_v28  ;;  %v837_v42 = vsel %vm768_vm15, %v836_v37, %v4589_v30  ;;  %4621 = vrot.lane.b32.xlu1 %v5458_v36, %s5112_s26 }
 0x293   : > { %v787_v46 = vperm.slane %v781_v41, %v5466_v45  ;;  %v843_v53 = vperm.slane %v837_v42, %v5466_v45  ;;  %v804_v58 = vrot.slane %v791_v47, 4  ;;  %v860_v59 = vrot.slane %v847_v48, 4 }
 0x295   : > { %v792_v57 = vrot.slane %v787_v46, 4  ;;  %v848_v4 = vrot.slane %v843_v53, 4 }
 0x29d   : > { %v4597_v51 = vpop.permute.xlu0 %4596 }
 0x29e   : > { %v4599_v55 = vunpack.i.h.bf16 %v4597_v51  ;;  %v4598_v56 = vunpack.i.l.bf16 %v4597_v51 }
 0x2a0   : > { %v824_v61 = vrot.slane %v4599_v55, 4  ;;  %v827_v62 = vsel %vm768_vm15, %v4599_v55, %v826_v54  ;;  %v767_v63 = vrot.slane %v4598_v56, 4  ;;  %v771_v0 = vsel %vm768_vm15, %v4598_v56, %v770_v52 }
 0x2a1   : > { %v835_v1 = vperm.slane %v827_v62, %v5466_v45  ;;  %v779_v2 = vperm.slane %v771_v0, %v5466_v45  ;;  %v4615_v3 = vpack.i.bf16 %v4598_v56, %v4593_v35  ;;  %v5480_v7 = vpack.i.bf16 %v4599_v55, %v4594_v34 }
 0x2a2   : > { %v825_v5 = vsel %vm768_vm15, %v824_v61, %v745_v26  ;;  %v769_v6 = vsel %vm768_vm15, %v767_v63, %v743_v25 }
 0x2a3   : > { %v831_v8 = vperm.slane %v825_v5, %v5466_v45  ;;  %v862_v9 = vrot.slane %v835_v1, 4  ;;  %v775_v10 = vperm.slane %v769_v6, %v5466_v45  ;;  %v805_v11 = vsel %vm768_vm15, %v804_v58, %v779_v2  ;;  %4616 = vrot.lane.b32.xlu0 %v4615_v3, %s5115_s13  ;;  %4606 = vrot.lane.b32.xlu2 %v4615_v3, %s5112_s26 }
 0x2a4   : > { %v806_v13 = vrot.slane %v779_v2, 4  ;;  %v811_v14 = vperm.slane %v805_v11, %v5472_v60  ;;  %v861_v15 = vsel %vm768_vm15, %v860_v59, %v835_v1 }
 0x2a5   : > { %v850_v16 = vrot.slane %v831_v8, 4  ;;  %v793_v17 = vsel %vm768_vm15, %v792_v57, %v775_v10  ;;  %v794_v18 = vrot.slane %v775_v10, 4  ;;  %v849_v19 = vsel %vm768_vm15, %v848_v4, %v831_v8 }
 0x2a6   : > { %v799_v21 = vperm.slane %v793_v17, %v5472_v60  ;;  %v807_v22 = vsel %vm768_vm15, %v791_v47, %v806_v13  ;;  %v855_v23 = vperm.slane %v849_v19, %v5472_v60  ;;  %v863_v27 = vsel %vm768_vm15, %v847_v48, %v862_v9 }
 0x2a7   : > { %v795_v24 = vsel %vm768_vm15, %v787_v46, %v794_v18  ;;  %v815_v25 = vperm.slane %v807_v22, %v5472_v60  ;;  %v851_v26 = vsel %vm768_vm15, %v843_v53, %v850_v16  ;;  %v867_v28 = vperm.slane %v861_v15, %v5472_v60 }
 0x2a8   : > { %v859_v20 = vperm.slane %v851_v26, %v5472_v60  ;;  %v871_v30 = vperm.slane %v863_v27, %v5472_v60  ;;  %v872_v31 = vrot.slane %v855_v23, 4  ;;  %v820_v32 = vrot.slane %v811_v14, 4 }
 0x2a9   : > { %v822_v33 = vrot.slane %v815_v25, 4  ;;  %v884_v34 = vpack.c.bf16 %v811_v14, %v811_v14  ;;  %v886_v35 = vpack.c.bf16 %v815_v25, %v815_v25  ;;  %v876_v39 = vrot.slane %v867_v28, 4 }
 0x2aa   : > { %v873_v37 = vsel %vm768_vm15, 0.0, %v872_v31  ;;  %v874_v38 = vrot.slane %v859_v20, 4  ;;  %v878_v40 = vrot.slane %v871_v30, 4  ;;  %v888_v41 = vpack.c.bf16 %v855_v23, %v855_v23 }
 0x2ab   : > { %v889_v42 = vpack.c.bf16 %v873_v37, %v873_v37  ;;  %v892_v43 = vpack.c.bf16 %v867_v28, %v867_v28  ;;  %v894_v44 = vpack.c.bf16 %v871_v30, %v871_v30  ;;  %4611 = vrot.lane.b32.xlu2 %v5454_v29, %s5115_s13  ;;  %v877_v47 = vsel %vm768_vm15, 0.0, %v876_v39 }
 0x2ac   : > { %v875_v46 = vsel %vm768_vm15, 0.0, %v874_v38  ;;  %v879_v48 = vsel %vm768_vm15, 0.0, %v878_v40  ;;  %v890_v49 = vpack.c.bf16 %v859_v20, %v859_v20  ;;  %v893_v51 = vpack.c.bf16 %v877_v47, %v877_v47 }
 0x2ad   : > { %v891_v50 = vpack.c.bf16 %v875_v46, %v875_v46  ;;  %v895_v52 = vpack.c.bf16 %v879_v48, %v879_v48  ;;  %v1204_v53 = vrot.slane %v884_v34, 4  ;;  %v2440_v54 = vrot.slane %v892_v43, 4 }
 0x2ae   : > { %v803_v55 = vperm.slane %v795_v24, %v5472_v60  ;;  %v816_v56 = vrot.slane %v799_v21, 4  ;;  %v821_v57 = vsel %vm768_vm15, 0.0, %v820_v32  ;;  %v2446_v58 = vrot.slane %v894_v44, 4 }
 0x2af   : > { %v2460_v59 = vrot.slane %v893_v51, 4  ;;  %v823_v29 = vsel %vm768_vm15, 0.0, %v822_v33  ;;  %v880_v61 = vpack.c.bf16 %v799_v21, %v799_v21  ;;  %v885_v1 = vpack.c.bf16 %v821_v57, %v821_v57 }
 0x2b0   : > { %v817_v62 = vsel %vm768_vm15, 0.0, %v816_v56  ;;  %v818_v63 = vrot.slane %v803_v55, 4  ;;  %v882_v0 = vpack.c.bf16 %v803_v55, %v803_v55  ;;  %v887_v3 = vpack.c.bf16 %v823_v29, %v823_v29 }
 0x2b1   : > { %v881_v2 = vpack.c.bf16 %v817_v62, %v817_v62  ;;  %v1206_v4 = vsel %vm768_vm15, %v1204_v53, %v880_v61  ;;  %v1211_v5 = vrot.slane %v886_v35, 4  ;;  %v2466_v6 = vrot.slane %v895_v52, 4 }
 0x2b2   : > { %v819_v8 = vsel %vm768_vm15, 0.0, %v818_v63  ;;  %v1225_v9 = vrot.slane %v885_v1, 4  ;;  %v2441_v10 = vsel %vm768_vm15, %v2440_v54, %v888_v41  ;;  %v1231_v14 = vrot.slane %v887_v3, 4 }
 0x2b3   : > { %4626 = vrot.lane.b32.xlu2 %v5480_v7, %s5112_s26  ;;  %v883_v11 = vpack.c.bf16 %v819_v8, %v819_v8  ;;  %v1212_v13 = vsel %vm768_vm15, %v1211_v5, %v882_v0  ;;  %v2447_v17 = vsel %vm768_vm15, %v2446_v58, %v890_v49  ;;  %v2461_v18 = vsel %vm768_vm15, %v2460_v59, %v889_v42 }
 0x2b4   : > { %v1216_v15 = vperm.slane %v1212_v13, %v5466_v45  ;;  %v1226_v16 = vsel %vm768_vm15, %v1225_v9, %v881_v2  ;;  %v2451_v21 = vperm.slane %v2447_v17, %v5466_v45  ;;  %v1210_v22 = vperm.slane %v1206_v4, %v5466_v45 }
 0x2b5   : > { %v1232_v19 = vsel %vm768_vm15, %v1231_v14, %v883_v11  ;;  %v2467_v25 = vsel %vm768_vm15, %v2466_v6, %v891_v50  ;;  %v2445_v26 = vperm.slane %v2441_v10, %v5466_v45  ;;  %v1230_v30 = vperm.slane %v1226_v16, %v5466_v45 }
 0x2b6   : > { %v1217_v23 = vrot.slane %v1216_v15, 4  ;;  %v1236_v24 = vperm.slane %v1232_v19, %v5466_v45  ;;  %v2452_v27 = vrot.slane %v2451_v21, 4  ;;  %v2471_v20 = vperm.slane %v2467_v25, %v5466_v45 }
 0x2b7   : > { %v2465_v34 = vperm.slane %v2461_v18, %v5466_v45 }
 0x2b8   : > { %v1218_v28 = vsel %vm768_vm15, %v1217_v23, %v1210_v22  ;;  %v1237_v31 = vrot.slane %v1236_v24, 4  ;;  %v2453_v33 = vsel %vm768_vm15, %v2452_v27, %v2445_v26  ;;  %v2472_v35 = vrot.slane %v2471_v20, 4 }
 0x2b9   : > { %v5531_v32 = vperm.slane %v1218_v28, %v5472_v60  ;;  %v5537_v38 = vperm.slane %v2453_v33, %v5472_v60 }
 0x2ba   : > { %v1238_v37 = vsel %vm768_vm15, %v1237_v31, %v1230_v30  ;;  %v2473_v41 = vsel %vm768_vm15, %v2472_v35, %v2465_v34 }
 0x2bb   : > { %v5540_v39 = vperm.slane %v1238_v37, %v5472_v60  ;;  %v1223_v40 = vrot.slane %v5531_v32, 4  ;;  %v1248_v42 = vshrl.u32 %v5531_v32, 16  ;;  %v5546_v43 = vperm.slane %v2473_v41, %v5472_v60 }
 0x2bc   : > { %v2458_v44 = vrot.slane %v5537_v38, 4  ;;  %v2483_v51 = vshrl.u32 %v5537_v38, 16 }
 0x2bd   : > { %v1247_v46 = vpack.i.b16 %v5540_v39, %v5531_v32  ;;  %v1249_v47 = vshrl.u32 %v5540_v39, 16  ;;  %v5553_v48 = vsel %vm768_vm15, 0, %v1223_v40  ;;  %v1243_v49 = vrot.slane %v5540_v39, 4 }
 0x2be   : > { %v2482_v50 = vpack.i.b16 %v5546_v43, %v5537_v38  ;;  %v2484_v52 = vshrl.u32 %v5546_v43, 16  ;;  %v5566_v55 = vsel %vm768_vm15, 0, %v2458_v44  ;;  %v2478_v56 = vrot.slane %v5546_v43, 4 }
 0x2bf   : > { %v5560_v53 = vpack.i.b16 %v1249_v47, %v1248_v42  ;;  %v5563_v54 = vsel %vm768_vm15, 0, %v1243_v49  ;;  %v1254_v58 = vshrl.u32 %v5553_v48, 16  ;;  %v2489_v0 = vshrl.u32 %v5566_v55, 16 }
 0x2c0   : > { %v1253_v57 = vpack.i.b16 %v5563_v54, %v5553_v48  ;;  %v1255_v59 = vshrl.u32 %v5563_v54, 16  ;;  %v5573_v29 = vpack.i.b16 %v2484_v52, %v2483_v51  ;;  %v5576_v61 = vsel %vm768_vm15, 0, %v2478_v56 }
 0x2c1   : > { %v2488_v63 = vpack.i.b16 %v5576_v61, %v5566_v55  ;;  %v2490_v1 = vshrl.u32 %v5576_v61, 16  ;;  %v4783_v61 = vld [vmem:[%s5366_s20 + $0x1] ss:$0 sm:$0xff] }
 0x2c2   : > { %v5578_v62 = vpack.i.b16 %v1255_v59, %v1254_v58 }
 0x2c3   : > { %v5584_v2 = vpack.i.b16 %v2490_v1, %v2489_v0 }
 0x2fc   : > { %v4602_v3 = vpop.permute.xlu1 %4601 }
 0x2fd   : > { %v4607_v4 = vpop.permute.xlu2 %4606  ;;  %v4604_v5 = vunpack.i.h.bf16 %v4602_v3  ;;  %v4603_v6 = vunpack.i.l.bf16 %v4602_v3 }
 0x2fe   : > { %v4609_v8 = vunpack.i.h.bf16 %v4607_v4  ;;  %v4608_v9 = vunpack.i.l.bf16 %v4607_v4 }
 0x2ff   : > { %v922_v10 = vrot.slane %v4604_v5, 4  ;;  %v934_v11 = vrot.slane %v4603_v6, 4 }
 0x300   : > { %v920_v13 = vrot.slane %v4609_v8, 4  ;;  %v932_v23 = vrot.slane %v4608_v9, 4 }
 0x301   : > { %v923_v14 = vsel %vm768_vm15, %v4609_v8, %v922_v10  ;;  %v935_v15 = vsel %vm768_vm15, %v4608_v9, %v934_v11 }
 0x302   : > { %v931_v16 = vperm.slane %v923_v14, %v5466_v45  ;;  %v943_v17 = vperm.slane %v935_v15, %v5466_v45  ;;  %v921_v18 = vsel %vm768_vm15, %v920_v13, %v4604_v5  ;;  %v933_v33 = vsel %vm768_vm15, %v932_v23, %v4603_v6 }
 0x303   : > { %v5594_v26 = vperm.slane %v921_v18, %v5466_v45  ;;  %v5603_v49 = vperm.slane %v933_v33, %v5466_v45 }
 0x304   : > { %v958_v19 = vrot.slane %v931_v16, 4  ;;  %v956_v21 = vrot.slane %v943_v17, 4  ;;  %v4622_v27 = vpop.permute.xlu1 %4621 }
 0x305   : > { %v4612_v22 = vpop.permute.xlu2 %4611  ;;  %v4624_v34 = vunpack.i.h.bf16 %v4622_v27  ;;  %v4623_v35 = vunpack.i.l.bf16 %v4622_v27  ;;  %v946_v37 = vrot.slane %v5594_v26, 4 }
 0x306   : > { %v959_v24 = vsel %vm768_vm15, %v943_v17, %v958_v19  ;;  %v957_v25 = vsel %vm768_vm15, %v956_v21, %v931_v16  ;;  %v4614_v8 = vunpack.i.h.bf16 %v4612_v22  ;;  %v4613_v10 = vunpack.i.l.bf16 %v4612_v22 }
 0x307   : > { %v967_v20 = vperm.slane %v959_v24, %v5472_v60  ;;  %v963_v28 = vperm.slane %v957_v25, %v5472_v60  ;;  %v978_v56 = vrot.slane %v4624_v34, 4  ;;  %v990_v58 = vrot.slane %v4623_v35, 4 }
 0x308   : > { %v947_v1 = vsel %vm768_vm15, %v5603_v49, %v946_v37  ;;  %v1074_v18 = vrot.slane %v4614_v8, 4  ;;  %v1086_v24 = vrot.slane %v4613_v10, 4 }
 0x309   : > { %v974_v30 = vrot.slane %v967_v20, 4  ;;  %v972_v31 = vrot.slane %v963_v28, 4  ;;  %v1038_v42 = vpack.c.bf16 %v967_v20, %v967_v20  ;;  %v1036_v52 = vpack.c.bf16 %v963_v28, %v963_v28 }
 0x30a   : > { %v955_v14 = vperm.slane %v947_v1, %v5472_v60 }
 0x30b   : > { %v975_v40 = vsel %vm768_vm15, 0.0, %v974_v30  ;;  %v973_v41 = vsel %vm768_vm15, 0.0, %v972_v31 }
 0x30c   : > { %v1039_v44 = vpack.c.bf16 %v975_v40, %v975_v40  ;;  %v1037_v47 = vpack.c.bf16 %v973_v41, %v973_v41  ;;  %v970_v20 = vrot.slane %v955_v14, 4 }
 0x30d   : > { %v4627_v51 = vpop.permute.xlu2 %4626 }
 0x30e   : > { %v4629_v59 = vunpack.i.h.bf16 %v4627_v51  ;;  %v4628_v0 = vunpack.i.l.bf16 %v4627_v51  ;;  %4630 = vxpose.binary.xlu1.c.b16.start.end [1/2] (short) (narrow) %v1039_v44, %v1038_v42, 16  ;;  %v971_v42 = vsel %vm768_vm15, 0.0, %v970_v20 }
 0x30f   : > { %4636 = vxpose.binary.xlu2.c.b16.start.end [1/2] (short) (narrow) %v1037_v47, %v1036_v52, 16  ;;  %v1034_v52 = vpack.c.bf16 %v955_v14, %v955_v14 }
 0x310   : > { %v976_v3 = vrot.slane %v4629_v59, 4  ;;  %v979_v4 = vsel %vm768_vm15, %v4629_v59, %v978_v56  ;;  %v988_v5 = vrot.slane %v4628_v0, 4  ;;  %v991_v6 = vsel %vm768_vm15, %v4628_v0, %v990_v58 }
 0x311   : > { %v5610_v9 = vperm.slane %v979_v4, %v5466_v45  ;;  %v5619_v16 = vperm.slane %v991_v6, %v5466_v45  ;;  %v1035_v59 = vpack.c.bf16 %v971_v42, %v971_v42 }
 0x312   : > { %v977_v11 = vsel %vm768_vm15, %v976_v3, %v4624_v34  ;;  %v989_v13 = vsel %vm768_vm15, %v988_v5, %v4623_v35 }
 0x313   : > { %v5616_v15 = vperm.slane %v977_v11, %v5466_v45  ;;  %v1014_v17 = vrot.slane %v5610_v9, 4  ;;  %v5623_v19 = vperm.slane %v989_v13, %v5466_v45 }
 0x315   : > { %v1002_v21 = vrot.slane %v5616_v15, 4  ;;  %v4617_v22 = vpop.permute.xlu0 %4616  ;;  %v5628_v23 = vsel %vm768_vm15, %v5619_v16, %v1014_v17 }
 0x316   : > { %v4619_v25 = vunpack.i.h.bf16 %v4617_v22  ;;  %v4618_v27 = vunpack.i.l.bf16 %v4617_v22 }
 0x317   : > { %v5632_v28 = vsel %vm768_vm15, %v5623_v19, %v1002_v21 }
 0x318   : > { %v1072_v30 = vrot.slane %v4619_v25, 4  ;;  %v1075_v31 = vsel %vm768_vm15, %v4619_v25, %v1074_v18  ;;  %v1084_v33 = vrot.slane %v4618_v27, 4  ;;  %v1087_v34 = vsel %vm768_vm15, %v4618_v27, %v1086_v24 }
 0x319   : > { %v1083_v35 = vperm.slane %v1075_v31, %v5466_v45  ;;  %v1095_v37 = vperm.slane %v1087_v34, %v5466_v45 }
 0x31a   : > { %v1073_v40 = vsel %vm768_vm15, %v1072_v30, %v4614_v8  ;;  %v1085_v41 = vsel %vm768_vm15, %v1084_v33, %v4613_v10  ;;  %v944_v8 = vrot.slane %v5603_v49, 4 }
 0x31b   : > { %v1091_v44 = vperm.slane %v1085_v41, %v5466_v45  ;;  %v1108_v47 = vrot.slane %v1095_v37, 4  ;;  %v1110_v51 = vrot.slane %v1083_v35, 4  ;;  %v1079_v56 = vperm.slane %v1073_v40, %v5466_v45 }
 0x31c   : > { %v945_v24 = vsel %vm768_vm15, %v944_v8, %v5594_v26 }
 0x31d   : > { %v1096_v58 = vrot.slane %v1091_v44, 4  ;;  %v1111_v0 = vsel %vm768_vm15, %v1095_v37, %v1110_v51  ;;  %v1109_v4 = vsel %vm768_vm15, %v1108_v47, %v1083_v35  ;;  %v951_v27 = vperm.slane %v945_v24, %v5472_v60 }
 0x31e   : > { %v1119_v1 = vperm.slane %v1111_v0, %v5472_v60  ;;  %v1115_v13 = vperm.slane %v1109_v4, %v5472_v60  ;;  %v1098_v20 = vrot.slane %v1079_v56, 4  ;;  %v1012_v47 = vrot.slane %v5619_v16, 4 }
 0x31f   : > { %4642 = vxpose.binary.xlu2.c.b16.start.end [1/2] (short) (narrow) %v1035_v59, %v1034_v52, 16  ;;  %v1097_v3 = vsel %vm768_vm15, %v1096_v58, %v1079_v56  ;;  %v968_v30 = vrot.slane %v951_v27, 4  ;;  %v1032_v40 = vpack.c.bf16 %v951_v27, %v951_v27  ;;  %v1000_v0 = vrot.slane %v5623_v19, 4 }
 0x320   : > { %v1126_v5 = vrot.slane %v1119_v1, 4  ;;  %v1103_v6 = vperm.slane %v1097_v3, %v5472_v60  ;;  %v1190_v14 = vpack.c.bf16 %v1119_v1, %v1119_v1  ;;  %v1124_v25 = vrot.slane %v1115_v13, 4 }
 0x321   : > { %v1188_v31 = vpack.c.bf16 %v1115_v13, %v1115_v13  ;;  %v1099_v34 = vsel %vm768_vm15, %v1091_v44, %v1098_v20  ;;  %v969_v35 = vsel %vm768_vm15, 0.0, %v968_v30  ;;  %v1013_v56 = vsel %vm768_vm15, %v1012_v47, %v5610_v9 }
 0x322   : > { %v1127_v10 = vsel %vm768_vm15, 0.0, %v1126_v5  ;;  %v1120_v11 = vrot.slane %v1103_v6, 4  ;;  %v1184_v21 = vpack.c.bf16 %v1103_v6, %v1103_v6  ;;  %v1125_v49 = vsel %vm768_vm15, 0.0, %v1124_v25 }
 0x323   : > { %v1191_v17 = vpack.c.bf16 %v1127_v10, %v1127_v10  ;;  %v1189_v33 = vpack.c.bf16 %v1125_v49, %v1125_v49  ;;  %v1107_v37 = vperm.slane %v1099_v34, %v5472_v60  ;;  %v1033_v41 = vpack.c.bf16 %v969_v35, %v969_v35 }
 0x324   : > { %v1121_v18 = vsel %vm768_vm15, 0.0, %v1120_v11  ;;  %v1019_v44 = vperm.slane %v1013_v56, %v5472_v60  ;;  %v1001_v4 = vsel %vm768_vm15, %v1000_v0, %v5616_v15 }
 0x325   : > { %4633 = vxpose.binary.xlu0.c.b16.start.end [1/2] (short) (narrow) %v1191_v17, %v1190_v14, 16  ;;  %v1185_v22 = vpack.c.bf16 %v1121_v18, %v1121_v18  ;;  %v1122_v26 = vrot.slane %v1107_v37, 4  ;;  %v1186_v51 = vpack.c.bf16 %v1107_v37, %v1107_v37  ;;  %v1007_v16 = vperm.slane %v1001_v4, %v5472_v60 }
 0x326   : > { %v1028_v58 = vrot.slane %v1019_v44, 4  ;;  %v1044_v1 = vpack.c.bf16 %v1019_v44, %v1019_v44 }
 0x327   : > { %4648 = vxpose.binary.xlu1.c.b16.start.end [1/2] (short) (narrow) %v1185_v22, %v1184_v21, 16  ;;  %v1123_v42 = vsel %vm768_vm15, 0.0, %v1122_v26  ;;  %v1024_v5 = vrot.slane %v1007_v16, 4  ;;  %v1040_v8 = vpack.c.bf16 %v1007_v16, %v1007_v16 }
 0x328   : > { %v1187_v52 = vpack.c.bf16 %v1123_v42, %v1123_v42  ;;  %v1029_v59 = vsel %vm768_vm15, 0.0, %v1028_v58 }
 0x329   : > { %v1045_v3 = vpack.c.bf16 %v1029_v59, %v1029_v59  ;;  %v1025_v6 = vsel %vm768_vm15, 0.0, %v1024_v5 }
 0x32a   : > { %v1041_v9 = vpack.c.bf16 %v1025_v6, %v1025_v6 }
 0x32f   : > { %4645 = vxpose.binary.xlu2.c.b16.start.end [1/2] (short) (narrow) %v1189_v33, %v1188_v31, 16 }
 0x335   : > { %4639 = vxpose.binary.xlu0.c.b16.start.end [1/2] (short) (narrow) %v1033_v41, %v1032_v40, 16 }
 0x33f   : > { %4651 = vxpose.binary.xlu2.c.b16.start.end [1/2] (short) (narrow) %v1187_v52, %v1186_v51, 16 }
 0x34f   : > { %4654 = vxpose.binary.xlu2.c.b16.start.end [1/2] (short) (narrow) %v1045_v3, %v1044_v1, 16 }
 0x35f   : > { %4657 = vxpose.binary.xlu2.c.b16.start.end [1/2] (short) (narrow) %v1041_v9, %v1040_v8, 16 }
 0x3b0   : > { %v4637_v10 = vpop.trf.xlu2 }
 0x3b1   : > { %v1385_v40 = vrot.slane %v4637_v10, 4 }
 0x3b8   : > { %v4638_v11 = vpop.trf.xlu2 }
 0x3b9   : > { %v1413_v9 = vrot.slane %v4638_v11, 4 }
 0x3ba   : > { %v4631_v14 = vpop.trf.xlu1 }
 0x3bb   : > { %v1391_v25 = vrot.slane %v4631_v14, 4 }
 0x3c0   : > { %v4643_v13 = vpop.trf.xlu2 }
 0x3c1   : > { %v1392_v20 = vsel %vm768_vm15, %v1391_v25, %v4643_v13 }
 0x3c2   : > { %v4632_v19 = vpop.trf.xlu1  ;;  %v1396_v31 = vperm.slane %v1392_v20, %v5466_v45 }
 0x3c3   : > { %v1419_v34 = vrot.slane %v4632_v19, 4 }
 0x3c4   : > { %v1397_v42 = vrot.slane %v1396_v31, 4 }
 0x3c8   : > { %v4644_v17 = vpop.trf.xlu2 }
 0x3c9   : > { %v1420_v56 = vsel %vm768_vm15, %v1419_v34, %v4644_v17 }
 0x3ca   : > { %v1424_v3 = vperm.slane %v1420_v56, %v5466_v45 }
 0x3cc   : > { %v1425_v17 = vrot.slane %v1424_v3, 4 }
 0x3d0   : > { %v4646_v18 = vpop.trf.xlu2 }
 0x3d1   : > { %v4634_v21 = vpop.trf.xlu0  ;;  %v1907_v24 = vrot.slane %v4646_v18, 4 }
 0x3d2   : > { %v1913_v37 = vrot.slane %v4634_v21, 4 }
 0x3d3   : > { %v4649_v22 = vpop.trf.xlu1 }
 0x3d4   : > { %v1908_v49 = vsel %vm768_vm15, %v1907_v24, %v4649_v22 }
 0x3d5   : > { %v1912_v30 = vperm.slane %v1908_v49, %v5466_v45 }
 0x3d7   : > { %v1921_v41 = vrot.slane %v1912_v30, 4 }
 0x3d8   : > { %v4647_v15 = vpop.trf.xlu2 }
 0x3d9   : > { %v4635_v27 = vpop.trf.xlu0  ;;  %v1935_v33 = vrot.slane %v4647_v15, 4 }
 0x3da   : > { %v1941_v8 = vrot.slane %v4635_v27, 4 }
 0x3db   : > { %v4650_v35 = vpop.trf.xlu1 }
 0x3dc   : > { %v1936_v52 = vsel %vm768_vm15, %v1935_v33, %v4650_v35 }
 0x3dd   : > { %v1940_v1 = vperm.slane %v1936_v52, %v5466_v45 }
 0x3df   : > { %v1949_v13 = vrot.slane %v1940_v1, 4 }
 0x3e0   : > { %v4652_v26 = vpop.trf.xlu2 }
 0x3e1   : > { %v1914_v47 = vsel %vm768_vm15, %v1913_v37, %v4652_v26  ;;  %v4640_v51 = vpop.trf.xlu0 }
 0x3e2   : > { %v1918_v44 = vperm.slane %v1914_v47, %v5466_v45  ;;  %v1386_v58 = vsel %vm768_vm15, %v1385_v40, %v4640_v51 }
 0x3e3   : > { %v1390_v59 = vperm.slane %v1386_v58, %v5466_v45 }
 0x3e4   : > { %v1922_v0 = vsel %vm768_vm15, %v1918_v44, %v1921_v41  ;;  %v1919_v4 = vrot.slane %v1918_v44, 4 }
 0x3e5   : > { %v1398_v16 = vsel %vm768_vm15, %v1397_v42, %v1390_v59  ;;  %v5685_v5 = vperm.slane %v1922_v0, %v5472_v60  ;;  %v1399_v6 = vrot.slane %v1390_v59, 4 }
 0x3e6   : > { %v1404_v10 = vperm.slane %v1398_v16, %v5472_v60  ;;  %v1920_v19 = vsel %vm768_vm15, %v1919_v4, %v1912_v30 }
 0x3e7   : > { %v1400_v22 = vsel %vm768_vm15, %v1396_v31, %v1399_v6  ;;  %v1933_v15 = vrot.slane %v5685_v5, 4  ;;  %v5696_v27 = vperm.slane %v1920_v19, %v5472_v60 }
 0x3e8   : > { %v4653_v14 = vpop.trf.xlu2  ;;  %v1409_v30 = vrot.slane %v1404_v10, 4  ;;  %v1408_v35 = vperm.slane %v1400_v22, %v5472_v60  ;;  %v1445_v41 = vshrl.u32 %v1404_v10, 16 }
 0x3e9   : > { %v1942_v18 = vsel %vm768_vm15, %v1941_v8, %v4653_v14  ;;  %v4641_v21 = vpop.trf.xlu0  ;;  %v5707_v26 = vsel %vm768_vm15, 0, %v1933_v15 }
 0x3ea   : > { %v1946_v24 = vperm.slane %v1942_v18, %v5466_v45  ;;  %v1414_v25 = vsel %vm768_vm15, %v1413_v9, %v4641_v21  ;;  %v1410_v58 = vsel %vm768_vm15, 0, %v1409_v30  ;;  %v1461_v0 = vshrl.u32 %v1408_v35, 16 }
 0x3eb   : > { %v1418_v11 = vperm.slane %v1414_v25, %v5466_v45  ;;  %v1991_v22 = vshrl.u32 %v5707_v26, 16 }
 0x3ec   : > { %v1947_v49 = vrot.slane %v1946_v24, 4  ;;  %v1950_v20 = vsel %vm768_vm15, %v1946_v24, %v1949_v13  ;;  %v1453_v13 = vshrl.u32 %v1410_v58, 16 }
 0x3ed   : > { %v5700_v33 = vperm.slane %v1950_v20, %v5472_v60  ;;  %v1426_v31 = vsel %vm768_vm15, %v1425_v17, %v1418_v11  ;;  %v1427_v34 = vrot.slane %v1418_v11, 4  ;;  %v1983_v17 = vshrl.u32 %v5685_v5, 16 }
 0x3ee   : > { %v1948_v37 = vsel %vm768_vm15, %v1947_v49, %v1940_v1  ;;  %v1432_v40 = vperm.slane %v1426_v31, %v5472_v60  ;;  %v1967_v11 = vshrl.u32 %v5696_v27, 16 }
 0x3ef   : > { %v5710_v42 = vperm.slane %v1948_v37, %v5472_v60  ;;  %v1428_v47 = vsel %vm768_vm15, %v1424_v3, %v1427_v34  ;;  %v1961_v51 = vrot.slane %v5700_v33, 4  ;;  %v1981_v52 = vpack.i.b16 %v5700_v33, %v5685_v5 }
 0x3f0   : > { %v1446_v56 = vshrl.u32 %v1432_v40, 16  ;;  %v1436_v44 = vperm.slane %v1428_v47, %v5472_v60  ;;  %v1437_v59 = vrot.slane %v1432_v40, 4  ;;  %v1984_v4 = vshrl.u32 %v5700_v33, 16 }
 0x3f1   : > { %v5719_v1 = vsel %vm768_vm15, 0, %v1961_v51  ;;  %v1965_v3 = vpack.i.b16 %v5710_v42, %v5696_v27  ;;  %v1443_v16 = vpack.i.b16 %v1432_v40, %v1404_v10  ;;  %v1968_v49 = vshrl.u32 %v5710_v42, 16 }
 0x3f2   : > { %v1447_v6 = vpack.i.b16 %v1446_v56, %v1445_v41  ;;  %v1462_v8 = vshrl.u32 %v1436_v44, 16  ;;  %v1438_v9 = vsel %vm768_vm15, 0, %v1437_v59  ;;  %v1459_v19 = vpack.i.b16 %v1436_v44, %v1408_v35 }
 0x3f3   : > { %v1454_v14 = vshrl.u32 %v1438_v9, 16  ;;  %v1989_v21 = vpack.i.b16 %v5719_v1, %v5707_v26  ;;  %v1451_v24 = vpack.i.b16 %v1438_v9, %v1410_v58  ;;  %v1992_v10 = vshrl.u32 %v5719_v1, 16 }
 0x3f4   : > { %4660 = vxpose.binary.xlu1.c.b16.start.end [1/2] (short) (narrow) %v1447_v6, %v1443_v16, 16  ;;  %v1463_v18 = vpack.i.b16 %v1462_v8, %v1461_v0  ;;  %v5730_v15 = vpack.i.b16 %v1984_v4, %v1983_v17  ;;  %v1959_v20 = vrot.slane %v5710_v42, 4  ;;  %v5737_v31 = vpack.i.b16 %v1968_v49, %v1967_v11 }
 0x3f5   : > { %v1455_v25 = vpack.i.b16 %v1454_v14, %v1453_v13  ;;  %v5735_v30 = vpack.i.b16 %v1992_v10, %v1991_v22  ;;  %v1931_v34 = vrot.slane %v5696_v27, 4  ;;  %v1439_v37 = vrot.slane %v1436_v44, 4 }
 0x3f6   : > { %4663 = vxpose.binary.xlu0.c.b16.start.end [1/2] (short) (narrow) %v1463_v18, %v1459_v19, 16  ;;  %v1023_v40 = vperm.slane %v5628_v23, %v5472_v60  ;;  %v1960_v41 = vsel %vm768_vm15, 0, %v1959_v20  ;;  %v1411_v47 = vrot.slane %v1408_v35, 4  ;;  %v1011_v17 = vperm.slane %v5632_v28, %v5472_v60 }
 0x3f7   : > { %4666 = vxpose.binary.xlu2.c.b16.start.end [1/2] (short) (narrow) %v1455_v25, %v1451_v24, 16  ;;  %v1932_v51 = vsel %vm768_vm15, 0, %v1931_v34  ;;  %v1440_v56 = vsel %vm768_vm15, 0, %v1439_v37  ;;  %v1976_v58 = vshrl.u32 %v1960_v41, 16  ;;  %v4655_v25 = vpop.trf.xlu2 }
 0x3f8   : > { %v1030_v59 = vrot.slane %v1023_v40, 4  ;;  %v1412_v0 = vsel %vm768_vm15, 0, %v1411_v47  ;;  %v1975_v4 = vshrl.u32 %v1932_v51, 16  ;;  %v1470_v16 = vshrl.u32 %v1440_v56, 16 }
 0x3f9   : > { %v1973_v6 = vpack.i.b16 %v1960_v41, %v1932_v51  ;;  %v1469_v9 = vshrl.u32 %v1412_v0, 16  ;;  %v1467_v23 = vpack.i.b16 %v1440_v56, %v1412_v0  ;;  %v1046_v14 = vpack.c.bf16 %v1023_v40, %v1023_v40 }
 0x3fa   : > { %v1977_v8 = vpack.i.b16 %v1976_v58, %v1975_v4  ;;  %v1031_v44 = vsel %vm768_vm15, 0.0, %v1030_v59  ;;  %v1026_v19 = vrot.slane %v1011_v17, 4  ;;  %v1042_v22 = vpack.c.bf16 %v1011_v17, %v1011_v17 }
 0x3fb   : > { %v1471_v13 = vpack.i.b16 %v1470_v16, %v1469_v9  ;;  %v1047_v35 = vpack.c.bf16 %v1031_v44, %v1031_v44  ;;  %v2620_v47 = vrot.slane %v4655_v25, 4 }
 0x3fc   : > { %v1027_v18 = vsel %vm768_vm15, 0.0, %v1026_v19 }
 0x3fd   : > { %v1043_v24 = vpack.c.bf16 %v1027_v18, %v1027_v18 }
 0x3ff   : > { %v4656_v10 = vpop.trf.xlu2 }
 0x400   : > { %v2648_v4 = vrot.slane %v4656_v10, 4 }
 0x404   : > { %4675 = vxpose.binary.xlu1.c.b16.start.end [1/2] (short) (narrow) %v1977_v8, %v1973_v6, 16 }
 0x406   : > { %4678 = vxpose.binary.xlu0.c.b16.start.end [1/2] (short) (narrow) %v1471_v13, %v1467_v23, 16 }
 0x407   : > { %4669 = vxpose.binary.xlu2.c.b16.start.end [1/2] (short) (narrow) %v1047_v35, %v1046_v14, 16  ;;  %v4658_v11 = vpop.trf.xlu2 }
 0x408   : > { %v2621_v59 = vsel %vm768_vm15, %v2620_v47, %v4658_v11 }
 0x409   : > { %v2625_v9 = vperm.slane %v2621_v59, %v5466_v45 }
 0x40b   : > { %v2634_v18 = vrot.slane %v2625_v9, 4 }
 0x40f   : > { %v4659_v49 = vpop.trf.xlu2 }
 0x410   : > { %v2649_v35 = vsel %vm768_vm15, %v2648_v4, %v4659_v49 }
 0x417   : > { %4672 = vxpose.binary.xlu2.c.b16.start.end [1/2] (short) (narrow) %v1043_v24, %v1042_v22, 16 }
 0x498   : > { %v4667_v20 = vpop.trf.xlu2 }
 0x4a0   : > { %v4668_v34 = vpop.trf.xlu2  ;;  %v4661_v51 = vpop.trf.xlu1 }
 0x4a2   : > { %v4664_v37 = vpop.trf.xlu0 }
 0x4a3   : > { %v1601_v58 = vrot.slane %v4664_v37, 4  ;;  %v2653_v37 = vperm.slane %v2649_v35, %v5466_v45 }
 0x4a5   : > { %v1602_v16 = vsel %vm768_vm15, %v1601_v58, %v4661_v51 }
 0x4a6   : > { %v1606_v23 = vperm.slane %v1602_v16, %v5466_v45 }
 0x4a8   : > { %v4670_v40 = vpop.trf.xlu2  ;;  %v4662_v22 = vpop.trf.xlu1 }
 0x4a9   : > { %v2626_v6 = vrot.slane %v4670_v40, 4 }
 0x4aa   : > { %v4665_v41 = vpop.trf.xlu0 }
 0x4ab   : > { %v1621_v17 = vrot.slane %v4665_v41, 4 }
 0x4ad   : > { %v1622_v49 = vsel %vm768_vm15, %v1621_v17, %v4662_v22 }
 0x4ae   : > { %v1626_v16 = vperm.slane %v1622_v49, %v5466_v45 }
 0x4b0   : > { %v4671_v56 = vpop.trf.xlu2 }
 0x4b1   : > { %v2654_v41 = vrot.slane %v4671_v56, 4 }
 0x4b2   : > { %v4679_v28 = vpop.trf.xlu0 }
 0x4b3   : > { %v1607_v0 = vrot.slane %v4679_v28, 4 }
 0x4b5   : > { %v1608_v8 = vsel %vm768_vm15, %v1607_v0, %v4667_v20 }
 0x4b6   : > { %v1612_v44 = vperm.slane %v1608_v8, %v5466_v45 }
 0x4b8   : > { %v1613_v13 = vrot.slane %v1612_v44, 4  ;;  %v4673_v14 = vpop.trf.xlu2  ;;  %v2662_v44 = vrot.slane %v2653_v37, 4 }
 0x4b9   : > { %v2627_v19 = vsel %vm768_vm15, %v2626_v6, %v4673_v14 }
 0x4ba   : > { %v2631_v24 = vperm.slane %v2627_v19, %v5466_v45  ;;  %v4680_v25 = vpop.trf.xlu0  ;;  %v1614_v10 = vsel %vm768_vm15, %v1613_v13, %v1606_v23 }
 0x4bb   : > { %v1627_v11 = vrot.slane %v4680_v25, 4  ;;  %v1618_v20 = vperm.slane %v1614_v10, %v5472_v60 }
 0x4bc   : > { %v2632_v40 = vrot.slane %v2631_v24, 4  ;;  %v2635_v47 = vsel %vm768_vm15, %v2631_v24, %v2634_v18 }
 0x4bd   : > { %v1628_v51 = vsel %vm768_vm15, %v1627_v11, %v4668_v34  ;;  %v1619_v58 = vrot.slane %v1618_v20, 4  ;;  %v2643_v59 = vperm.slane %v2635_v47, %v5472_v60  ;;  %v1644_v17 = vshrl.u32 %v1618_v20, 16 }
 0x4be   : > { %v2633_v28 = vsel %vm768_vm15, %v2632_v40, %v2625_v9  ;;  %v1632_v0 = vperm.slane %v1628_v51, %v5466_v45 }
 0x4bf   : > { %v5769_v4 = vperm.slane %v2633_v28, %v5472_v60  ;;  %v1620_v56 = vsel %vm768_vm15, 0, %v1619_v58  ;;  %v2646_v13 = vrot.slane %v2643_v59, 4  ;;  %v2696_v24 = vshrl.u32 %v2643_v59, 16 }
 0x4c0   : > { %v1633_v6 = vrot.slane %v1632_v0, 4  ;;  %v4674_v8 = vpop.trf.xlu2  ;;  %v1650_v22 = vshrl.u32 %v1620_v56, 16 }
 0x4c1   : > { %v2655_v23 = vsel %vm768_vm15, %v2654_v41, %v4674_v8  ;;  %v2644_v14 = vrot.slane %v5769_v4, 4  ;;  %v2647_v49 = vsel %vm768_vm15, 0, %v2646_v13  ;;  %v2680_v41 = vshrl.u32 %v5769_v4, 16 }
 0x4c2   : > { %v2659_v34 = vperm.slane %v2655_v23, %v5466_v45  ;;  %v1634_v9 = vsel %vm768_vm15, %v1633_v6, %v1626_v16 }
 0x4c3   : > { %v1638_v35 = vperm.slane %v1634_v9, %v5472_v60  ;;  %v5784_v51 = vsel %vm768_vm15, 0, %v2644_v14 }
 0x4c4   : > { %v2660_v19 = vrot.slane %v2659_v34, 4  ;;  %v2663_v18 = vsel %vm768_vm15, %v2659_v34, %v2662_v44  ;;  %v2688_v39 = vshrl.u32 %v5784_v51, 16 }
 0x4c5   : > { %v2671_v25 = vperm.slane %v2663_v18, %v5472_v60  ;;  %v1643_v10 = vpack.i.b16 %v1638_v35, %v1618_v20  ;;  %v1645_v11 = vshrl.u32 %v1638_v35, 16  ;;  %v1639_v40 = vrot.slane %v1638_v35, 4 }
 0x4c6   : > { %v2661_v47 = vsel %vm768_vm15, %v2660_v19, %v2653_v37  ;;  %v2704_v18 = vshrl.u32 %v2647_v49, 16 }
 0x4c7   : > { %v5787_v58 = vperm.slane %v2661_v47, %v5472_v60  ;;  %v1659_v28 = vsel %vm1657_vm0, %v1643_v10, 0  ;;  %v1646_v0 = vpack.i.b16 %v1645_v11, %v1644_v17  ;;  %v1640_v16 = vsel %vm768_vm15, 0, %v1639_v40 }
 0x4c8   : > { %1668 = vmatpush.bf16.msra.mxu1 %v1659_v28  ;;  %v1649_v20 = vpack.i.b16 %v1640_v16, %v1620_v56  ;;  %v1651_v6 = vshrl.u32 %v1640_v16, 16  ;;  %v2694_v8 = vpack.i.b16 %v2671_v25, %v2643_v59  ;;  %v2697_v37 = vshrl.u32 %v2671_v25, 16 }
 0x4c9   : > { %v1678_v44 = vsel %vm1657_vm0, %v1646_v0, 0  ;;  %v2674_v23 = vrot.slane %v2671_v25, 4  ;;  %v2678_v34 = vpack.i.b16 %v5787_v58, %v5769_v4  ;;  %v2681_v9 = vshrl.u32 %v5787_v58, 16 }
 0x4ca   : > { %1687 = vmatpush.bf16.msra.mxu2 %v1678_v44  ;;  %v1697_v13 = vsel %vm1657_vm0, %v1649_v20, 0  ;;  %v2698_v14 = vpack.i.b16 %v2697_v37, %v2696_v24  ;;  %v1652_v35 = vpack.i.b16 %v1651_v6, %v1650_v22  ;;  %v2672_v17 = vrot.slane %v5787_v58, 4 }
 0x4cb   : > { %1706 = vmatpush.bf16.msra.mxu3 %v1697_v13  ;;  %4371 = vmatmul.msk.bf16.vlgmr.msra.gmra.mxu1 %vm1653_vm2, %v1247_v46  ;;  %v2675_v59 = vsel %vm768_vm15, 0, %v2674_v23  ;;  %v5802_v56 = vpack.i.b16 %v2681_v9, %v2680_v41  ;;  %v5827_v23 = vpop.trf.xlu1 }
 0x4cc   : > { %4681 = vxpose.binary.xlu2.c.b16.start.end [1/2] (short) (narrow) %v2698_v14, %v2694_v8, 16  ;;  %v1716_v19 = vsel %vm1657_vm0, %v1652_v35, 0  ;;  %v2705_v25 = vshrl.u32 %v2675_v59, 16  ;;  %v5806_v22 = vsel %vm768_vm15, 0, %v2672_v17  ;;  %v2702_v24 = vpack.i.b16 %v2675_v59, %v2647_v49 }
 0x4cd   : > { %4372 = vmatmul.msk.bf16.vlgmr.msra.gmra.mxu2 %vm1653_vm2, %v5560_v53  ;;  %1725 = vmatpush.bf16.msrb.mxu1 %v1716_v19  ;;  %v2686_v32 = vpack.i.b16 %v5806_v22, %v5784_v51  ;;  %v2689_v46 = vshrl.u32 %v5806_v22, 16  ;;  %v4782_v53 = vld [vmem:[%s5366_s20] ss:$0 sm:$0xff]  ;;  %s5116_s20 = smov 24  }
 0x4ce   : > { %v2706_v10 = vpack.i.b16 %v2705_v25, %v2704_v18  ;;  %4373 = vmatmul.msk.bf16.vlgmr.msra.gmra.mxu3 %vm1653_vm2, %v1253_v57 }
 0x4cf   : > { %v5818_v11 = vpack.i.b16 %v2689_v46, %v2688_v39 }
 0x4d0   : > { %4684 = vxpose.binary.xlu1.c.b16.start.end [1/2] (short) (narrow) %v2706_v10, %v2702_v24, 16 }
 0x4d3   : > { %v5829_v9 = vpop.trf.xlu1 }
 0x4db   : > { %4374 = vmatmul.msk.bf16.vlgmr.msrb.gmra.mxu1 %vm1653_vm2, %v5578_v62 }
 0x548   : > { %v1670_v40 = vpop.f32.mrf.mxu1 }
 0x549   : > { %v1671_v47 = vadd.f32 %v4782_v53, %v1670_v40 }
 0x54b   : > { %v1731_v41 = vsel %vm1653_vm2, %v1671_v47, -inf }
 0x54c   : > { %1732 = vmax.xlane.f32.xlu1 %v1731_v41 }
 0x550   : > { %v1672_v28 = vpop.f32.mrf.mxu1  ;;  %v1689_v49 = vpop.f32.mrf.mxu2 }
 0x551   : > { %v1690_v0 = vadd.f32 %v4782_v53, %v1689_v49  ;;  %v1708_v16 = vpop.f32.mrf.mxu3 }
 0x552   : > { %v1709_v20 = vadd.f32 %v4782_v53, %v1708_v16 }
 0x553   : > { %v1734_v48 = vsel %vm1653_vm2, %v1690_v0, -inf }
 0x554   : > { %1735 = vmax.xlane.f32.xlu2 %v1734_v48  ;;  %v1737_v54 = vsel %vm1653_vm2, %v1709_v20, -inf }
 0x555   : > { %1738 = vmax.xlane.f32.xlu0 %v1737_v54 }
 0x558   : > { %v1691_v57 = vpop.f32.mrf.mxu2  ;;  %v1727_v6 = vpop.f32.mrf.mxu1 }
 0x559   : > { %v1728_v62 = vadd.f32 %v4782_v53, %v1727_v6  ;;  %v1710_v8 = vpop.f32.mrf.mxu3 }
 0x55b   : > { %v1740_v37 = vsel %vm1653_vm2, %v1728_v62, -inf }
 0x55c   : > { %1741 = vmax.xlane.f32.xlu1 %v1740_v37 }
 0x560   : > { %v1729_v44 = vpop.f32.mrf.mxu1 }
 0x56d   : > { %v5833_v14 = vpop.trf.xlu2 }
 0x575   : > { %v5837_v17 = vpop.trf.xlu2 }
 0x57c   : > { %v5831_v13 = vpop.trf.xlu1 }
 0x584   : > { %v5835_v35 = vpop.trf.xlu1 }
 0x5bf   : > { %v1733_v59 = vpop.xlane.xlu1 %1732 }
 0x5c0   : > { %v1743_v19 = vsub.f32 %v1671_v47, %v1733_v59 }
 0x5c2   : > { %v1747_v18 = vmul.f32 1.442695, %v1743_v19 }
 0x5c4   : > { %4799 = vpow2.f32 %v1747_v18 }
 0x5c7   : > { %v1736_v25 = vpop.xlane.xlu2 %1735 }
 0x5c8   : > { %v1744_v39 = vsub.f32 %v1690_v0, %v1736_v25  ;;  %v1739_v46 = vpop.xlane.xlu0 %1738 }
 0x5c9   : > { %v1745_v24 = vsub.f32 %v1709_v20, %v1739_v46 }
 0x5ca   : > { %v4800_v10 = vpop.eup %4799  ;;  %v1749_v53 = vmul.f32 1.442695, %v1744_v39 }
 0x5cb   : > { %v1751_v40 = vmul.f32 1.442695, %v1745_v24  ;;  %v1755_v41 = vsel %vm1653_vm2, %v4800_v10, 0.0 }
 0x5cc   : > { %4801 = vpow2.f32 %v1749_v53  ;;  %1756 = vadd.xlane.f32.xlu0 %v1755_v41 }
 0x5cd   : > { %4803 = vpow2.f32 %v1751_v40 }
 0x5cf   : > { %v1742_v28 = vpop.xlane.xlu1 %1741 }
 0x5d0   : > { %v1746_v49 = vsub.f32 %v1728_v62, %v1742_v28 }
 0x5d2   : > { %v4802_v16 = vpop.eup %4801  ;;  %v1753_v48 = vmul.f32 1.442695, %v1746_v49 }
 0x5d3   : > { %v4804_v54 = vpop.eup %4803  ;;  %v1758_v47 = vsel %vm1653_vm2, %v4802_v16, 0.0 }
 0x5d4   : > { %4805 = vpow2.f32 %v1753_v48  ;;  %1759 = vadd.xlane.f32.xlu1 %v1758_v47  ;;  %v1761_v0 = vsel %vm1653_vm2, %v4804_v54, 0.0 }
 0x5d5   : > { %1762 = vadd.xlane.f32.xlu2 %v1761_v0 }
 0x5da   : > { %v4806_v20 = vpop.eup %4805 }
 0x5db   : > { %v1764_v57 = vsel %vm1653_vm2, %v4806_v20, 0.0 }
 0x5dc   : > { %1765 = vadd.xlane.f32.xlu1 %v1764_v57 }
 0x5e0   : > { %4691 = vrot.lane.b32.xlu0 %v5458_v36, %s5115_s13 }
 0x602   : > { %4695 = vxpose.binary.xlu0.c.b16.start.end [1/2] (short) (narrow) %v5735_v30, %v1989_v21, 16 }
 0x612   : > { %4698 = vxpose.binary.xlu0.c.b16.start.end [1/2] (short) (narrow) %v5730_v15, %v1981_v52, 16 }
 0x616   : > { %4687 = vxpose.binary.xlu1.c.b16.start.end [1/2] (short) (narrow) %v5802_v56, %v2678_v34, 16 }
 0x622   : > { %4701 = vxpose.binary.xlu0.c.b16.start.end [1/2] (short) (narrow) %v5737_v31, %v1965_v3, 16 }
 0x632   : > { %4704 = vxpose.binary.xlu0.c.b16.start.end [1/2] (short) (narrow) %v5818_v11, %v2686_v32, 16 }
 0x63f   : > { %v1757_v36 = vpop.xlane.xlu0 %1756 }
 0x640   : > { %4807 = vrcp.f32 %v1757_v36  ;;  %v2836_v36 = vrot.slane %v5833_v14, 4 }
 0x646   : > { %v4808_v5 = vpop.eup %4807 }
 0x647   : > { %v1760_v33 = vpop.xlane.xlu1 %1759  ;;  %v1771_v26 = vmul.f32 %v4808_v5, %v4800_v10 }
 0x648   : > { %4809 = vrcp.f32 %v1760_v33  ;;  %v1763_v52 = vpop.xlane.xlu2 %1762 }
 0x649   : > { %4811 = vrcp.f32 %v1763_v52  ;;  %v1775_v1 = vpack.c.bf16 %v1771_v26, %v1771_v26 }
 0x64b   : > { %v2179_v21 = vsel %vm1653_vm2, %v1775_v1, 0 }
 0x64c   : > { %2188 = vmatpush.bf16.xpose.msrb.mxu2 %v2179_v21 }
 0x64e   : > { %v4810_v27 = vpop.eup %4809 }
 0x64f   : > { %v4812_v42 = vpop.eup %4811  ;;  %v1766_v3 = vpop.xlane.xlu1 %1765  ;;  %v1772_v15 = vmul.f32 %v4810_v27, %v4802_v16 }
 0x650   : > { %4813 = vrcp.f32 %v1766_v3  ;;  %v1773_v30 = vmul.f32 %v4812_v42, %v4804_v54 }
 0x651   : > { %v1776_v31 = vpack.c.bf16 %v1772_v15, %v1772_v15 }
 0x652   : > { %v1777_v4 = vpack.c.bf16 %v1773_v30, %v1773_v30  ;;  %v5871_v11 = vpop.permute.xlu0 %4691 }
 0x653   : > { %v2198_v51 = vsel %vm1653_vm2, %v1776_v31, 0  ;;  %v4694_v21 = vunpack.i.h.bf16 %v5871_v11  ;;  %v4693_v27 = vunpack.i.l.bf16 %v5871_v11 }
 0x654   : > { %2207 = vmatpush.bf16.xpose.msrb.mxu3 %v2198_v51  ;;  %v2217_v58 = vsel %vm1653_vm2, %v1777_v4, 0 }
 0x655   : > { %2226 = vmatpush.bf16.xpose.msrb.mxu0 %v2217_v58 }
 0x656   : > { %v4814_v34 = vpop.eup %4813 }
 0x657   : > { %v1774_v56 = vmul.f32 %v4814_v34, %v4806_v20 }
 0x659   : > { %v1778_v22 = vpack.c.bf16 %v1774_v56, %v1774_v56 }
 0x65b   : > { %v2236_v32 = vsel %vm1653_vm2, %v1778_v22, 0 }
 0x65c   : > { %2245 = vmatpush.bf16.xpose.msra.mxu1 %v2236_v32  ;;  %v1130_v32 = vrot.slane %v4694_v21, 4 }
 0x670   : > { %4708 = vrot.lane.b32.xlu1 %v5480_v7, %s5115_s13 }
 0x6ae   : > { %v4696_v6 = vpop.trf.xlu0 }
 0x6af   : > { %v2129_v37 = vrot.slane %v4696_v6, 4 }
 0x6b1   : > { %v2130_v59 = vsel %vm768_vm15, %v2129_v37, %v5827_v23  ;;  %v1142_v37 = vrot.slane %v4693_v27, 4 }
 0x6b2   : > { %v2134_v19 = vperm.slane %v2130_v59, %v5466_v45 }
 0x6b4   : > { %v2135_v24 = vrot.slane %v2134_v19, 4 }
 0x6b6   : > { %v4697_v62 = vpop.trf.xlu0 }
 0x6b7   : > { %v2149_v18 = vrot.slane %v4697_v62, 4  ;;  %v2862_v62 = vrot.slane %v5835_v35, 4 }
 0x6b9   : > { %v2150_v53 = vsel %vm768_vm15, %v2149_v18, %v5829_v9  ;;  %v2842_v9 = vrot.slane %v5831_v13, 4 }
 0x6ba   : > { %v2154_v41 = vperm.slane %v2150_v53, %v5466_v45 }
 0x6bc   : > { %v2155_v48 = vrot.slane %v2154_v41, 4 }
 0x6be   : > { %v4699_v8 = vpop.trf.xlu0 }
 0x6bf   : > { %v2123_v25 = vrot.slane %v4699_v8, 4  ;;  %v2856_v8 = vrot.slane %v5837_v17, 4 }
 0x6c2   : > { %v4688_v10 = vpop.trf.xlu1 }
 0x6c3   : > { %v2837_v3 = vsel %vm768_vm15, %v2836_v36, %v4688_v10 }
 0x6c4   : > { %v2841_v58 = vperm.slane %v2837_v3, %v5466_v45 }
 0x6c6   : > { %v4700_v44 = vpop.trf.xlu0 }
 0x6c7   : > { %v2143_v28 = vrot.slane %v4700_v44, 4 }
 0x6ca   : > { %v4689_v0 = vpop.trf.xlu1 }
 0x6ce   : > { %v4702_v39 = vpop.trf.xlu0 }
 0x6cf   : > { %v2124_v46 = vsel %vm768_vm15, %v2123_v25, %v4702_v39  ;;  %v2857_v39 = vsel %vm768_vm15, %v2856_v8, %v4689_v0 }
 0x6d0   : > { %v2128_v7 = vperm.slane %v2124_v46, %v5466_v45 }
 0x6d2   : > { %v2136_v40 = vsel %vm768_vm15, %v2135_v24, %v2128_v7 }
 0x6d3   : > { %v2140_v23 = vperm.slane %v2136_v40, %v5472_v60 }
 0x6d5   : > { %v2141_v47 = vrot.slane %v2140_v23, 4  ;;  %v2166_v5 = vshrl.u32 %v2140_v23, 16 }
 0x6d6   : > { %v4703_v49 = vpop.trf.xlu0 }
 0x6d7   : > { %v2144_v16 = vsel %vm768_vm15, %v2143_v28, %v4703_v49  ;;  %v2142_v52 = vsel %vm768_vm15, 0, %v2141_v47  ;;  %v2861_v49 = vperm.slane %v2857_v39, %v5466_v45 }
 0x6d8   : > { %v2148_v54 = vperm.slane %v2144_v16, %v5466_v45  ;;  %v2172_v4 = vshrl.u32 %v2142_v52, 16 }
 0x6da   : > { %v2156_v20 = vsel %vm768_vm15, %v2155_v48, %v2148_v54 }
 0x6db   : > { %v2160_v57 = vperm.slane %v2156_v20, %v5472_v60 }
 0x6dd   : > { %v2165_v33 = vpack.i.b16 %v2160_v57, %v2140_v23  ;;  %v2167_v26 = vshrl.u32 %v2160_v57, 16  ;;  %v2161_v1 = vrot.slane %v2160_v57, 4 }
 0x6de   : > { %v4705_v42 = vpop.trf.xlu0 }
 0x6df   : > { %v2843_v15 = vsel %vm768_vm15, %v2842_v9, %v4705_v42  ;;  %4375 = vmatmul.msk.bf16.vlgmr.msrb.gmra.mxu2 %vm1653_vm2, %v2165_v33  ;;  %v2168_v13 = vpack.i.b16 %v2167_v26, %v2166_v5  ;;  %v2162_v14 = vsel %vm768_vm15, 0, %v2161_v1 }
 0x6e0   : > { %v2847_v30 = vperm.slane %v2843_v15, %v5466_v45  ;;  %v2171_v31 = vpack.i.b16 %v2162_v14, %v2142_v52  ;;  %v2173_v51 = vshrl.u32 %v2162_v14, 16 }
 0x6e1   : > { %4376 = vmatmul.msk.bf16.vlgmr.msrb.gmra.mxu3 %vm1653_vm2, %v2168_v13 }
 0x6e2   : > { %v2848_v34 = vrot.slane %v2847_v30, 4  ;;  %v4709_v56 = vpop.permute.xlu1 %4708  ;;  %v2174_v22 = vpack.i.b16 %v2173_v51, %v2172_v4  ;;  %4377 = vmatmul.msk.bf16.vlgmr.msrb.gmra.mxu0 %vm1653_vm2, %v2171_v31 }
 0x6e3   : > { %v4711_v11 = vunpack.i.h.bf16 %v4709_v56  ;;  %v4710_v6 = vunpack.i.l.bf16 %v4709_v56 }
 0x6e4   : > { %v2849_v44 = vsel %vm768_vm15, %v2848_v34, %v2841_v58  ;;  %4378 = vmatmul.msk.bf16.vlgmr.msra.gmra.mxu1 %vm1653_vm2, %v2174_v22 }
 0x6e5   : > { %v2853_v59 = vperm.slane %v2849_v44, %v5472_v60  ;;  %v1128_v19 = vrot.slane %v4711_v11, 4  ;;  %v1131_v18 = vsel %vm768_vm15, %v4711_v11, %v1130_v32  ;;  %v1140_v25 = vrot.slane %v4710_v6, 4 }
 0x6e6   : > { %v1139_v46 = vperm.slane %v1131_v18, %v5466_v45  ;;  %v1143_v24 = vsel %vm768_vm15, %v4710_v6, %v1142_v37  ;;  %v4706_v35 = vpop.trf.xlu0 }
 0x6e7   : > { %v1129_v17 = vsel %vm768_vm15, %v1128_v19, %v4694_v21  ;;  %v1141_v10 = vsel %vm768_vm15, %v1140_v25, %v4693_v27  ;;  %v1151_v7 = vperm.slane %v1143_v24, %v5466_v45  ;;  %v2863_v53 = vsel %vm768_vm15, %v2862_v62, %v4706_v35 }
 0x6e8   : > { %v1135_v40 = vperm.slane %v1129_v17, %v5466_v45  ;;  %v1147_v41 = vperm.slane %v1141_v10, %v5466_v45  ;;  %v1166_v28 = vrot.slane %v1139_v46, 4  ;;  %v2867_v23 = vperm.slane %v2863_v53, %v5466_v45 }
 0x6e9   : > { %v1164_v16 = vrot.slane %v1151_v7, 4  ;;  %v2854_v48 = vrot.slane %v2853_v59, 4  ;;  %v2879_v27 = vshrl.u32 %v2853_v59, 16 }
 0x6ea   : > { %v1152_v54 = vrot.slane %v1147_v41, 4  ;;  %v1154_v47 = vrot.slane %v1135_v40, 4  ;;  %v2868_v0 = vrot.slane %v2867_v23, 4  ;;  %v1167_v20 = vsel %vm768_vm15, %v1151_v7, %v1166_v28 }
 0x6eb   : > { %v1175_v57 = vperm.slane %v1167_v20, %v5472_v60  ;;  %v1165_v9 = vsel %vm768_vm15, %v1164_v16, %v1139_v46  ;;  %v2855_v42 = vsel %vm768_vm15, 0, %v2854_v48 }
 0x6ec   : > { %v2869_v36 = vsel %vm768_vm15, %v2868_v0, %v2861_v49  ;;  %v1171_v5 = vperm.slane %v1165_v9, %v5472_v60  ;;  %v1153_v33 = vsel %vm768_vm15, %v1152_v54, %v1135_v40  ;;  %v5927_v3 = vsel %vm768_vm15, %v1147_v41, %v1154_v47 }
 0x6ed   : > { %v2873_v26 = vperm.slane %v2869_v36, %v5472_v60  ;;  %v1182_v52 = vrot.slane %v1175_v57, 4  ;;  %v1159_v1 = vperm.slane %v1153_v33, %v5472_v60  ;;  %v1198_v31 = vpack.c.bf16 %v1175_v57, %v1175_v57 }
 0x6ee   : > { %v1180_v21 = vrot.slane %v1171_v5, 4  ;;  %v1196_v11 = vpack.c.bf16 %v1171_v5, %v1171_v5  ;;  %v2885_v44 = vshrl.u32 %v2855_v42, 16  ;;  %v1163_v57 = vperm.slane %v5927_v3, %v5472_v60 }
 0x6ef   : > { %v2878_v15 = vpack.i.b16 %v2873_v26, %v2853_v59  ;;  %v1183_v13 = vsel %vm768_vm15, 0.0, %v1182_v52  ;;  %v2880_v14 = vshrl.u32 %v2873_v26, 16  ;;  %v1176_v30 = vrot.slane %v1159_v1, 4 }
 0x6f0   : > { %v1199_v4 = vpack.c.bf16 %v1183_v13, %v1183_v13  ;;  %v1181_v51 = vsel %vm768_vm15, 0.0, %v1180_v21  ;;  %v2874_v58 = vrot.slane %v2873_v26, 4  ;;  %v1192_v19 = vpack.c.bf16 %v1159_v1, %v1159_v1 }
 0x6f1   : > { %v2892_v34 = vsel %vm1657_vm0, %v2878_v15, 0  ;;  %v1197_v56 = vpack.c.bf16 %v1181_v51, %v1181_v51  ;;  %v2881_v22 = vpack.i.b16 %v2880_v14, %v2879_v27  ;;  %v1177_v32 = vsel %vm768_vm15, 0.0, %v1176_v30 }
 0x6f2   : > { %2901 = vmatpush.bf16.msra.mxu2 %v2892_v34  ;;  %v1193_v6 = vpack.c.bf16 %v1177_v32, %v1177_v32  ;;  %v2875_v62 = vsel %vm768_vm15, 0, %v2874_v58  ;;  %v1178_v9 = vrot.slane %v1163_v57, 4  ;;  %v1194_v5 = vpack.c.bf16 %v1163_v57, %v1163_v57 }
 0x6f3   : > { %4718 = vxpose.binary.xlu0.c.b16.start.end [1/2] (short) (narrow) %v1199_v4, %v1198_v31, 16  ;;  %v2911_v8 = vsel %vm1657_vm0, %v2881_v22, 0  ;;  %v2884_v37 = vpack.i.b16 %v2875_v62, %v2855_v42  ;;  %v2886_v59 = vshrl.u32 %v2875_v62, 16 }
 0x6f4   : > { %4712 = vxpose.binary.xlu2.c.b16.start.end [1/2] (short) (narrow) %v1197_v56, %v1196_v11, 16  ;;  %v1179_v36 = vsel %vm768_vm15, 0.0, %v1178_v9 }
 0x6f5   : > { %2920 = vmatpush.bf16.msra.mxu3 %v2911_v8  ;;  %4380 = vmatmul.msk.bf16.vlgmr.msra.gmra.mxu2 %vm1653_vm2, %v2482_v50  ;;  %v2930_v18 = vsel %vm1657_vm0, %v2884_v37, 0  ;;  %v2887_v25 = vpack.i.b16 %v2886_v59, %v2885_v44  ;;  %v1195_v33 = vpack.c.bf16 %v1179_v36, %v1179_v36 }
 0x6f6   : > { %4715 = vxpose.binary.xlu1.c.b16.start.end [1/2] (short) (narrow) %v1193_v6, %v1192_v19, 16 }
 0x6f7   : > { %2939 = vmatpush.bf16.msra.mxu0 %v2930_v18  ;;  %v2949_v39 = vsel %vm1657_vm0, %v2887_v25, 0 }
 0x6f8   : > { %4381 = vmatmul.msk.bf16.vlgmr.msra.gmra.mxu3 %vm1653_vm2, %v5573_v29  ;;  %2958 = vmatpush.bf16.msrb.mxu1 %v2949_v39 }
 0x6fa   : > { %4382 = vmatmul.msk.bf16.vlgmr.msra.gmra.mxu0 %vm1653_vm2, %v2488_v63 }
 0x6fb   : > { %4383 = vmatmul.msk.bf16.vlgmr.msrb.gmra.mxu1 %vm1653_vm2, %v5584_v2 }
 0x75f   : > { %v5949_v38 = vpop.f32.mrf.mxu0 }
 0x761   : > { %v5951_v43 = vpop.f32.mrf.mxu1 }
 0x762   : > { %v5953_v50 = vpop.f32.mrf.mxu2 }
 0x763   : > { %v4736_v46 = vpack.i.bf16 %v5951_v43, %v5953_v50 }
 0x764   : > { %v5957_v24 = vpop.f32.mrf.mxu3 }
 0x767   : > { %v2230_v29 = vpop.f32.mrf.mxu0 }
 0x769   : > { %v2249_v35 = vpop.f32.mrf.mxu1 }
 0x76a   : > { %v2192_v17 = vpop.f32.mrf.mxu2 }
 0x76c   : > { %v2211_v55 = vpop.f32.mrf.mxu3 }
 0x777   : > { %v2941_v63 = vpop.f32.mrf.mxu0 }
 0x778   : > { %v2942_v10 = vadd.f32 %v4783_v61, %v2941_v63  ;;  %v2960_v7 = vpop.f32.mrf.mxu1  ;;  %v2903_v2 = vpop.f32.mrf.mxu2 }
 0x779   : > { %v5960_v53 = vadd.f32 %v4783_v61, %v2903_v2  ;;  %v2961_v47 = vadd.f32 %v4783_v61, %v2960_v7 }
 0x77a   : > { %v2970_v40 = vsel %vm1653_vm2, %v2942_v10, -inf }
 0x77b   : > { %2971 = vmax.xlane.f32.xlu0 %v2970_v40  ;;  %v2922_v41 = vpop.f32.mrf.mxu3  ;;  %v2964_v28 = vsel %vm1653_vm2, %v5960_v53, -inf  ;;  %v2973_v20 = vsel %vm1653_vm2, %v2961_v47, -inf }
 0x77c   : > { %v2923_v23 = vadd.f32 %v4783_v61, %v2922_v41  ;;  %2965 = vmax.xlane.f32.xlu2 %v2964_v28 }
 0x77e   : > { %v2967_v49 = vsel %vm1653_vm2, %v2923_v23, -inf }
 0x77f   : > { %v2943_v16 = vpop.f32.mrf.mxu0  ;;  %2968 = vmax.xlane.f32.xlu1 %v2967_v49 }
 0x780   : > { %v2962_v48 = vpop.f32.mrf.mxu1  ;;  %v2905_v54 = vpop.f32.mrf.mxu2 }
 0x783   : > { %v2924_v0 = vpop.f32.mrf.mxu3 }
 0x787   : > { %2974 = vmax.xlane.f32.xlu1 %v2973_v20 }
 0x795   : > { %v4713_v11 = vpop.trf.xlu2 }
 0x796   : > { %v3140_v62 = vrot.slane %v4713_v11, 4 }
 0x79d   : > { %v4714_v6 = vpop.trf.xlu2 }
 0x79e   : > { %v3168_v19 = vrot.slane %v4714_v6, 4 }
 0x79f   : > { %v4719_v26 = vpop.trf.xlu0 }
 0x7a0   : > { %v3146_v44 = vrot.slane %v4719_v26, 4 }
 0x7a2   : > { %v4716_v52 = vpop.trf.xlu1 }
 0x7a3   : > { %v3141_v37 = vsel %vm768_vm15, %v3140_v62, %v4716_v52 }
 0x7a4   : > { %v3145_v59 = vperm.slane %v3141_v37, %v5466_v45 }
 0x7a5   : > { %4721 = vxpose.binary.xlu2.c.b16.start.end [1/2] (short) (narrow) %v1195_v33, %v1194_v5, 16 }
 0x7a6   : > { %v3154_v39 = vrot.slane %v3145_v59, 4 }
 0x7a7   : > { %v4720_v1 = vpop.trf.xlu0 }
 0x7a8   : > { %v3174_v61 = vrot.slane %v4720_v1, 4 }
 0x7aa   : > { %v4717_v21 = vpop.trf.xlu1 }
 0x7ab   : > { %v3169_v35 = vsel %vm768_vm15, %v3168_v19, %v4717_v21 }
 0x7ac   : > { %v3173_v63 = vperm.slane %v3169_v35, %v5466_v45 }
 0x7ae   : > { %v3182_v28 = vrot.slane %v3173_v63, 4 }
 0x7ee   : > { %v2972_v27 = vpop.xlane.xlu0 %2971 }
 0x7ef   : > { %v2978_v42 = vsub.f32 %v2942_v10, %v2972_v27  ;;  %v5982_v8 = vpop.xlane.xlu2 %2965 }
 0x7f1   : > { %v2984_v15 = vmul.f32 1.442695, %v2978_v42 }
 0x7f2   : > { %v2969_v13 = vpop.xlane.xlu1 %2968 }
 0x7f3   : > { %4815 = vpow2.f32 %v2984_v15  ;;  %v2977_v51 = vsub.f32 %v2923_v23, %v2969_v13 }
 0x7f5   : > { %v2982_v56 = vmul.f32 1.442695, %v2977_v51 }
 0x7f9   : > { %v5970_v14 = vpop.eup %4815 }
 0x7fa   : > { %v2994_v3 = vsel %vm1653_vm2, %v5970_v14, 0.0  ;;  %v2975_v30 = vpop.xlane.xlu1 %2974 }
 0x7fb   : > { %2995 = vadd.xlane.f32.xlu1 %v2994_v3  ;;  %v2979_v31 = vsub.f32 %v2961_v47, %v2975_v30 }
 0x7fd   : > { %v2986_v4 = vmul.f32 1.442695, %v2979_v31 }
 0x7ff   : > { %4817 = vpow2.f32 %v2986_v4 }
 0x800   : > { %4819 = vpow2.f32 %v2982_v56 }
 0x805   : > { %v5974_v58 = vpop.eup %4817 }
 0x806   : > { %v2997_v34 = vsel %vm1653_vm2, %v5974_v58, 0.0  ;;  %v5978_v22 = vpop.eup %4819 }
 0x807   : > { %2998 = vadd.xlane.f32.xlu1 %v2997_v34  ;;  %v2991_v32 = vsel %vm1653_vm2, %v5978_v22, 0.0 }
 0x816   : > { %2992 = vadd.xlane.f32.xlu2 %v2991_v32 }
 0x846   : > { %v4722_v18 = vpop.trf.xlu2 }
 0x847   : > { %v3147_v25 = vsel %vm768_vm15, %v3146_v44, %v4722_v18 }
 0x848   : > { %v3151_v29 = vperm.slane %v3147_v25, %v5466_v45 }
 0x84a   : > { %v3152_v17 = vrot.slane %v3151_v29, 4  ;;  %v3155_v55 = vsel %vm768_vm15, %v3151_v29, %v3154_v39 }
 0x84b   : > { %v3163_v7 = vperm.slane %v3155_v55, %v5472_v60 }
 0x84c   : > { %v3153_v10 = vsel %vm768_vm15, %v3152_v17, %v3145_v59 }
 0x84d   : > { %v5994_v2 = vperm.slane %v3153_v10, %v5472_v60  ;;  %v3166_v49 = vrot.slane %v3163_v7, 4  ;;  %v3216_v20 = vshrl.u32 %v3163_v7, 16 }
 0x84e   : > { %v4723_v40 = vpop.trf.xlu2 }
 0x84f   : > { %v3175_v41 = vsel %vm768_vm15, %v3174_v61, %v4723_v40  ;;  %v3164_v54 = vrot.slane %v5994_v2, 4  ;;  %v3167_v36 = vsel %vm768_vm15, 0, %v3166_v49  ;;  %v3200_v13 = vshrl.u32 %v5994_v2, 16 }
 0x850   : > { %v3179_v23 = vperm.slane %v3175_v41, %v5466_v45  ;;  %v3224_v42 = vshrl.u32 %v3167_v36, 16 }
 0x851   : > { %v3165_v26 = vsel %vm768_vm15, 0, %v3164_v54 }
 0x852   : > { %v3180_v16 = vrot.slane %v3179_v23, 4  ;;  %v3183_v48 = vsel %vm768_vm15, %v3179_v23, %v3182_v28  ;;  %v3208_v31 = vshrl.u32 %v3165_v26, 16 }
 0x853   : > { %v3191_v47 = vperm.slane %v3183_v48, %v5472_v60 }
 0x854   : > { %v3181_v0 = vsel %vm768_vm15, %v3180_v16, %v3173_v63  ;;  %v2976_v63 = vsub.f32 %v5960_v53, %v5982_v8 }
 0x855   : > { %v3187_v57 = vperm.slane %v3181_v0, %v5472_v60  ;;  %v3217_v9 = vshrl.u32 %v3191_v47, 16  ;;  %v3194_v5 = vrot.slane %v3191_v47, 4  ;;  %v3214_v33 = vpack.i.b16 %v3191_v47, %v3163_v7 }
 0x856   : > { %v2980_v10 = vmul.f32 1.442695, %v2976_v63 }
 0x857   : > { %v3218_v52 = vpack.i.b16 %v3217_v9, %v3216_v20  ;;  %v3195_v1 = vsel %vm768_vm15, 0, %v3194_v5  ;;  %v3192_v21 = vrot.slane %v3187_v57, 4  ;;  %v3198_v27 = vpack.i.b16 %v3187_v57, %v5994_v2 }
 0x858   : > { %v3225_v15 = vshrl.u32 %v3195_v1, 16  ;;  %v3201_v3 = vshrl.u32 %v3187_v57, 16  ;;  %v3222_v4 = vpack.i.b16 %v3195_v1, %v3167_v36 }
 0x859   : > { %4730 = vxpose.binary.xlu2.c.b16.start.end [1/2] (short) (narrow) %v3218_v52, %v3214_v33, 16  ;;  %v3193_v30 = vsel %vm768_vm15, 0, %v3192_v21 }
 0x85a   : > { %v3226_v51 = vpack.i.b16 %v3225_v15, %v3224_v42  ;;  %v3209_v34 = vshrl.u32 %v3193_v30, 16  ;;  %v3202_v56 = vpack.i.b16 %v3201_v3, %v3200_v13  ;;  %v3206_v32 = vpack.i.b16 %v3193_v30, %v3165_v26 }
 0x85c   : > { %4724 = vxpose.binary.xlu0.c.b16.start.end [1/2] (short) (narrow) %v3226_v51, %v3222_v4, 16  ;;  %v3210_v11 = vpack.i.b16 %v3209_v34, %v3208_v31 }
 0x85e   : > { %4727 = vxpose.binary.xlu1.c.b16.start.end [1/2] (short) (narrow) %v3210_v11, %v3206_v32, 16 }
 0x86e   : > { %v2996_v6 = vpop.xlane.xlu1 %2995 }
 0x86f   : > { %4821 = vrcp.f32 %v2996_v6 }
 0x875   : > { %v4822_v62 = vpop.eup %4821 }
 0x876   : > { %v3006_v37 = vmul.f32 %v4822_v62, %v5970_v14 }
 0x878   : > { %v3010_v44 = vpack.c.bf16 %v3006_v37, %v3006_v37 }
 0x87a   : > { %v3450_v59 = vsel %vm1653_vm2, %v3010_v44, 0  ;;  %v2999_v19 = vpop.xlane.xlu1 %2998 }
 0x87b   : > { %3459 = vmatpush.bf16.xpose.msrb.mxu0 %v3450_v59  ;;  %4823 = vrcp.f32 %v2999_v19 }
 0x881   : > { %v4824_v18 = vpop.eup %4823 }
 0x882   : > { %v3007_v25 = vmul.f32 %v4824_v18, %v5974_v58 }
 0x884   : > { %v3011_v39 = vpack.c.bf16 %v3007_v25, %v3007_v25 }
 0x886   : > { %v3469_v29 = vsel %vm1653_vm2, %v3011_v39, 0 }
 0x887   : > { %3478 = vmatpush.bf16.xpose.msra.mxu1 %v3469_v29 }
 0x889   : > { %v2993_v35 = vpop.xlane.xlu2 %2992 }
 0x88a   : > { %4825 = vrcp.f32 %v2993_v35 }
 0x88b   : > { %4827 = vpow2.f32 %v2980_v10 }
 0x890   : > { %v4826_v17 = vpop.eup %4825 }
 0x891   : > { %v3005_v55 = vmul.f32 %v4826_v17, %v5978_v22  ;;  %v4828_v7 = vpop.eup %4827 }
 0x892   : > { %v2988_v58 = vsel %vm1653_vm2, %v4828_v7, 0.0 }
 0x893   : > { %v3009_v61 = vpack.c.bf16 %v3005_v55, %v3005_v55 }
 0x895   : > { %v3431_v14 = vsel %vm1653_vm2, %v3009_v61, 0 }
 0x896   : > { %3440 = vmatpush.bf16.xpose.msrb.mxu3 %v3431_v14 }
 0x8cd   : > { %2989 = vadd.xlane.f32.xlu0 %v2988_v58 }
 0x8f6   : > { %4733 = vxpose.binary.xlu0.c.b16.start.end [1/2] (short) (narrow) %v3202_v56, %v3198_v27, 16 }
 0x8fa   : > { %v4731_v16 = vpop.trf.xlu2 }
 0x8fb   : > { %v3356_v54 = vrot.slane %v4731_v16, 4 }
 0x902   : > { %v4732_v9 = vpop.trf.xlu2 }
 0x903   : > { %v3376_v33 = vrot.slane %v4732_v9, 4 }
 0x906   : > { %4737 = vxpose.xlu0.b32.start.end [1/1] (short) (narrow) %v4736_v46, 8 }
 0x908   : > { %v4725_v2 = vpop.trf.xlu0 }
 0x909   : > { %v3362_v49 = vrot.slane %v4725_v2, 4 }
 0x90a   : > { %v4728_v8 = vpop.trf.xlu1 }
 0x90b   : > { %v3363_v48 = vsel %vm768_vm15, %v3362_v49, %v4728_v8 }
 0x90c   : > { %v3367_v47 = vperm.slane %v3363_v48, %v5466_v45 }
 0x90e   : > { %v3368_v20 = vrot.slane %v3367_v47, 4 }
 0x910   : > { %v4726_v22 = vpop.trf.xlu0 }
 0x911   : > { %v3382_v43 = vrot.slane %v4726_v22, 4 }
 0x912   : > { %v4729_v50 = vpop.trf.xlu1 }
 0x913   : > { %v3383_v36 = vsel %vm768_vm15, %v3382_v43, %v4729_v50 }
 0x914   : > { %v3387_v26 = vperm.slane %v3383_v36, %v5466_v45 }
 0x916   : > { %v3388_v27 = vrot.slane %v3387_v26, 4 }
 0x940   : > { %v2990_v40 = vpop.xlane.xlu0 %2989 }
 0x941   : > { %4829 = vrcp.f32 %v2990_v40 }
 0x947   : > { %v4830_v41 = vpop.eup %4829 }
 0x948   : > { %v3004_v28 = vmul.f32 %v4830_v41, %v4828_v7 }
 0x94a   : > { %v3008_v23 = vpack.c.bf16 %v3004_v28, %v3004_v28 }
 0x94c   : > { %v3412_v53 = vsel %vm1653_vm2, %v3008_v23, 0 }
 0x94d   : > { %3421 = vmatpush.bf16.xpose.msrb.mxu2 %v3412_v53 }
 0x9a2   : > { %v4734_v46 = vpop.trf.xlu0 }
 0x9a3   : > { %v3357_v0 = vsel %vm768_vm15, %v3356_v54, %v4734_v46 }
 0x9a4   : > { %v3361_v57 = vperm.slane %v3357_v0, %v5466_v45 }
 0x9a6   : > { %v3369_v5 = vsel %vm768_vm15, %v3368_v20, %v3361_v57 }
 0x9a7   : > { %v3373_v52 = vperm.slane %v3369_v5, %v5472_v60 }
 0x9a9   : > { %v3374_v15 = vrot.slane %v3373_v52, 4  ;;  %v3399_v30 = vshrl.u32 %v3373_v52, 16 }
 0x9aa   : > { %v4735_v1 = vpop.trf.xlu0 }
 0x9ab   : > { %v3377_v21 = vsel %vm768_vm15, %v3376_v33, %v4735_v1  ;;  %v3375_v34 = vsel %vm768_vm15, 0, %v3374_v15 }
 0x9ac   : > { %v3381_v42 = vperm.slane %v3377_v21, %v5466_v45  ;;  %v3405_v6 = vshrl.u32 %v3375_v34, 16 }
 0x9ae   : > { %v3389_v13 = vsel %vm768_vm15, %v3388_v27, %v3381_v42 }
 0x9af   : > { %v3393_v3 = vperm.slane %v3389_v13, %v5472_v60 }
 0x9b1   : > { %v3394_v31 = vrot.slane %v3393_v3, 4  ;;  %v3400_v4 = vshrl.u32 %v3393_v3, 16  ;;  %v3398_v51 = vpack.i.b16 %v3393_v3, %v3373_v52 }
 0x9b2   : > { %v4738_v14 = vpop.trf.xlu0 }
 0x9b3   : > { %4384 = vmatmul.msk.bf16.vlgmr.msrb.gmra.mxu2 %vm1653_vm2, %v3398_v51  ;;  %v3401_v56 = vpack.i.b16 %v3400_v4, %v3399_v30  ;;  %v3395_v32 = vsel %vm768_vm15, 0, %v3394_v31  ;;  %v4739_v63 = vunpack.i.l.bf16 %v4738_v14 }
 0x9b4   : > { %v3404_v11 = vpack.i.b16 %v3395_v32, %v3375_v34  ;;  %v3406_v62 = vshrl.u32 %v3395_v32, 16 }
 0x9b5   : > { %4385 = vmatmul.msk.bf16.vlgmr.msrb.gmra.mxu3 %vm1653_vm2, %v3401_v56  ;;  %v2381_v58 = vrot.slane %v4739_v63, 4 }
 0x9b6   : > { %4386 = vmatmul.msk.bf16.vlgmr.msrb.gmra.mxu0 %vm1653_vm2, %v3404_v11  ;;  %v3407_v37 = vpack.i.b16 %v3406_v62, %v3405_v6 }
 0x9b8   : > { %4387 = vmatmul.msk.bf16.vlgmr.msra.gmra.mxu1 %vm1653_vm2, %v3407_v37 }
 0xa33   : > { %v3461_v44 = vpop.f32.mrf.mxu0 }
 0xa34   : > { %v4743_v59 = vpack.i.bf16 %v3461_v44, %v5949_v38  ;;  %v4742_v38 = vunpack.i.h.bf16 %v4738_v14 }
 0xa35   : > { %v3480_v19 = vpop.f32.mrf.mxu1 }
 0xa36   : > { %v3423_v18 = vpop.f32.mrf.mxu2  ;;  %4744 = vxpose.xlu2.b32.start.end [1/1] (short) (narrow) %v4743_v59, 8  ;;  %v2391_v28 = vrot.slane %v4742_v38, 4 }
 0xa37   : > { %v4750_v25 = vpack.i.bf16 %v3480_v19, %v3423_v18 }
 0xa38   : > { %v3442_v39 = vpop.f32.mrf.mxu3 }
 0xa39   : > { %4751 = vxpose.xlu1.b32.start.end [1/1] (short) (narrow) %v4750_v25, 8  ;;  %v4757_v35 = vpack.i.bf16 %v3442_v39, %v5957_v24 }
 0xa3b   : > { %v3463_v29 = vpop.f32.mrf.mxu0 }
 0xa3d   : > { %v3482_v17 = vpop.f32.mrf.mxu1 }
 0xa3e   : > { %v3425_v55 = vpop.f32.mrf.mxu2  ;;  %4758 = vxpose.xlu2.b32.start.end [1/1] (short) (narrow) %v4757_v35, 8 }
 0xa40   : > { %v3444_v61 = vpop.f32.mrf.mxu3 }
 0xacf   : > { %v4745_v10 = vpop.trf.xlu2 }
 0xad0   : > { %v4746_v7 = vunpack.i.l.bf16 %v4745_v10  ;;  %v4749_v53 = vunpack.i.h.bf16 %v4745_v10 }
 0xad2   : > { %v2379_v2 = vrot.slane %v4746_v7, 4  ;;  %v2382_v40 = vsel %vm768_vm15, %v4746_v7, %v2381_v58  ;;  %v3612_v50 = vrot.slane %v4749_v53, 4 }
 0xad3   : > { %v2390_v24 = vperm.slane %v2382_v40, %v5466_v45 }
 0xad4   : > { %v2380_v22 = vsel %vm768_vm15, %v2379_v2, %v4739_v63 }
 0xad5   : > { %v2386_v41 = vperm.slane %v2380_v22, %v5466_v45  ;;  %v2417_v47 = vrot.slane %v2390_v24, 4 }
 0xad7   : > { %v4759_v23 = vpop.trf.xlu2  ;;  %v2405_v49 = vrot.slane %v2386_v41, 4 }
 0xad8   : > { %v4760_v8 = vunpack.i.l.bf16 %v4759_v23  ;;  %v4763_v16 = vunpack.i.h.bf16 %v4759_v23 }
 0xada   : > { %v2392_v48 = vsel %vm768_vm15, %v2391_v28, %v4760_v8  ;;  %v2393_v54 = vrot.slane %v4760_v8, 4  ;;  %v3626_v0 = vrot.slane %v4763_v16, 4 }
 0xadb   : > { %v2398_v43 = vperm.slane %v2392_v48, %v5466_v45 }
 0xadc   : > { %v2394_v46 = vsel %vm768_vm15, %v4742_v38, %v2393_v54 }
 0xadd   : > { %v2402_v20 = vperm.slane %v2394_v46, %v5466_v45  ;;  %v2403_v57 = vrot.slane %v2398_v43, 4  ;;  %v2406_v9 = vsel %vm768_vm15, %v2398_v43, %v2405_v49  ;;  %v4752_v36 = vpop.trf.xlu1 }
 0xade   : > { %v2414_v5 = vperm.slane %v2406_v9, %v5472_v60  ;;  %v4756_v33 = vunpack.i.h.bf16 %v4752_v36  ;;  %v4753_v21 = vunpack.i.l.bf16 %v4752_v36 }
 0xadf   : > { %v2404_v26 = vsel %vm768_vm15, %v2403_v57, %v2386_v41  ;;  %v2415_v52 = vrot.slane %v2402_v20, 4  ;;  %v2418_v1 = vsel %vm768_vm15, %v2402_v20, %v2417_v47 }
 0xae0   : > { %v2410_v27 = vperm.slane %v2404_v26, %v5472_v60  ;;  %v2426_v42 = vperm.slane %v2418_v1, %v5472_v60  ;;  %v2429_v15 = vrot.slane %v2414_v5, 4  ;;  %v3624_v13 = vrot.slane %v4756_v33, 4 }
 0xae1   : > { %v2416_v3 = vsel %vm768_vm15, %v2415_v52, %v2390_v24  ;;  %v3613_v30 = vsel %vm768_vm15, %v3612_v50, %v4753_v21  ;;  %v3614_v31 = vrot.slane %v4753_v21, 4  ;;  %v3627_v4 = vsel %vm768_vm15, %v4756_v33, %v3626_v0 }
 0xae2   : > { %v2422_v51 = vperm.slane %v2416_v3, %v5472_v60  ;;  %v2427_v34 = vrot.slane %v2410_v27, 4  ;;  %v2430_v56 = vsel %vm768_vm15, 0.0, %v2429_v15  ;;  %v2433_v32 = vrot.slane %v2426_v42, 4 }
 0xae3   : > { %v3673_v11 = vrot.slane %v2430_v56, 4  ;;  %v3615_v6 = vsel %vm768_vm15, %v4749_v53, %v3614_v31  ;;  %v3619_v62 = vperm.slane %v3613_v30, %v5466_v45  ;;  %v3625_v37 = vsel %vm768_vm15, %v3624_v13, %v4763_v16 }
 0xae4   : > { %v3623_v44 = vperm.slane %v3615_v6, %v5466_v45  ;;  %v3631_v59 = vperm.slane %v3625_v37, %v5466_v45  ;;  %v3635_v19 = vperm.slane %v3627_v4, %v5466_v45  ;;  %v2428_v18 = vsel %vm768_vm15, 0.0, %v2427_v34 }
 0xae5   : > { %v3638_v25 = vrot.slane %v3619_v62, 4  ;;  %v2431_v39 = vrot.slane %v2422_v51, 4  ;;  %v2434_v29 = vsel %vm768_vm15, 0.0, %v2433_v32  ;;  %v3668_v35 = vsel %vm768_vm15, %v2429_v15, %v2410_v27 }
 0xae6   : > { %v3636_v17 = vrot.slane %v3631_v59, 4  ;;  %v3648_v55 = vrot.slane %v3635_v19, 4  ;;  %v3650_v61 = vrot.slane %v3623_v44, 4  ;;  %v3672_v14 = vperm.slane %v3668_v35, %v5466_v45 }
 0xae7   : > { %v3639_v63 = vsel %vm768_vm15, %v3631_v59, %v3638_v25  ;;  %v2432_v10 = vsel %vm768_vm15, 0.0, %v2431_v39  ;;  %v3674_v7 = vsel %vm768_vm15, %v3673_v11, %v2428_v18  ;;  %v3679_v58 = vsel %vm768_vm15, %v2433_v32, %v2422_v51 }
 0xae8   : > { %v3637_v2 = vsel %vm768_vm15, %v3636_v17, %v3619_v62  ;;  %v3647_v38 = vperm.slane %v3639_v63, %v5472_v60  ;;  %v3649_v22 = vsel %vm768_vm15, %v3648_v55, %v3623_v44  ;;  %v3651_v40 = vsel %vm768_vm15, %v3635_v19, %v3650_v61 }
 0xae9   : > { %v3643_v41 = vperm.slane %v3637_v2, %v5472_v60  ;;  %v3655_v28 = vperm.slane %v3649_v22, %v5472_v60  ;;  %v3659_v24 = vperm.slane %v3651_v40, %v5472_v60  ;;  %v3678_v23 = vperm.slane %v3674_v7, %v5466_v45 }
 0xaea   : > { %v3662_v53 = vrot.slane %v3647_v38, 4  ;;  %v3683_v8 = vperm.slane %v3679_v58, %v5466_v45  ;;  %v3684_v49 = vrot.slane %v2434_v29, 4  ;;  %v3692_v16 = vrot.slane %v3672_v14, 4 }
 0xaeb   : > { %v3660_v48 = vrot.slane %v3643_v41, 4  ;;  %v3666_v54 = vrot.slane %v3659_v24, 4  ;;  %v3664_v47 = vrot.slane %v3655_v28, 4  ;;  %v3690_v43 = vrot.slane %v3678_v23, 4 }
 0xaec   : > { %v3663_v50 = vsel %vm768_vm15, 0.0, %v3662_v53  ;;  %v3685_v46 = vsel %vm768_vm15, %v3684_v49, %v2432_v10  ;;  %v3693_v0 = vsel %vm768_vm15, %v3678_v23, %v3692_v16  ;;  %v3704_v20 = vrot.slane %v3683_v8, 4  ;;  %v4435_v16 = vld [vmem:[%s5405_s3] sm:$0xff] }
 0xaed   : > { %v3667_v57 = vsel %vm768_vm15, 0.0, %v3666_v54  ;;  %v3744_v9 = vrot.slane %v3663_v50, 4  ;;  %v3661_v36 = vsel %vm768_vm15, 0.0, %v3660_v48  ;;  %v3665_v33 = vsel %vm768_vm15, 0.0, %v3664_v47 }
 0xaee   : > { %v3755_v5 = vrot.slane %v3667_v57, 4  ;;  %v3689_v26 = vperm.slane %v3685_v46, %v5466_v45  ;;  %v3739_v52 = vsel %vm768_vm15, %v3662_v53, %v3643_v41  ;;  %v3701_v1 = vperm.slane %v3693_v0, %v5472_v60 }
 0xaef   : > { %v3743_v21 = vperm.slane %v3739_v52, %v5466_v45  ;;  %v3745_v27 = vsel %vm768_vm15, %v3744_v9, %v3661_v36  ;;  %v3750_v42 = vsel %vm768_vm15, %v3666_v54, %v3655_v28  ;;  %v3691_v30 = vsel %vm768_vm15, %v3690_v43, %v3672_v14 }
 0xaf0   : > { %v3705_v15 = vsel %vm768_vm15, %v3689_v26, %v3704_v20  ;;  %v3749_v13 = vperm.slane %v3745_v27, %v5466_v45  ;;  %v3754_v3 = vperm.slane %v3750_v42, %v5466_v45  ;;  %v3756_v4 = vsel %vm768_vm15, %v3755_v5, %v3665_v33 }
 0xaf1   : > { %v3713_v31 = vperm.slane %v3705_v15, %v5472_v60  ;;  %v3763_v51 = vrot.slane %v3743_v21, 4  ;;  %v3760_v34 = vperm.slane %v3756_v4, %v5466_v45  ;;  %v3702_v32 = vrot.slane %v3689_v26, 4  ;;  %v4839_v15 = vld [vmem:[%s5423_s15] sm:$0xff]  ;;  %v4840_v4 = vld [vmem:[%s5423_s15 + $0x8] sm:$0xff] }
 0xaf2   : > { %v3775_v56 = vrot.slane %v3754_v3, 4  ;;  %v3761_v11 = vrot.slane %v3749_v13, 4  ;;  %v3720_v6 = vrot.slane %v3701_v1, 4  ;;  %v3697_v44 = vperm.slane %v3691_v30, %v5472_v60 }
 0xaf3   : > { %v3764_v62 = vsel %vm768_vm15, %v3749_v13, %v3763_v51  ;;  %v3718_v37 = vrot.slane %v3713_v31, 4  ;;  %v3703_v18 = vsel %vm768_vm15, %v3702_v32, %v3683_v8  ;;  %v3773_v17 = vrot.slane %v3760_v34, 4 }
 0xaf4   : > { %v3772_v59 = vperm.slane %v3764_v62, %v5472_v60  ;;  %v3776_v19 = vsel %vm768_vm15, %v3760_v34, %v3775_v56  ;;  %v3762_v25 = vsel %vm768_vm15, %v3761_v11, %v3743_v21  ;;  %v3709_v45 = vperm.slane %v3703_v18, %v5472_v60  ;;  %v4784_v21 = vld [vmem:[%s5417_s5 + $0x2] ss:$0 sm:$0xff] }
 0xaf5   : > { %v3784_v39 = vperm.slane %v3776_v19, %v5472_v60  ;;  %v3768_v29 = vperm.slane %v3762_v25, %v5472_v60  ;;  %v3716_v14 = vrot.slane %v3697_v44, 4  ;;  %v3721_v10 = vsel %vm768_vm15, %v3713_v31, %v3720_v6 }
 0xaf6   : > { %v3791_v35 = vrot.slane %v3772_v59, 4  ;;  %v3714_v61 = vrot.slane %v3709_v45, 4  ;;  %v3719_v58 = vsel %vm768_vm15, %v3718_v37, %v3701_v1  ;;  %v3774_v2 = vsel %vm768_vm15, %v3773_v17, %v3754_v3 }
 0xaf7   : > { %v3789_v55 = vrot.slane %v3784_v39, 4  ;;  %v3787_v63 = vrot.slane %v3768_v29, 4  ;;  %v3780_v40 = vperm.slane %v3774_v2, %v5472_v60  ;;  %v3717_v24 = vsel %vm768_vm15, %v3709_v45, %v3716_v14  ;;  %v4436_v60 = vld [vmem:[%s5405_s3 + $0x8] sm:$0xff] }
 0xaf8   : > { %v3792_v7 = vsel %vm768_vm15, %v3784_v39, %v3791_v35  ;;  %v3715_v41 = vsel %vm768_vm15, %v3714_v61, %v3697_v44  ;;  %3835 = vmatpush.bf16.msra.mxu2 %v4436_v60  ;;  %v4438_v45 = vld [vmem:[%s6322_s25 + $0x8] sm:$0xff] }
 0xaf9   : > { %v4774_v38 = vpack.i.bf16 %v3792_v7, %v3721_v10  ;;  %v3790_v22 = vsel %vm768_vm15, %v3789_v55, %v3772_v59  ;;  %v3785_v23 = vrot.slane %v3780_v40, 4  ;;  %v3788_v53 = vsel %vm768_vm15, %v3780_v40, %v3787_v63  ;;  %3963 = vmatpush.bf16.msra.mxu3 %v4438_v45  ;;  %v4441_v45 = vld [vmem:[%s5412_s18 + $0x10] sm:$0xff] }
 0xafa   : > { %v4769_v28 = vpack.i.bf16 %v3790_v22, %v3719_v58  ;;  %v4764_v8 = vpack.i.bf16 %v3788_v53, %v3717_v24 }
 0xafb   : > { %4775 = vrot.lane.b32.xlu1 %v4774_v38, %s5116_s20  ;;  %v3786_v49 = vsel %vm768_vm15, %v3785_v23, %v3768_v29  ;;  %v4437_v29 = vld [vmem:[%s6323_s12] sm:$0xff] }
 0xafc   : > { %4770 = vrot.lane.b32.xlu0 %v4769_v28, %s5117_s28  ;;  %4765 = vrot.lane.b32.xlu2 %v4764_v8, %s5118_s10 }
 0xafd   : > { %3836 = vmatpush.bf16.msra.mxu2 %v4435_v16  ;;  %3964 = vmatpush.bf16.msra.mxu3 %v4437_v29  ;;  %v4440_v29 = vld [vmem:[%s5412_s18 + $0x8] sm:$0xff] }
 0xb56   : > { %v4766_v48 = vpop.permute.xlu2 %4765 }
 0xb57   : > { %v4768_v54 = vunpack.i.h.bf16 %v4766_v48  ;;  %v4767_v47 = vunpack.i.l.bf16 %v4766_v48 }
 0xb59   : > { %v3805_v20 = vsel %vm1653_vm2, %v3786_v49, %v4768_v54  ;;  %v3734_v57 = vsel %vm1653_vm2, %v3715_v41, %v4767_v47  ;;  %vm4007_vm2 = vcmask 523264  }
 0xb6d   : > { %v4776_v43 = vpop.permute.xlu1 %4775 }
 0xb6e   : > { %v4771_v50 = vpop.permute.xlu0 %4770  ;;  %v4778_v9 = vunpack.i.h.bf16 %v4776_v43  ;;  %v4777_v36 = vunpack.i.l.bf16 %v4776_v43 }
 0xb6f   : > { %v4773_v46 = vunpack.i.h.bf16 %v4771_v50  ;;  %v4772_v0 = vunpack.i.l.bf16 %v4771_v50 }
 0xb71   : > { %v3736_v5 = vsel %vm3735_vm3, %v3734_v57, %v4772_v0  ;;  %v3806_v33 = vsel %vm3735_vm3, %v3805_v20, %v4773_v46 }
 0xb72   : > { %v3738_v26 = vsel %vm3737_vm4, %v3736_v5, %v4777_v36  ;;  %v3807_v52 = vsel %vm3737_vm4, %v3806_v33, %v4778_v9 }
 0xb73   : > { %v3808_v1 = vpack.c.bf16 %v3807_v52, %v3738_v26 }
 0xb75   : > { %4396 = vmatmul.msk.bf16.vlgmr.msra.gmra.mxu2 %vm613_vm1, %v3808_v1 }
 0xbf8   : > { %v3838_v27 = vpop.f32.mrf.mxu2 }
 0xbf9   : > { %v3839_v42 = vadd.f32 %v4784_v21, %v3838_v27 }
 0xbfb   : > { %v6130_v13 = vadd.f32 %v4839_v15, %v3839_v42 }
 0xbfd   : > { %v3845_v3 = vsel %vm613_vm1, %v6130_v13, 0.0 }
 0xbfe   : > { %3846 = vadd.xlane.f32.xlu1 %v3845_v3 }
 0xc00   : > { %v3840_v30 = vpop.f32.mrf.mxu2 }
 0xc01   : > { %v3841_v31 = vadd.f32 %v4784_v21, %v3840_v30  ;;  %v4785_v21 = vld [vmem:[%s5417_s5 + $0x3] ss:$0 sm:$0xff] }
 0xc03   : > { %v6135_v51 = vadd.f32 %v4840_v4, %v3841_v31  ;;  %v4786_v31 = vld [vmem:[%s5417_s5 + $0x4] ss:$0 sm:$0xff] }
 0xc05   : > { %v3848_v34 = vsel %vm613_vm1, %v6135_v51, 0.0 }
 0xc06   : > { %3849 = vadd.xlane.f32.xlu2 %v3848_v34 }
 0xc71   : > { %v3847_v56 = vpop.xlane.xlu1 %3846 }
 0xc72   : > { %v3851_v32 = vmul.f32 %v3847_v56, %v5432_v12 }
 0xc74   : > { %v6141_v11 = vsub.f32 %v6130_v13, %v3851_v32 }
 0xc76   : > { %v3855_v6 = vmul.f32 %v6141_v11, %v6141_v11 }
 0xc78   : > { %v3857_v62 = vsel %vm613_vm1, %v3855_v6, 0.0 }
 0xc79   : > { %v3850_v37 = vpop.xlane.xlu2 %3849  ;;  %3858 = vadd.xlane.f32.xlu0 %v3857_v62 }
 0xc7a   : > { %v3852_v44 = vmul.f32 %v3850_v37, %v5432_v12 }
 0xc7c   : > { %v6148_v59 = vsub.f32 %v6135_v51, %v3852_v44 }
 0xc7e   : > { %v3856_v19 = vmul.f32 %v6148_v59, %v6148_v59 }
 0xc80   : > { %v3860_v18 = vsel %vm613_vm1, %v3856_v19, 0.0 }
 0xc81   : > { %3861 = vadd.xlane.f32.xlu1 %v3860_v18 }
 0xcec   : > { %v3859_v25 = vpop.xlane.xlu0 %3858 }
 0xced   : > { %v3863_v39 = vmul.f32 0.032258064, %v3859_v25 }
 0xcef   : > { %4831 = vrsqrt.f32 %v3863_v39  ;;  %vm3872_vm5 = vcmp.eq.f32.partialorder %v3863_v39, inf  ;;  %v3875_v40 = vand.u32 2147483648, %v3863_v39  ;;  %vm3874_vm6 = vcmp.eq.f32.partialorder %v3863_v39, 0.0 }
 0xcf4   : > { %v3862_v35 = vpop.xlane.xlu1 %3861 }
 0xcf5   : > { %v4832_v17 = vpop.eup %4831  ;;  %v3864_v55 = vmul.f32 0.032258064, %v3862_v35 }
 0xcf6   : > { %v3866_v61 = vmul.f32 %v4832_v17, %v3863_v39 }
 0xcf7   : > { %4833 = vrsqrt.f32 %v3864_v55  ;;  %vm3884_vm7 = vcmp.eq.f32.partialorder %v3864_v55, inf  ;;  %v3887_v60 = vand.u32 2147483648, %v3864_v55  ;;  %vm3886_vm8 = vcmp.eq.f32.partialorder %v3864_v55, 0.0 }
 0xcf8   : > { %v3867_v14 = vmul.f32 %v4832_v17, %v3866_v61 }
 0xcfa   : > { %v3868_v63 = vmul.f32 0.5, %v3867_v14 }
 0xcfc   : > { %v3869_v10 = vsub.f32 1.5, %v3868_v63 }
 0xcfd   : > { %v4834_v7 = vpop.eup %4833 }
 0xcfe   : > { %v3870_v58 = vmul.f32 %v4832_v17, %v3869_v10  ;;  %v3878_v2 = vmul.f32 %v4834_v7, %v3864_v55  ;;  %v4787_v17 = vld [vmem:[%s593_s17] ss:$0 sm:$0xff]  ;;  %s6325_s17 = sld [smem:[#allocation19_spill]] }
 0xd00   : > { %v3871_v38 = vmul.f32 %v3870_v58, %v3863_v39  ;;  %v3879_v22 = vmul.f32 %v4834_v7, %v3878_v2  ;;  %v4788_v58 = vld [vmem:[%s5417_s5 + $0x5] ss:$0 sm:$0xff] }
 0xd02   : > { %v3873_v41 = vsel %vm3872_vm5, %v3863_v39, %v3871_v38  ;;  %v3880_v28 = vmul.f32 0.5, %v3879_v22  ;;  %v4442_v39 = vld [vmem:[%s5412_s18 + $0x18] sm:$0xff] }
 0xd03   : > { %v3876_v24 = vsel %vm3874_vm6, %v3875_v40, %v3873_v41  ;;  %4015 = vmatpush.bf16.msra.mxu0 %v4442_v39 }
 0xd04   : > { %v3889_v23 = vadd.f32 1e-06, %v3876_v24  ;;  %v3881_v53 = vsub.f32 1.5, %v3880_v28  ;;  %p4423_p12 = scmp.ne.s32.totalorder %s6325_s17, 1 }
 0xd06   : > { %4835 = vrcp.f32 %v3889_v23  ;;  %v3882_v8 = vmul.f32 %v4834_v7, %v3881_v53  ;;  %v3902_v46 = vand.u32 2147483648, %v3889_v23  ;;  %v3900_v20 = vand.u32 2147483647, %v3889_v23 }
 0xd07   : > { %vm3896_vm10 = vweird.f32 %v3889_v23  ;;  %4016 = vmatpush.bf16.msra.mxu0 %v4441_v45 }
 0xd08   : > { %v3883_v49 = vmul.f32 %v3882_v8, %v3864_v55  ;;  %v3903_v36 = vor.u32 1.1754944e-38, %v3902_v46  ;;  %vm3901_vm12 = vcmp.eq.f32.partialorder %v3900_v20, 8.507059e+37 }
 0xd0a   : > { %v3885_v16 = vsel %vm3884_vm7, %v3864_v55, %v3883_v49 }
 0xd0b   : > { %v3888_v48 = vsel %vm3886_vm8, %v3887_v60, %v3885_v16  ;;  %4017 = vmatpush.bf16.msra.mxu0 %v4440_v29 }
 0xd0c   : > { %v4836_v54 = vpop.eup %4835  ;;  %v3890_v47 = vadd.f32 1e-06, %v3888_v48 }
 0xd0d   : > { %v3892_v43 = vmul.f32 %v4836_v54, %v3889_v23  ;;  %vm3897_vm9 = vweird.f32 %v4836_v54 }
 0xd0e   : > { %4837 = vrcp.f32 %v3890_v47  ;;  %vm3898_vm11 = vmor %vm3896_vm10, %vm3897_vm9  ;;  %v3917_v27 = vand.u32 2147483648, %v3890_v47  ;;  %v3915_v15 = vand.u32 2147483647, %v3890_v47  ;;  %vm3911_vm14 = vweird.f32 %v3890_v47 }
 0xd0f   : > { %v3893_v50 = vsub.f32 1.0, %v3892_v43 }
 0xd10   : > { %v3918_v4 = vor.u32 1.1754944e-38, %v3917_v27  ;;  %vm3916_vm0 = vcmp.eq.f32.partialorder %v3915_v15, 8.507059e+37 }
 0xd11   : > { %v3894_v0 = vmul.f32 %v4836_v54, %v3893_v50 }
 0xd13   : > { %v3895_v57 = vadd.f32 %v4836_v54, %v3894_v0 }
 0xd14   : > { %v4838_v9 = vpop.eup %4837 }
 0xd15   : > { %v3899_v5 = vsel %vm3898_vm11, %v4836_v54, %v3895_v57  ;;  %v3907_v33 = vmul.f32 %v4838_v9, %v3890_v47  ;;  %vm3912_vm13 = vweird.f32 %v4838_v9 }
 0xd16   : > { %v3904_v26 = vsel %vm3901_vm12, %v3903_v36, %v3899_v5  ;;  %vm3913_vm15 = vmor %vm3911_vm14, %vm3912_vm13 }
 0xd17   : > { %v3905_v52 = vmul.f32 %v3904_v26, %v6141_v11  ;;  %v3908_v1 = vsub.f32 1.0, %v3907_v33 }
 0xd19   : > { %v3909_v42 = vmul.f32 %v4838_v9, %v3908_v1  ;;  %v3922_v30 = vmul.f32 %v4785_v21, %v3905_v52 }
 0xd1b   : > { %v3910_v3 = vadd.f32 %v4838_v9, %v3909_v42  ;;  %v3925_v11 = vadd.f32 %v4786_v31, %v3922_v30 }
 0xd1d   : > { %v3914_v34 = vsel %vm3913_vm15, %v4838_v9, %v3910_v3  ;;  %v3927_v37 = vpack.c.bf16 %v3925_v11, %v3925_v11 }
 0xd1e   : > { %v3919_v56 = vsel %vm3916_vm0, %v3918_v4, %v3914_v34 }
 0xd1f   : > { %v3920_v32 = vmul.f32 %v3919_v56, %v6148_v59  ;;  %v3939_v19 = vunpack.c.l.b16 %v3927_v37  ;;  %v4439_v59 = vld [vmem:[%s5412_s18] sm:$0xff] }
 0xd20   : > { %4018 = vmatpush.bf16.msra.mxu0 %v4439_v59 }
 0xd21   : > { %v3923_v6 = vmul.f32 %v4785_v21, %v3920_v32 }
 0xd23   : > { %v3926_v62 = vadd.f32 %v4786_v31, %v3923_v6 }
 0xd25   : > { %v3928_v44 = vpack.c.bf16 %v3926_v62, %v3926_v62 }
 0xd27   : > { %v3940_v18 = vunpack.c.l.b16 %v3928_v44 }
 0xd29   : > { %v3941_v25 = vpack.c.b16 %v3940_v18, %v3939_v19 }
 0xd2b   : > { %4405 = vmatmul.msk.bf16.vlgmr.msra.gmra.mxu3 %vm613_vm1, %v3941_v25 }
 0xdae   : > { %v3966_v35 = vpop.f32.mrf.mxu3 }
 0xdaf   : > { %v3967_v55 = vadd.f32 %v4787_v17, %v3966_v35 }
 0xdb1   : > { %v3971_v63 = vmax.f32 %v3967_v55, 0.0 }
 0xdb6   : > { %v3968_v61 = vpop.f32.mrf.mxu3 }
 0xdb7   : > { %v3969_v14 = vadd.f32 %v4787_v17, %v3968_v61 }
 0xdb9   : > { %v3972_v10 = vmax.f32 %v3969_v14, 0.0 }
 0xdbb   : > { %v3973_v7 = vpack.c.bf16 %v3972_v10, %v3971_v63 }
 0xdbd   : > { %4422 = vmatmul.msk.bf16.vlgmr.msra.gmra.mxu0 %vm4007_vm2, %v3973_v7 }
 0xe3a   : > { %v4020_v2 = vpop.f32.mrf.mxu0 }
 0xe3b   : > { %v4021_v38 = vadd.f32 %v4788_v58, %v4020_v2 }
 0xe3d   : > { %v4025_v22 = vadd.f32 %v4021_v38, %v6130_v13 }
 0xe3f   : > { %4027 = vst.msk [vmem:[%s5423_s15] sm:$0xff] %vm613_vm1, %v4025_v22 }
 0xe42   : > { %v4022_v40 = vpop.f32.mrf.mxu0 }
 0xe43   : > { %v4023_v41 = vadd.f32 %v4788_v58, %v4022_v40  ;;  %4032 = sbr.rel (%p4423_p12) target bundleno = 3953 (0xf71), region = 84 }
 0xe45   : > { %v4026_v28 = vadd.f32 %v4023_v41, %v6135_v51 }
 0xe47   : > { %4028 = vst.msk [vmem:[%s5423_s15 + $0x8] sm:$0xff] %vm613_vm1, %v4026_v28 }
 0xe48   : > { %v4035_v24 = vsel %vm613_vm1, %v4025_v22, 0.0  ;;  %v4038_v23 = vsel %vm613_vm1, %v4026_v28, 0.0  ;;  %v4841_v59 = vld [vmem:[#allocation8] ss:$0 sm:$0xff]  ;;  %v4842_v61 = vld [vmem:[#allocation8 + $0x1] ss:$0 sm:$0xff] }
 0xe49   : > { %4036 = vadd.xlane.f32.xlu0 %v4035_v24 }
 0xe51   : > { %4039 = vadd.xlane.f32.xlu0 %v4038_v23 }
 0xebc   : > { %v4037_v53 = vpop.xlane.xlu0 %4036 }
 0xebd   : > { %v4041_v13 = vmul.f32 %v4037_v53, %v5432_v12 }
 0xebf   : > { %v4043_v8 = vsub.f32 %v4025_v22, %v4041_v13 }
 0xec1   : > { %v4045_v49 = vmul.f32 %v4043_v8, %v4043_v8 }
 0xec3   : > { %v4047_v60 = vsel %vm613_vm1, %v4045_v49, 0.0 }
 0xec4   : > { %4048 = vadd.xlane.f32.xlu1 %v4047_v60  ;;  %v4040_v51 = vpop.xlane.xlu0 %4039 }
 0xec5   : > { %v4042_v16 = vmul.f32 %v4040_v51, %v5432_v12 }
 0xec7   : > { %v6184_v48 = vsub.f32 %v4026_v28, %v4042_v16 }
 0xec9   : > { %v4046_v54 = vmul.f32 %v6184_v48, %v6184_v48 }
 0xecb   : > { %v4050_v47 = vsel %vm613_vm1, %v4046_v54, 0.0 }
 0xecc   : > { %4051 = vadd.xlane.f32.xlu1 %v4050_v47 }
 0xf37   : > { %v4049_v43 = vpop.xlane.xlu1 %4048 }
 0xf38   : > { %v4053_v50 = vmul.f32 0.032258064, %v4049_v43 }
 0xf3a   : > { %4843 = vrsqrt.f32 %v4053_v50  ;;  %vm4062_vm3 = vcmp.eq.f32.partialorder %v4053_v50, inf  ;;  %v4065_v21 = vand.u32 2147483648, %v4053_v50  ;;  %vm4064_vm4 = vcmp.eq.f32.partialorder %v4053_v50, 0.0 }
 0xf3f   : > { %v4052_v46 = vpop.xlane.xlu1 %4051 }
 0xf40   : > { %v4844_v0 = vpop.eup %4843  ;;  %v4054_v20 = vmul.f32 0.032258064, %v4052_v46 }
 0xf41   : > { %v4056_v57 = vmul.f32 %v4844_v0, %v4053_v50 }
 0xf42   : > { %4845 = vrsqrt.f32 %v4054_v20  ;;  %vm4074_vm5 = vcmp.eq.f32.partialorder %v4054_v20, inf  ;;  %v4077_v34 = vand.u32 2147483648, %v4054_v20  ;;  %vm4076_vm6 = vcmp.eq.f32.partialorder %v4054_v20, 0.0 }
 0xf43   : > { %v4057_v9 = vmul.f32 %v4844_v0, %v4056_v57 }
 0xf45   : > { %v4058_v36 = vmul.f32 0.5, %v4057_v9 }
 0xf47   : > { %v4059_v5 = vsub.f32 1.5, %v4058_v36 }
 0xf48   : > { %v4846_v12 = vpop.eup %4845 }
 0xf49   : > { %v4060_v33 = vmul.f32 %v4844_v0, %v4059_v5  ;;  %v4068_v26 = vmul.f32 %v4846_v12, %v4054_v20 }
 0xf4b   : > { %v4061_v52 = vmul.f32 %v4060_v33, %v4053_v50  ;;  %v4069_v1 = vmul.f32 %v4846_v12, %v4068_v26 }
 0xf4d   : > { %v4063_v27 = vsel %vm4062_vm3, %v4053_v50, %v4061_v52  ;;  %v4070_v42 = vmul.f32 0.5, %v4069_v1 }
 0xf4e   : > { %v4066_v15 = vsel %vm4064_vm4, %v4065_v21, %v4063_v27 }
 0xf4f   : > { %v4079_v3 = vadd.f32 1e-06, %v4066_v15  ;;  %v4071_v30 = vsub.f32 1.5, %v4070_v42 }
 0xf51   : > { %4847 = vrcp.f32 %v4079_v3  ;;  %v4072_v31 = vmul.f32 %v4846_v12, %v4071_v30  ;;  %v4092_v44 = vand.u32 2147483648, %v4079_v3  ;;  %v4090_v18 = vand.u32 2147483647, %v4079_v3 }
 0xf52   : > { %vm4086_vm8 = vweird.f32 %v4079_v3 }
 0xf53   : > { %v4073_v4 = vmul.f32 %v4072_v31, %v4054_v20  ;;  %v4093_v39 = vor.u32 1.1754944e-38, %v4092_v44  ;;  %vm4091_vm10 = vcmp.eq.f32.partialorder %v4090_v18, 8.507059e+37 }
 0xf55   : > { %v4075_v56 = vsel %vm4074_vm5, %v4054_v20, %v4073_v4 }
 0xf56   : > { %v4078_v11 = vsel %vm4076_vm6, %v4077_v34, %v4075_v56 }
 0xf57   : > { %v4848_v32 = vpop.eup %4847  ;;  %v4080_v62 = vadd.f32 1e-06, %v4078_v11 }
 0xf58   : > { %v4082_v6 = vmul.f32 %v4848_v32, %v4079_v3  ;;  %vm4087_vm7 = vweird.f32 %v4848_v32 }
 0xf59   : > { %4849 = vrcp.f32 %v4080_v62  ;;  %vm4088_vm9 = vmor %vm4086_vm8, %vm4087_vm7  ;;  %v4107_v10 = vand.u32 2147483648, %v4080_v62  ;;  %v4105_v58 = vand.u32 2147483647, %v4080_v62  ;;  %vm4101_vm12 = vweird.f32 %v4080_v62 }
 0xf5a   : > { %v4083_v37 = vsub.f32 1.0, %v4082_v6 }
 0xf5b   : > { %v4108_v22 = vor.u32 1.1754944e-38, %v4107_v10  ;;  %vm4106_vm14 = vcmp.eq.f32.partialorder %v4105_v58, 8.507059e+37 }
 0xf5c   : > { %v4084_v19 = vmul.f32 %v4848_v32, %v4083_v37 }
 0xf5e   : > { %v4085_v25 = vadd.f32 %v4848_v32, %v4084_v19 }
 0xf5f   : > { %v4850_v45 = vpop.eup %4849 }
 0xf60   : > { %v4089_v29 = vsel %vm4088_vm9, %v4848_v32, %v4085_v25  ;;  %v4097_v17 = vmul.f32 %v4850_v45, %v4080_v62  ;;  %vm4102_vm11 = vweird.f32 %v4850_v45 }
 0xf61   : > { %v4094_v35 = vsel %vm4091_vm10, %v4093_v39, %v4089_v29  ;;  %vm4103_vm13 = vmor %vm4101_vm12, %vm4102_vm11 }
 0xf62   : > { %v4095_v55 = vmul.f32 %v4094_v35, %v4043_v8  ;;  %v4098_v14 = vsub.f32 1.0, %v4097_v17 }
 0xf64   : > { %v4112_v63 = vmul.f32 %v4841_v59, %v4095_v55  ;;  %v4099_v7 = vmul.f32 %v4850_v45, %v4098_v14 }
 0xf66   : > { %v4115_v2 = vadd.f32 %v4842_v61, %v4112_v63  ;;  %v4100_v38 = vadd.f32 %v4850_v45, %v4099_v7 }
 0xf68   : > { %4117 = vst.msk [vmem:[%s5423_s15] sm:$0xff] %vm613_vm1, %v4115_v2  ;;  %v4104_v40 = vsel %vm4103_vm13, %v4850_v45, %v4100_v38 }
 0xf69   : > { %v4109_v41 = vsel %vm4106_vm14, %v4108_v22, %v4104_v40 }
 0xf6a   : > { %v4110_v28 = vmul.f32 %v4109_v41, %v6184_v48 }
 0xf6c   : > { %v4113_v24 = vmul.f32 %v4841_v59, %v4110_v28 }
 0xf6e   : > { %v4116_v23 = vadd.f32 %v4842_v61, %v4113_v24 }
 0xf70   : > { %4118 = vst.msk [vmem:[%s5423_s15 + $0x8] sm:$0xff] %vm613_vm1, %v4116_v23 }
 0xf71 PF: > { %s6326_s18 = sld [smem:[#allocation20_spill]]  ;;  %s4132_s24 = sshll.u32 %s5423_s15, 4  ;;  %s4133_s24 = int_to_ptr.vmem [resolvable:$true] %s4132_s24 }
 0xf72   : > { %s6328_s27 = sld [smem:[#allocation39_spill]]  ;;  %s4120_s5 = scalar_lea.sflag [#allocation4], %s5362_s4 }
 0xf77   : > { %s4443_s2 = sshll.u32 %s6326_s18, 4 }
 0xf78   : > { %s4131_s6 = scalar_lea.hbm %s6328_s27, %s4443_s2  ;;  %s4991_s7 = scalar_lea.hbm %s6328_s27, 32 }
 0xf79   : > { %s4134_s9 = sshll.u32 %s4131_s6, 4  ;;  %s4135_s9 = int_to_ptr.hbm [resolvable:$true] %s4134_s9 }
 0xf7a   : > { %s4985_s11 = sshra.s32 %s4135_s9, 4  ;;  %s4986_s11 = int_to_ptr.hbm [resolvable:$true] %s4985_s11 }
 0xf7b   : > { %s4987_s8 = scalar_lea.hbm %s4986_s11, 16  ;;  %p4992_p3 = scmp.lt.s32.totalorder %s4986_s11, %s6328_s27 }
 0xf7c   : > { %p4988_p13 = scmp.ne.s32.totalorder %s4986_s11, %s4987_s8  ;;  %p4993_p7 = scmp.lt.s32.totalorder %s4991_s7, %s4987_s8 }
 0xf7e   : > { %p4989_p9 = pnand %p4988_p13, %p5330_p5  ;;  %p4994_p0 = por %p4993_p7, %p4992_p3 }
 0xf80   : > { %p4990_p11 = pneg %p4989_p9 }
 0xf82   : > { %p4995_p1 = pnand %p4994_p0, %p4990_p11 }
 0xf84   : > { %4998 = shalt.err (!%p4995_p1)
}
 0xf85   : > { %s5119_s15 = smov 128  }
 0xf86   : > { %4454 = dma.vmem_to_hbm [thread:$0]  (%p5330_p5), %s4133_s24, 256, %s4135_s9, %s4120_s5, %s5119_s15, %s5119_s15, %s5118_s10  }
 0xf87 PF: > { %s6329_s4 = sld [smem:[#allocation16_spill]]  ;;  %p4477_p10 = scmp.ge.s32.totalorder %s5101_s23, 2 }
 0xf89   : > { %p4471_p4 = pnand %p4477_p10, %p5298_p2 }
 0xf8b   : > { %p4472_p6 = pneg %p4471_p4 }
 0xf8d   : > { %s4149_s20 = sand.u32 1, %s6329_s4  }
 0xf8e   : > { %s4150_s28 = scalar_lea.sflag [#allocation4], %s4149_s20 }
 0xf8f   : > { %5056 = dma.done.wait (%p4472_p6), %s4150_s28, 256  }
 0xf90   : > { %5058 = vsyncadd (%p4472_p6), %s4150_s28, 4294967040  ;;  %s30_s23 = sadd.s32 1, %s5101_s23   ;;  %s6331_s25 = sld [smem:[#allocation15_spill]] }
 0xf91   : > { %p27_p8 = scmp.ge.s32.totalorder %s30_s23, 6   ;;  %s6332_s15 = sld [smem:[#allocation24_spill]] }
 0xf92   : > { %s6333_s16 = sld [smem:[#allocation17_spill]]  ;;  %s6340_s13 = smov %s5065_s14 }
 0xf93   : > { %s6334_s17 = sld [smem:[#allocation18_spill]] }
 0xf94   : > { %s6335_s18 = sld [smem:[#allocation28_spill]]  ;;  %29 = sbr.rel (!%p27_p8) target bundleno = 24 (0x18), region = 160 }
 0xf95   : > { %s6336_s19 = sld [smem:[#allocation21_spill]] }
 0xf96   : > { %s6337_s20 = sld [smem:[#allocation22_spill]]  ;;  %s6341_s14 = smov %s6331_s25 }
 0xf97   : > { %s6338_s21 = sld [smem:[#allocation23_spill]] }
 0xf98   : > { %s6339_s22 = sld [smem:[#allocation27_spill]] }
 0xf99   :  { %4156 = vsyncpa [#allocation3], 1 }
 0xf9a   :  { %4158 = vsyncpa [#allocation3 + $0x1], 1 }
 0xf9b   :  { %4159 = vsyncpa [#allocation6], 1 }
 0xf9c   :  { %4161 = vsyncpa [#allocation6 + $0x1], 1 }
 0xf9d   :  { %4162 = vsyncpa [#allocation9], 1 }
 0xf9e   :  { %4163 = vsyncpa [#allocation4], 1 }
 0xf9f   :  { %4165 = vsyncpa [#allocation4 + $0x1], 1 }

</bundles_post_ra>
